<compile_context>
chip_gen: v7x
topology: tpu7x:2x2x1
jax: 0.10.0
libtpu: 0.0.40
codegen_flags: <defaults>
</compile_context>

<pallas_src>
import functools

import jax
import jax.numpy as jnp
from jax import lax
from jax.experimental import pallas as pl
from jax.experimental.pallas import tpu as pltpu

KERNEL_H = 5   # conv kernel height (tokens per window), fixed by nn.Conv2d(1, 100, (5, E))
C_PAD = 128    # out_channels (100) zero-padded to one full lane width


def _round_up(x, m):
    return (x + m - 1) // m * m


def _cnn_kernel(tok_ref, table_ref, wconv_ref, bconv_ref, mask_ref,
                wfc_ref, bfc_ref, out_ref, *, seq_pad, batch_tile):
    """One grid step = one tile of `batch_tile` samples.

    tok_ref   : (BT*S_pad, 1)        int32  token ids (flattened batch tile)
    table_ref : (V_pad, E)           bf16   embedding table (zero-padded rows)
    wconv_ref : (KERNEL_H*E, C_PAD)  bf16   K-packed conv weights (padded C)
    bconv_ref : (1, C_PAD)           f32    conv bias (zero-padded)
    mask_ref  : (S_pad, C_PAD)       f32    1.0 on valid window rows else 0.0
    wfc_ref   : (1, C_PAD)           f32    fc weight row (zero-padded)
    bfc_ref   : (1, 1)               f32    fc bias
    out_ref   : (BT, 1)              f32    sigmoid output
    """
    BT = batch_tile
    S = seq_pad
    P = BT * S

    # ---- Embedding lookup: one-hot gather on the MXU (small vocab) ---------
    tok = tok_ref[...]                                              # (P, 1) i32
    vp = table_ref.shape[0]
    onehot = jnp.where(
        tok == lax.broadcasted_iota(jnp.int32, (P, vp), 1),
        1.0, 0.0).astype(jnp.bfloat16)                              # (P, Vp)
    emb = jnp.dot(onehot, table_ref[...],
                  preferred_element_type=jnp.float32)               # (P, E) f32

    # ---- Conv2d(1, C, (5, E)) as ONE K-packed matmul ------------------------
    # windows[p, k*E + e] = emb[(p + k) % P, e]; wrapped / cross-sample rows
    # only land on positions the mask below zeroes out.
    taps = [emb]
    for k in range(1, KERNEL_H):
        taps.append(pltpu.roll(emb, shift=P - k, axis=0))           # emb[p + k]
    windows = jnp.concatenate(taps, axis=-1).astype(jnp.bfloat16)   # (P, 5E)
    conv = jnp.dot(windows, wconv_ref[...],
                   preferred_element_type=jnp.float32)              # (P, C_PAD)
    act = jnp.maximum(conv + bconv_ref[...], 0.0)                   # bias + ReLU

    # ---- mask invalid windows, global max-pool over the sequence -----------
    # ReLU output >= 0, so multiplying invalid rows by 0 is neutral for max.
    act3 = act.reshape(BT, S, C_PAD) * mask_ref[...]                # (BT, S, C)
    pooled = jnp.max(act3, axis=1)                                  # (BT, C_PAD)

    # ---- Dropout = identity (eval), Linear(100, 1), Sigmoid -----------------
    logit = jnp.sum(pooled * wfc_ref[...], axis=-1, keepdims=True) + bfc_ref[...]
    out_ref[...] = jax.nn.sigmoid(logit)                            # (BT, 1)


@jax.jit
def cnn_forward(tokens, emb_table, wconv, bconv, wfc, bfc):
    """Forward pass of the text-CNN.

    tokens    : (B, S) int32 token ids
    emb_table : (V, E) f32                Embedding weight
    wconv     : (C, 1, KERNEL_H, E) f32   Conv2d weight (PyTorch layout)
    bconv     : (C,) f32                  Conv2d bias
    wfc       : (1, C) f32                Linear weight (PyTorch layout)
    bfc       : (1,) f32                  Linear bias
    returns   : (B, 1) f32 sigmoid outputs
    """
    B, S = tokens.shape
    V, E = emb_table.shape
    C, _, KH, EW = wconv.shape
    assert KH == KERNEL_H and EW == E and C <= C_PAD
    L = S - KERNEL_H + 1
    assert L >= 1, "sequence length must be >= conv kernel height"

    S_pad = _round_up(S, 8)        # keeps the (BT, S, C) reshape a free view
    V_pad = _round_up(V, 128)
    # TODO(synk): for large vocabularies the one-hot gather / VMEM-resident
    # table stops making sense; use PrefetchScalarGridSpec + per-row DMA.
    assert V_pad * E * 2 <= 8 * 1024 * 1024, "vocab too large for one-hot path"

    # Batch tile: largest tile keeping ~4K flattened rows; the f32 window /
    # activation temporaries (~1.7 KB per row) then stay a few MiB, well under
    # the 32 MiB scoped-VMEM limit below on every generation (v7x included).
    # Note: on v7x (2 TensorCores) very large batches get n_tiles >= 2 so the
    # "parallel" grid axis can shard across cores.
    P_MAX = 4096
    bt_cap = max(8, (P_MAX // S_pad) // 8 * 8)
    if B <= bt_cap:
        BT, B_pad = B, B
    else:
        BT = bt_cap
        B_pad = _round_up(B, BT)
    n_tiles = B_pad // BT

    # ---- host-side operand prep (all tiny) ----------------------------------
    tok_p = jnp.pad(tokens.astype(jnp.int32), ((0, B_pad - B), (0, S_pad - S)))
    tok2d = tok_p.reshape(B_pad * S_pad, 1)

    table_p = jnp.pad(emb_table.astype(jnp.float32),
                      ((0, V_pad - V), (0, 0))).astype(jnp.bfloat16)

    # K-packed conv weights: row k*E + e  <->  wconv[c, 0, k, e].
    wpacked = jnp.transpose(wconv.reshape(C, KERNEL_H * E))            # (5E, C)
    wpacked = jnp.pad(wpacked, ((0, 0), (0, C_PAD - C))).astype(jnp.bfloat16)
    bconv_p = jnp.pad(bconv.reshape(1, C).astype(jnp.float32),
                      ((0, 0), (0, C_PAD - C)))
    wfc_p = jnp.pad(wfc.reshape(1, C).astype(jnp.float32),
                    ((0, 0), (0, C_PAD - C)))
    bfc_p = bfc.reshape(1, 1).astype(jnp.float32)

    row_valid = (jnp.arange(S_pad) < L).astype(jnp.float32)            # (S_pad,)
    mask = jnp.broadcast_to(row_valid[:, None], (S_pad, C_PAD))

    kernel = functools.partial(_cnn_kernel, seq_pad=S_pad, batch_tile=BT)
    out = pl.pallas_call(
        kernel,
        out_shape=jax.ShapeDtypeStruct((B_pad, 1), jnp.float32),
        grid=(n_tiles,),
        in_specs=[
            pl.BlockSpec((BT * S_pad, 1), lambda i: (i, 0)),           # tokens
            pl.BlockSpec((V_pad, E), lambda i: (0, 0)),                # emb table
            pl.BlockSpec((KERNEL_H * E, C_PAD), lambda i: (0, 0)),     # conv W
            pl.BlockSpec((1, C_PAD), lambda i: (0, 0)),                # conv b
            pl.BlockSpec((S_pad, C_PAD), lambda i: (0, 0)),            # valid mask
            pl.BlockSpec((1, C_PAD), lambda i: (0, 0)),                # fc W row
            pl.BlockSpec((1, 1), lambda i: (0, 0)),                    # fc b
        ],
        out_specs=pl.BlockSpec((BT, 1), lambda i: (i, 0)),
        compiler_params=pltpu.CompilerParams(
            dimension_semantics=("parallel",),
            vmem_limit_bytes=32 * 1024 * 1024),
    )(tok2d, table_p, wpacked, bconv_p, mask, wfc_p, bfc_p)

    return out[:B]


def reference_forward(tokens, emb_table, wconv, bconv, wfc, bfc):
    """Pure-JAX f32 reference matching the PyTorch module (eval mode)."""
    emb = jnp.take(emb_table, tokens, axis=0)                        # (B, S, E)
    B, S, E = emb.shape
    C = wconv.shape[0]
    L = S - KERNEL_H + 1
    w = wconv.reshape(C, KERNEL_H * E)                               # (C, 5E)
    windows = jnp.concatenate(
        [emb[:, i:i + L, :] for i in range(KERNEL_H)], axis=-1)      # (B, L, 5E)
    conv = jnp.einsum("blf,cf->blc", windows, w) + bconv             # (B, L, C)
    act = jnp.maximum(conv, 0.0)
    pooled = jnp.max(act, axis=1)                                    # (B, C)
    logit = pooled @ wfc.T + bfc                                     # (B, 1)
    return jax.nn.sigmoid(logit)


if __name__ == "__main__":
    # Small shapes consistent with the module (out_channels fixed at 100).
    B = 32           # batch_size (matches the module default)
    S = 16           # num_sequences (token length); conv output length = S-4
    E = 32           # embedding_dim
    C = 100          # out_channels fixed by nn.Conv2d(1, 100, (5, E))
    V = 50           # vocab_size

    key = jax.random.PRNGKey(0)
    k_tok, k_emb, k_wc, k_bc, k_wf, k_bf = jax.random.split(key, 6)

    tokens = jax.random.randint(k_tok, (B, S), 0, V, dtype=jnp.int32)
    emb_table = jax.random.normal(k_emb, (V, E), dtype=jnp.float32)
    wconv = 0.1 * jax.random.normal(k_wc, (C, 1, KERNEL_H, E), dtype=jnp.float32)
    bconv = 0.1 * jax.random.normal(k_bc, (C,), dtype=jnp.float32)
    wfc = 0.1 * jax.random.normal(k_wf, (1, C), dtype=jnp.float32)
    bfc = 0.1 * jax.random.normal(k_bf, (1,), dtype=jnp.float32)

    out = jax.block_until_ready(
        cnn_forward(tokens, emb_table, wconv, bconv, wfc, bfc))
    ref = reference_forward(tokens, emb_table, wconv, bconv, wfc, bfc)

    assert out.shape == (B, 1), out.shape
    # bf16 MXU operands (f32 accumulation) vs. the pure-f32 reference.
    assert jnp.allclose(out, ref, atol=2e-2), (out, ref)

    print("KERNEL_OK")
</pallas_src>

<mosaic_0001>
module attributes {stable_mosaic.version = 11 : i64} {
  func.func @_cnn_kernel(%arg0: i32, %arg1: memref<512x1xi32, #tpu.memory_space<vmem>>, %arg2: memref<128x32xbf16, #tpu.memory_space<vmem>>, %arg3: memref<160x128xbf16, #tpu.memory_space<vmem>>, %arg4: memref<1x128xf32, #tpu.memory_space<vmem>>, %arg5: memref<16x128xf32, #tpu.memory_space<vmem>>, %arg6: memref<1x128xf32, #tpu.memory_space<vmem>>, %arg7: memref<1x1xf32, #tpu.memory_space<vmem>>, %arg8: memref<32x1xf32, #tpu.memory_space<vmem>>) attributes {dimension_semantics = [#tpu.dimension_semantics<parallel>], iteration_bounds = array<i64: 1>, scalar_prefetch = 0 : i64, scratch_operands = 0 : i64, tpu.core_type = #tpu.core_type<tc>, window_params = [{transform_indices = @transform_0, window_bounds = array<i64: 512, 1>}, {pipeline_mode = #tpu.pipeline_mode<synchronous>, transform_indices = @transform_1, window_bounds = array<i64: 128, 32>}, {pipeline_mode = #tpu.pipeline_mode<synchronous>, transform_indices = @transform_2, window_bounds = array<i64: 160, 128>}, {pipeline_mode = #tpu.pipeline_mode<synchronous>, transform_indices = @transform_3, window_bounds = array<i64: 1, 128>}, {pipeline_mode = #tpu.pipeline_mode<synchronous>, transform_indices = @transform_4, window_bounds = array<i64: 16, 128>}, {pipeline_mode = #tpu.pipeline_mode<synchronous>, transform_indices = @transform_5, window_bounds = array<i64: 1, 128>}, {pipeline_mode = #tpu.pipeline_mode<synchronous>, transform_indices = @transform_6, window_bounds = array<i64: 1, 1>}, {transform_indices = @transform_7, window_bounds = array<i64: 32, 1>}]} {
    %c0 = arith.constant 0 : index
    %c0_0 = arith.constant 0 : index
    %0 = vector.load %arg1[%c0, %c0_0] : memref<512x1xi32, #tpu.memory_space<vmem>>, vector<512x1xi32>
    %1 = tpu.iota {dimensions = array<i32: 1>} : vector<512x128xi32>
    %2 = vector.broadcast %0 : vector<512x1xi32> to vector<512x128xi32>
    %3 = arith.cmpi eq, %2, %1 : vector<512x128xi32>
    %cst = arith.constant 1.000000e+00 : f32
    %cst_1 = arith.constant 0.000000e+00 : f32
    %4 = vector.broadcast %cst : f32 to vector<512x128xf32>
    %5 = vector.broadcast %cst_1 : f32 to vector<512x128xf32>
    %6 = arith.select %3, %4, %5 : vector<512x128xi1>, vector<512x128xf32>
    %7 = arith.truncf %6 : vector<512x128xf32> to vector<512x128xbf16>
    %c0_2 = arith.constant 0 : index
    %c0_3 = arith.constant 0 : index
    %8 = vector.load %arg2[%c0_2, %c0_3] : memref<128x32xbf16, #tpu.memory_space<vmem>>, vector<128x32xbf16>
    %cst_4 = arith.constant dense<0.000000e+00> : vector<512x32xf32>
    %9 = tpu.matmul %7, %8, %cst_4 {dimension_numbers = #tpu.dot_dimension_numbers<[1], [0], [0], [1], [0, 0, 1, 1], [], []>} : vector<512x128xbf16>, vector<128x32xbf16>, vector<512x32xf32> -> vector<512x32xf32>
    %c511_i32 = arith.constant 511 : i32
    %10 = tpu.dynamic_rotate %9 by %c511_i32 dim 0 : vector<512x32xf32>, i32 -> vector<512x32xf32>
    %c510_i32 = arith.constant 510 : i32
    %11 = tpu.dynamic_rotate %9 by %c510_i32 dim 0 : vector<512x32xf32>, i32 -> vector<512x32xf32>
    %c509_i32 = arith.constant 509 : i32
    %12 = tpu.dynamic_rotate %9 by %c509_i32 dim 0 : vector<512x32xf32>, i32 -> vector<512x32xf32>
    %c508_i32 = arith.constant 508 : i32
    %13 = tpu.dynamic_rotate %9 by %c508_i32 dim 0 : vector<512x32xf32>, i32 -> vector<512x32xf32>
    %14 = tpu.concatenate %9, %10, %11, %12, %13 in 1 : vector<512x32xf32>, vector<512x32xf32>, vector<512x32xf32>, vector<512x32xf32>, vector<512x32xf32> -> vector<512x160xf32>
    %15 = arith.truncf %14 : vector<512x160xf32> to vector<512x160xbf16>
    %c0_5 = arith.constant 0 : index
    %c0_6 = arith.constant 0 : index
    %16 = vector.load %arg3[%c0_5, %c0_6] : memref<160x128xbf16, #tpu.memory_space<vmem>>, vector<160x128xbf16>
    %cst_7 = arith.constant dense<0.000000e+00> : vector<512x128xf32>
    %17 = tpu.matmul %15, %16, %cst_7 {dimension_numbers = #tpu.dot_dimension_numbers<[1], [0], [0], [1], [0, 0, 1, 1], [], []>} : vector<512x160xbf16>, vector<160x128xbf16>, vector<512x128xf32> -> vector<512x128xf32>
    %c0_8 = arith.constant 0 : index
    %c0_9 = arith.constant 0 : index
    %18 = vector.load %arg4[%c0_8, %c0_9] : memref<1x128xf32, #tpu.memory_space<vmem>>, vector<1x128xf32>
    %19 = vector.broadcast %18 : vector<1x128xf32> to vector<512x128xf32>
    %20 = arith.addf %17, %19 : vector<512x128xf32>
    %cst_10 = arith.constant 0.000000e+00 : f32
    %21 = vector.broadcast %cst_10 : f32 to vector<512x128xf32>
    %22 = arith.maximumf %20, %21 : vector<512x128xf32>
    %23 = vector.shape_cast %22 : vector<512x128xf32> to vector<32x16x128xf32>
    %c0_11 = arith.constant 0 : index
    %c0_12 = arith.constant 0 : index
    %24 = vector.load %arg5[%c0_11, %c0_12] : memref<16x128xf32, #tpu.memory_space<vmem>>, vector<16x128xf32>
    %25 = vector.shape_cast %24 : vector<16x128xf32> to vector<1x16x128xf32>
    %26 = vector.broadcast %25 : vector<1x16x128xf32> to vector<32x16x128xf32>
    %27 = arith.mulf %23, %26 : vector<32x16x128xf32>
    %cst_13 = arith.constant dense<0xFF800000> : vector<32x128xf32>
    %28 = vector.multi_reduction <maximumf>, %27, %cst_13 [1] : vector<32x16x128xf32> to vector<32x128xf32>
    %c0_14 = arith.constant 0 : index
    %c0_15 = arith.constant 0 : index
    %29 = vector.load %arg6[%c0_14, %c0_15] : memref<1x128xf32, #tpu.memory_space<vmem>>, vector<1x128xf32>
    %30 = vector.broadcast %29 : vector<1x128xf32> to vector<32x128xf32>
    %31 = arith.mulf %28, %30 : vector<32x128xf32>
    %cst_16 = arith.constant dense<0.000000e+00> : vector<32xf32>
    %32 = vector.multi_reduction <add>, %31, %cst_16 [1] : vector<32x128xf32> to vector<32xf32>
    %33 = vector.shape_cast %32 : vector<32xf32> to vector<32x1xf32>
    %c0_17 = arith.constant 0 : index
    %c0_18 = arith.constant 0 : index
    %34 = vector.load %arg7[%c0_17, %c0_18] : memref<1x1xf32, #tpu.memory_space<vmem>>, vector<1x1xf32>
    %35 = vector.broadcast %34 : vector<1x1xf32> to vector<32x1xf32>
    %36 = arith.addf %33, %35 : vector<32x1xf32>
    %37 = arith.negf %36 : vector<32x1xf32>
    %38 = math.exp %37 : vector<32x1xf32>
    %cst_19 = arith.constant 1.000000e+00 : f32
    %39 = vector.broadcast %cst_19 : f32 to vector<32x1xf32>
    %40 = arith.addf %39, %38 : vector<32x1xf32>
    %41 = arith.divf %39, %40 : vector<32x1xf32>
    %c0_20 = arith.constant 0 : index
    %c0_21 = arith.constant 0 : index
    %42 = vector.load %arg8[%c0_20, %c0_21] : memref<32x1xf32, #tpu.memory_space<vmem>>, vector<32x1xf32>
    tpu.vector_store %arg8[%c0_20, %c0_21], %41 {strides = array<i32>} : memref<32x1xf32, #tpu.memory_space<vmem>>, vector<32x1xf32>,
    return
  }
  func.func @transform_0(%arg0: i32) -> (i32, i32) {
    %c0_i32 = arith.constant 0 : i32
    %c0_i32_0 = arith.constant 0 : i32
    return %arg0, %c0_i32 : i32, i32
  }
  func.func @transform_1(%arg0: i32) -> (i32, i32) {
    %c0_i32 = arith.constant 0 : i32
    %c0_i32_0 = arith.constant 0 : i32
    %c0_i32_1 = arith.constant 0 : i32
    return %c0_i32, %c0_i32_0 : i32, i32
  }
  func.func @transform_2(%arg0: i32) -> (i32, i32) {
    %c0_i32 = arith.constant 0 : i32
    %c0_i32_0 = arith.constant 0 : i32
    %c0_i32_1 = arith.constant 0 : i32
    return %c0_i32, %c0_i32_0 : i32, i32
  }
  func.func @transform_3(%arg0: i32) -> (i32, i32) {
    %c0_i32 = arith.constant 0 : i32
    %c0_i32_0 = arith.constant 0 : i32
    %c0_i32_1 = arith.constant 0 : i32
    return %c0_i32, %c0_i32_0 : i32, i32
  }
  func.func @transform_4(%arg0: i32) -> (i32, i32) {
    %c0_i32 = arith.constant 0 : i32
    %c0_i32_0 = arith.constant 0 : i32
    %c0_i32_1 = arith.constant 0 : i32
    return %c0_i32, %c0_i32_0 : i32, i32
  }
  func.func @transform_5(%arg0: i32) -> (i32, i32) {
    %c0_i32 = arith.constant 0 : i32
    %c0_i32_0 = arith.constant 0 : i32
    %c0_i32_1 = arith.constant 0 : i32
    return %c0_i32, %c0_i32_0 : i32, i32
  }
  func.func @transform_6(%arg0: i32) -> (i32, i32) {
    %c0_i32 = arith.constant 0 : i32
    %c0_i32_0 = arith.constant 0 : i32
    %c0_i32_1 = arith.constant 0 : i32
    return %c0_i32, %c0_i32_0 : i32, i32
  }
  func.func @transform_7(%arg0: i32) -> (i32, i32) {
    %c0_i32 = arith.constant 0 : i32
    %c0_i32_0 = arith.constant 0 : i32
    return %arg0, %c0_i32 : i32, i32
  }
}

</mosaic_0001>

<bundles_post_ra>
// kernel: cnn_forward.1
= control target key start
LH: loop header
LB: loop body
LE: loop exit
PB: predicated region body
PF: predicated region fallthrough
CT: control target
= control target key end

     0   :  { %v7892_v0 = vmov 0   ;;  %s4150_s22 = smov 32   ;;  %s4151_s23 = smov 96   ;;  %s7877_s0 = inlined_call_operand.vmem [shape: s32[512,1], index: 0, kind: input, shape index: {}]   ;;  %s7878_s1 = inlined_call_operand.vmem [shape: bf16[128,32], index: 1, kind: input, shape index: {}]   ;;  %s7879_s2 = inlined_call_operand.vmem [shape: bf16[160,128], index: 2, kind: input, shape index: {}]   ;;  %s7880_s3 = inlined_call_operand.vmem [shape: f32[1,128], index: 3, kind: input, shape index: {}]   ;;  %s7881_s4 = inlined_call_operand.vmem [shape: f32[16,128], index: 4, kind: input, shape index: {}]   ;;  %s7882_s5 = inlined_call_operand.vmem [shape: f32[1,128], index: 5, kind: input, shape index: {}]   ;;  %s7883_s6 = inlined_call_operand.<no memory space> [shape: f32[1,1], index: 6, kind: input, shape index: {}]   ;;  %s7884_s7 = inlined_call_operand.vmem [shape: f32[32,1], index: 7, kind: output, shape index: {}]  }
   0x1   :  { %3628 = vset.pattern.permute.xlu1 %v7892_v0  ;;  %3627 = vset.pattern.permute.xlu0 %v7892_v0  ;;  %v31_v1 = vld [vmem:[%s7877_s0 + $0x10] sm:$0xff]  ;;  %v29_v2 = vld [vmem:[%s7877_s0] sm:$0xff]  ;;  %v32_v3 = vld [vmem:[%s7877_s0 + $0x18] sm:$0xff] }
   0x2   :  { %102 = vperm.xlu1 %3628, %v31_v1   ;;  %96 = vperm.xlu0 %3627, %v29_v2   ;;  %v30_v4 = vld [vmem:[%s7877_s0 + $0x8] sm:$0xff]  ;;  %v33_v6 = vld [vmem:[%s7877_s0 + $0x20] sm:$0xff]  ;;  %v36_v7 = vld [vmem:[%s7877_s0 + $0x38] sm:$0xff] }
   0x3   :  { %3602 = vmatprep.subr.bf16.mxu1 %v7892_v0  ;;  %v34_v5 = vld [vmem:[%s7877_s0 + $0x28] sm:$0xff]  ;;  %v35_v8 = vld [vmem:[%s7877_s0 + $0x30] sm:$0xff]  ;;  %v37_v10 = vld [vmem:[%s7877_s0 + $0x40] sm:$0xff] }
   0x4   :  { %v38_v9 = vld [vmem:[%s7877_s0 + $0x48] sm:$0xff]  ;;  %v40_v11 = vld [vmem:[%s7877_s0 + $0x58] sm:$0xff]  ;;  %v39_v12 = vld [vmem:[%s7877_s0 + $0x50] sm:$0xff] }
   0x5   :  { %v4109_v13 = vld [vmem:[%s7878_s1] sm:$0xff]   ;;  %v4110_v14 = vld [vmem:[%s7878_s1 + $0x8] sm:$0xff]   ;;  %v4111_v17 = vld [vmem:[%s7878_s1 + $0x10] sm:$0xff]  }
   0x6   :  { %105 = vperm.xlu1 %3628, %v32_v3   ;;  %99 = vperm.xlu0 %3627, %v30_v4   ;;  %v42_v15 = vld [vmem:[%s7877_s0 + $0x68] sm:$0xff]  ;;  %v41_v16 = vld [vmem:[%s7877_s0 + $0x60] sm:$0xff]  ;;  %v44_v18 = vld [vmem:[%s7877_s0 + $0x78] sm:$0xff] }
   0x7   :  { %3522 = vmatprep.subr.bf16.mxu0 %v4109_v13  ;;  %v43_v19 = vld [vmem:[%s7877_s0 + $0x70] sm:$0xff]  ;;  %v4112_v20 = vld [vmem:[%s7878_s1 + $0x18] sm:$0xff]   ;;  %v46_v21 = vld [vmem:[%s7877_s0 + $0x88] sm:$0xff] }
   0x8   :  { %3523 = vmatpush3.bf16.msra.mxu0 %v4109_v13  ;;  %v45_v22 = vld [vmem:[%s7877_s0 + $0x80] sm:$0xff]  ;;  %v48_v24 = vld [vmem:[%s7877_s0 + $0x98] sm:$0xff]  ;;  %v47_v25 = vld [vmem:[%s7877_s0 + $0x90] sm:$0xff] }
   0x9   :  { %3524 = vmatprep.subr.bf16.mxu0 %v4110_v14  ;;  %v4113_v23 = vld [vmem:[%s7878_s1 + $0x20] sm:$0xff]   ;;  %v4114_v26 = vld [vmem:[%s7878_s1 + $0x28] sm:$0xff]   ;;  %v4115_v29 = vld [vmem:[%s7878_s1 + $0x30] sm:$0xff]  }
   0xa   :  { %111 = vperm.xlu1 %3628, %v34_v5   ;;  %108 = vperm.xlu0 %3627, %v33_v6   ;;  %v50_v27 = vld [vmem:[%s7877_s0 + $0xa8] sm:$0xff]  ;;  %v49_v28 = vld [vmem:[%s7877_s0 + $0xa0] sm:$0xff]  ;;  %v52_v30 = vld [vmem:[%s7877_s0 + $0xb8] sm:$0xff] }
   0xb   :  { %v51_v31 = vld [vmem:[%s7877_s0 + $0xb0] sm:$0xff]  ;;  %v4116_v32 = vld [vmem:[%s7878_s1 + $0x38] sm:$0xff]   ;;  %v54_v33 = vld [vmem:[%s7877_s0 + $0xc8] sm:$0xff] }
   0xc   :  { %3525 = vmatpush3.bf16.msra.mxu0 %v4110_v14  ;;  %v53_v34 = vld [vmem:[%s7877_s0 + $0xc0] sm:$0xff]  ;;  %v56_v35 = vld [vmem:[%s7877_s0 + $0xd8] sm:$0xff]  ;;  %v55_v36 = vld [vmem:[%s7877_s0 + $0xd0] sm:$0xff] }
   0xd   :  { %3526 = vmatprep.subr.bf16.mxu0 %v4111_v17  ;;  %v58_v37 = vld [vmem:[%s7877_s0 + $0xe8] sm:$0xff]  ;;  %v57_v38 = vld [vmem:[%s7877_s0 + $0xe0] sm:$0xff]  ;;  %v60_v39 = vld [vmem:[%s7877_s0 + $0xf8] sm:$0xff] }
   0xe   :  { %117 = vperm.xlu1 %3628, %v36_v7   ;;  %114 = vperm.xlu0 %3627, %v35_v8   ;;  %v59_v40 = vld [vmem:[%s7877_s0 + $0xf0] sm:$0xff]  ;;  %v62_v41 = vld [vmem:[%s7877_s0 + $0x108] sm:$0xff]  ;;  %v61_v42 = vld [vmem:[%s7877_s0 + $0x100] sm:$0xff] }
   0xf   :  { %v64_v43 = vld [vmem:[%s7877_s0 + $0x118] sm:$0xff]  ;;  %v63_v44 = vld [vmem:[%s7877_s0 + $0x110] sm:$0xff]  ;;  %v66_v45 = vld [vmem:[%s7877_s0 + $0x128] sm:$0xff] }
  0x10   :  { %3527 = vmatpush3.bf16.msra.mxu0 %v4111_v17  ;;  %v65_v46 = vld [vmem:[%s7877_s0 + $0x120] sm:$0xff]  ;;  %v68_v47 = vld [vmem:[%s7877_s0 + $0x138] sm:$0xff]  ;;  %v67_v48 = vld [vmem:[%s7877_s0 + $0x130] sm:$0xff] }
  0x11   :  { %3528 = vmatprep.subr.bf16.mxu0 %v4112_v20  ;;  %v70_v49 = vld [vmem:[%s7877_s0 + $0x148] sm:$0xff]  ;;  %v69_v50 = vld [vmem:[%s7877_s0 + $0x140] sm:$0xff]  ;;  %v72_v51 = vld [vmem:[%s7877_s0 + $0x158] sm:$0xff] }
  0x12   :  { %123 = vperm.xlu1 %3628, %v38_v9   ;;  %120 = vperm.xlu0 %3627, %v37_v10   ;;  %v71_v52 = vld [vmem:[%s7877_s0 + $0x150] sm:$0xff]  ;;  %v74_v53 = vld [vmem:[%s7877_s0 + $0x168] sm:$0xff]  ;;  %v73_v54 = vld [vmem:[%s7877_s0 + $0x160] sm:$0xff]  ;;  %v93_v10 = vlaneseq }
  0x13   :  { %v76_v55 = vld [vmem:[%s7877_s0 + $0x178] sm:$0xff]  ;;  %v75_v56 = vld [vmem:[%s7877_s0 + $0x170] sm:$0xff]  ;;  %v78_v57 = vld [vmem:[%s7877_s0 + $0x188] sm:$0xff] }
  0x14   :  { %3529 = vmatpush3.bf16.msra.mxu0 %v4112_v20  ;;  %v77_v58 = vld [vmem:[%s7877_s0 + $0x180] sm:$0xff]  ;;  %v80_v59 = vld [vmem:[%s7877_s0 + $0x198] sm:$0xff]  ;;  %v79_v60 = vld [vmem:[%s7877_s0 + $0x190] sm:$0xff]  ;;  %v4413_v13 = vand.u32 127, %v93_v10 }
  0x15   :  { %3530 = vmatprep.subr.bf16.mxu0 %v4113_v23  ;;  %v82_v61 = vld [vmem:[%s7877_s0 + $0x1a8] sm:$0xff]  ;;  %v81_v62 = vld [vmem:[%s7877_s0 + $0x1a0] sm:$0xff]  ;;  %v84_v63 = vld [vmem:[%s7877_s0 + $0x1b8] sm:$0xff] }
  0x16   :  { %129 = vperm.xlu1 %3628, %v40_v11   ;;  %126 = vperm.xlu0 %3627, %v39_v12   ;;  %v83_v1 = vld [vmem:[%s7877_s0 + $0x1b0] sm:$0xff]  ;;  %v86_v2 = vld [vmem:[%s7877_s0 + $0x1c8] sm:$0xff]  ;;  %v85_v3 = vld [vmem:[%s7877_s0 + $0x1c0] sm:$0xff] }
  0x17   :  { %v88_v4 = vld [vmem:[%s7877_s0 + $0x1d8] sm:$0xff]  ;;  %v87_v5 = vld [vmem:[%s7877_s0 + $0x1d0] sm:$0xff]  ;;  %v90_v6 = vld [vmem:[%s7877_s0 + $0x1e8] sm:$0xff] }
  0x18   :  { %3531 = vmatpush3.bf16.msra.mxu0 %v4113_v23  ;;  %v89_v7 = vld [vmem:[%s7877_s0 + $0x1e0] sm:$0xff]  ;;  %v92_v8 = vld [vmem:[%s7877_s0 + $0x1f8] sm:$0xff]  ;;  %v91_v9 = vld [vmem:[%s7877_s0 + $0x1f0] sm:$0xff] }
  0x19   :  { %3532 = vmatprep.subr.bf16.mxu0 %v4114_v26 }
  0x1a   :  { %135 = vperm.xlu1 %3628, %v42_v15   ;;  %132 = vperm.xlu0 %3627, %v41_v16   ;;  %v4148_v16 = vmov 1.0|1.0  }
  0x1c   :  { %3533 = vmatpush3.bf16.msra.mxu0 %v4114_v26 }
  0x1d   :  { %3534 = vmatprep.subr.bf16.mxu0 %v4115_v29 }
  0x1e   :  { %141 = vperm.xlu1 %3628, %v44_v18   ;;  %138 = vperm.xlu0 %3627, %v43_v19  }
  0x20   :  { %3535 = vmatpush3.bf16.msra.mxu0 %v4115_v29 }
  0x21   :  { %3536 = vmatprep.subr.bf16.mxu0 %v4116_v32 }
  0x22   :  { %147 = vperm.xlu1 %3628, %v46_v21   ;;  %144 = vperm.xlu0 %3627, %v45_v22  }
  0x24   :  { %3537 = vmatpush3.bf16.msra.mxu0 %v4116_v32 }
  0x25   :  { %2528 = vmatprep.subr.bf16.mxu0 %v7892_v0 }
  0x26   :  { %153 = vperm.xlu1 %3628, %v48_v24   ;;  %150 = vperm.xlu0 %3627, %v47_v25  }
  0x2a   :  { %159 = vperm.xlu1 %3628, %v50_v27   ;;  %156 = vperm.xlu0 %3627, %v49_v28  }
  0x2e   :  { %165 = vperm.xlu1 %3628, %v52_v30   ;;  %162 = vperm.xlu0 %3627, %v51_v31  }
  0x32   :  { %171 = vperm.xlu1 %3628, %v54_v33   ;;  %168 = vperm.xlu0 %3627, %v53_v34  }
  0x36   :  { %177 = vperm.xlu1 %3628, %v56_v35   ;;  %174 = vperm.xlu0 %3627, %v55_v36  }
  0x3a   :  { %183 = vperm.xlu1 %3628, %v58_v37   ;;  %180 = vperm.xlu0 %3627, %v57_v38  }
  0x3e   :  { %189 = vperm.xlu1 %3628, %v60_v39   ;;  %186 = vperm.xlu0 %3627, %v59_v40  }
  0x42   :  { %195 = vperm.xlu1 %3628, %v62_v41   ;;  %192 = vperm.xlu0 %3627, %v61_v42  }
  0x46   :  { %201 = vperm.xlu1 %3628, %v64_v43   ;;  %198 = vperm.xlu0 %3627, %v63_v44  }
  0x4a   :  { %207 = vperm.xlu1 %3628, %v66_v45   ;;  %204 = vperm.xlu0 %3627, %v65_v46  }
  0x4e   :  { %213 = vperm.xlu1 %3628, %v68_v47   ;;  %210 = vperm.xlu0 %3627, %v67_v48  }
  0x52   :  { %219 = vperm.xlu1 %3628, %v70_v49   ;;  %216 = vperm.xlu0 %3627, %v69_v50  }
  0x56   :  { %225 = vperm.xlu1 %3628, %v72_v51   ;;  %222 = vperm.xlu0 %3627, %v71_v52  }
  0x5a   :  { %231 = vperm.xlu1 %3628, %v74_v53   ;;  %228 = vperm.xlu0 %3627, %v73_v54  }
  0x5e   :  { %237 = vperm.xlu1 %3628, %v76_v55   ;;  %234 = vperm.xlu0 %3627, %v75_v56  }
  0x62   :  { %243 = vperm.xlu1 %3628, %v78_v57   ;;  %240 = vperm.xlu0 %3627, %v77_v58  }
  0x66   :  { %249 = vperm.xlu1 %3628, %v80_v59   ;;  %246 = vperm.xlu0 %3627, %v79_v60  }
  0x6a   :  { %255 = vperm.xlu1 %3628, %v82_v61   ;;  %252 = vperm.xlu0 %3627, %v81_v62  }
  0x6e   :  { %261 = vperm.xlu1 %3628, %v84_v63   ;;  %258 = vperm.xlu0 %3627, %v83_v1  }
  0x72   :  { %267 = vperm.xlu1 %3628, %v86_v2   ;;  %264 = vperm.xlu0 %3627, %v85_v3  }
  0x76   :  { %273 = vperm.xlu1 %3628, %v88_v4   ;;  %270 = vperm.xlu0 %3627, %v87_v5  }
  0x7a   :  { %279 = vperm.xlu1 %3628, %v90_v6   ;;  %276 = vperm.xlu0 %3627, %v89_v7  }
  0x7e   :  { %285 = vperm.xlu1 %3628, %v92_v8   ;;  %282 = vperm.xlu0 %3627, %v91_v9  }
  0x81   :  { %v103_v11 = vpop.permute.xlu1 %102  ;;  %v97_v12 = vpop.permute.xlu0 %96 }
  0x82   :  { %vm289_vm0 = vcmp.eq.s32.totalorder %v103_v11, %v4413_v13  ;;  %vm287_vm4 = vcmp.eq.s32.totalorder %v97_v12, %v4413_v13 }
  0x85   :  { %v106_v14 = vpop.permute.xlu1 %105  ;;  %v100_v15 = vpop.permute.xlu0 %99 }
  0x86   :  { %vm290_vm1 = vcmp.eq.s32.totalorder %v106_v14, %v4413_v13  ;;  %vm288_vm2 = vcmp.eq.s32.totalorder %v100_v15, %v4413_v13 }
  0x87   :  { %vm3371_vm3 = vmpackc.low %vm290_vm1, %vm289_vm0 }
  0x88   :  { %vm3369_vm5 = vmpackc.low %vm288_vm2, %vm287_vm4 }
  0x89   :  { %3538 = vmatprep.mubr.msk.bf16.mxu0 %vm3369_vm5, %v4148_v16  ;;  %v112_v17 = vpop.permute.xlu1 %111  ;;  %v109_v18 = vpop.permute.xlu0 %108 }
  0x8a   :  { %vm292_vm6 = vcmp.eq.s32.totalorder %v112_v17, %v4413_v13  ;;  %3539 = vmatmul.mubr.msk.bf16.vlgmr.msra.gmra.mrb[0].mxu0 %vm3371_vm3, %v4148_v16  ;;  %vm291_vm7 = vcmp.eq.s32.totalorder %v109_v18, %v4413_v13  ;;  %v4512_v17 = vshrl.u32 %v93_v10, 7 }
  0x8b   :  { %vm3373_vm8 = vmpackc.low %vm292_vm6, %vm291_vm7 }
  0x8c   :  { %3542 = vmatprep.mubr.msk.bf16.mxu0 %vm3373_vm8, %v4148_v16 }
  0x8d   :  { %v118_v19 = vpop.permute.xlu1 %117  ;;  %v115_v20 = vpop.permute.xlu0 %114 }
  0x8e   :  { %vm294_vm9 = vcmp.eq.s32.totalorder %v118_v19, %v4413_v13  ;;  %vm293_vm10 = vcmp.eq.s32.totalorder %v115_v20, %v4413_v13 }
  0x8f   :  { %vm3375_vm11 = vmpackc.low %vm294_vm9, %vm293_vm10 }
  0x91   :  { %v124_v21 = vpop.permute.xlu1 %123  ;;  %v121_v22 = vpop.permute.xlu0 %120 }
  0x92   :  { %vm296_vm12 = vcmp.eq.s32.totalorder %v124_v21, %v4413_v13  ;;  %3543 = vmatmul.mubr.msk.bf16.gmra.mrb[4].mxu0 %vm3375_vm11, %v4148_v16  ;;  %vm295_vm13 = vcmp.eq.s32.totalorder %v121_v22, %v4413_v13 }
  0x93   :  { %vm3377_vm14 = vmpackc.low %vm296_vm12, %vm295_vm13 }
  0x94   :  { %3546 = vmatprep.mubr.msk.bf16.mxu0 %vm3377_vm14, %v4148_v16 }
  0x95   :  { %v130_v23 = vpop.permute.xlu1 %129  ;;  %v127_v24 = vpop.permute.xlu0 %126 }
  0x96   :  { %vm298_vm15 = vcmp.eq.s32.totalorder %v130_v23, %v4413_v13  ;;  %vm297_vm0 = vcmp.eq.s32.totalorder %v127_v24, %v4413_v13 }
  0x97   :  { %vm3379_vm1 = vmpackc.low %vm298_vm15, %vm297_vm0 }
  0x99   :  { %v136_v25 = vpop.permute.xlu1 %135  ;;  %v133_v26 = vpop.permute.xlu0 %132 }
  0x9a   :  { %vm300_vm2 = vcmp.eq.s32.totalorder %v136_v25, %v4413_v13  ;;  %3547 = vmatmul.mubr.msk.bf16.gmra.mrb[8].mxu0 %vm3379_vm1, %v4148_v16  ;;  %vm299_vm3 = vcmp.eq.s32.totalorder %v133_v26, %v4413_v13 }
  0x9b   :  { %vm3381_vm4 = vmpackc.low %vm300_vm2, %vm299_vm3 }
  0x9c   :  { %3550 = vmatprep.mubr.msk.bf16.mxu0 %vm3381_vm4, %v4148_v16 }
  0x9d   :  { %v142_v27 = vpop.permute.xlu1 %141  ;;  %v139_v28 = vpop.permute.xlu0 %138 }
  0x9e   :  { %vm302_vm5 = vcmp.eq.s32.totalorder %v142_v27, %v4413_v13  ;;  %vm301_vm6 = vcmp.eq.s32.totalorder %v139_v28, %v4413_v13 }
  0x9f   :  { %vm3383_vm7 = vmpackc.low %vm302_vm5, %vm301_vm6 }
  0xa1   :  { %v148_v29 = vpop.permute.xlu1 %147  ;;  %v145_v30 = vpop.permute.xlu0 %144 }
  0xa2   :  { %vm304_vm8 = vcmp.eq.s32.totalorder %v148_v29, %v4413_v13  ;;  %3551 = vmatmul.mubr.msk.bf16.gmra.mrb[12].mxu0 %vm3383_vm7, %v4148_v16  ;;  %vm303_vm9 = vcmp.eq.s32.totalorder %v145_v30, %v4413_v13 }
  0xa3   :  { %vm3385_vm10 = vmpackc.low %vm304_vm8, %vm303_vm9 }
  0xa4   :  { %3554 = vmatprep.mubr.msk.bf16.mxu0 %vm3385_vm10, %v4148_v16 }
  0xa5   :  { %v154_v31 = vpop.permute.xlu1 %153  ;;  %v151_v32 = vpop.permute.xlu0 %150 }
  0xa6   :  { %vm306_vm11 = vcmp.eq.s32.totalorder %v154_v31, %v4413_v13  ;;  %vm305_vm12 = vcmp.eq.s32.totalorder %v151_v32, %v4413_v13  ;;  %v4118_v32 = vld [vmem:[%s7879_s2 + $0x8] sm:$0xff]  }
  0xa7   :  { %vm3387_vm13 = vmpackc.low %vm306_vm11, %vm305_vm12 }
  0xa9   :  { %v160_v33 = vpop.permute.xlu1 %159  ;;  %v157_v34 = vpop.permute.xlu0 %156 }
  0xaa   :  { %vm308_vm14 = vcmp.eq.s32.totalorder %v160_v33, %v4413_v13  ;;  %3555 = vmatmul.mubr.msk.bf16.gmra.mrb[16].mxu0 %vm3387_vm13, %v4148_v16  ;;  %vm307_vm15 = vcmp.eq.s32.totalorder %v157_v34, %v4413_v13 }
  0xab   :  { %vm3389_vm0 = vmpackc.low %vm308_vm14, %vm307_vm15 }
  0xac   :  { %3558 = vmatprep.mubr.msk.bf16.mxu0 %vm3389_vm0, %v4148_v16 }
  0xad   :  { %v166_v35 = vpop.permute.xlu1 %165  ;;  %v163_v36 = vpop.permute.xlu0 %162 }
  0xae   :  { %vm310_vm1 = vcmp.eq.s32.totalorder %v166_v35, %v4413_v13  ;;  %vm309_vm2 = vcmp.eq.s32.totalorder %v163_v36, %v4413_v13 }
  0xaf   :  { %vm3391_vm3 = vmpackc.low %vm310_vm1, %vm309_vm2 }
  0xb1   :  { %v172_v37 = vpop.permute.xlu1 %171  ;;  %v169_v38 = vpop.permute.xlu0 %168 }
  0xb2   :  { %vm312_vm4 = vcmp.eq.s32.totalorder %v172_v37, %v4413_v13  ;;  %3559 = vmatmul.mubr.msk.bf16.gmra.mrb[20].mxu0 %vm3391_vm3, %v4148_v16  ;;  %vm311_vm5 = vcmp.eq.s32.totalorder %v169_v38, %v4413_v13 }
  0xb3   :  { %vm3393_vm6 = vmpackc.low %vm312_vm4, %vm311_vm5 }
  0xb4   :  { %3562 = vmatprep.mubr.msk.bf16.mxu0 %vm3393_vm6, %v4148_v16 }
  0xb5   :  { %v178_v39 = vpop.permute.xlu1 %177  ;;  %v175_v40 = vpop.permute.xlu0 %174 }
  0xb6   :  { %vm314_vm7 = vcmp.eq.s32.totalorder %v178_v39, %v4413_v13  ;;  %vm313_vm8 = vcmp.eq.s32.totalorder %v175_v40, %v4413_v13 }
  0xb7   :  { %vm3395_vm9 = vmpackc.low %vm314_vm7, %vm313_vm8 }
  0xb9   :  { %v184_v41 = vpop.permute.xlu1 %183  ;;  %v181_v42 = vpop.permute.xlu0 %180 }
  0xba   :  { %vm316_vm10 = vcmp.eq.s32.totalorder %v184_v41, %v4413_v13  ;;  %3563 = vmatmul.mubr.msk.bf16.gmra.mrb[24].mxu0 %vm3395_vm9, %v4148_v16  ;;  %vm315_vm11 = vcmp.eq.s32.totalorder %v181_v42, %v4413_v13 }
  0xbb   :  { %vm3397_vm12 = vmpackc.low %vm316_vm10, %vm315_vm11 }
  0xbc   :  { %3566 = vmatprep.mubr.msk.bf16.mxu0 %vm3397_vm12, %v4148_v16 }
  0xbd   :  { %v190_v43 = vpop.permute.xlu1 %189  ;;  %v187_v44 = vpop.permute.xlu0 %186 }
  0xbe   :  { %vm318_vm13 = vcmp.eq.s32.totalorder %v190_v43, %v4413_v13  ;;  %vm317_vm14 = vcmp.eq.s32.totalorder %v187_v44, %v4413_v13 }
  0xbf   :  { %vm3399_vm15 = vmpackc.low %vm318_vm13, %vm317_vm14 }
  0xc1   :  { %v196_v45 = vpop.permute.xlu1 %195  ;;  %v193_v46 = vpop.permute.xlu0 %192 }
  0xc2   :  { %vm320_vm0 = vcmp.eq.s32.totalorder %v196_v45, %v4413_v13  ;;  %3567 = vmatmul.mubr.msk.bf16.gmra.mrb[28].mxu0 %vm3399_vm15, %v4148_v16  ;;  %vm319_vm1 = vcmp.eq.s32.totalorder %v193_v46, %v4413_v13 }
  0xc3   :  { %vm3401_vm2 = vmpackc.low %vm320_vm0, %vm319_vm1 }
  0xc4   :  { %3570 = vmatprep.mubr.msk.bf16.mxu0 %vm3401_vm2, %v4148_v16 }
  0xc5   :  { %v202_v47 = vpop.permute.xlu1 %201  ;;  %v199_v48 = vpop.permute.xlu0 %198 }
  0xc6   :  { %vm322_vm3 = vcmp.eq.s32.totalorder %v202_v47, %v4413_v13  ;;  %vm321_vm4 = vcmp.eq.s32.totalorder %v199_v48, %v4413_v13 }
  0xc7   :  { %vm3403_vm5 = vmpackc.low %vm322_vm3, %vm321_vm4 }
  0xc9   :  { %v208_v49 = vpop.permute.xlu1 %207  ;;  %v205_v50 = vpop.permute.xlu0 %204 }
  0xca   :  { %vm324_vm6 = vcmp.eq.s32.totalorder %v208_v49, %v4413_v13  ;;  %3571 = vmatmul.mubr.msk.bf16.gmra.mrb[32].mxu0 %vm3403_vm5, %v4148_v16  ;;  %vm323_vm7 = vcmp.eq.s32.totalorder %v205_v50, %v4413_v13  ;;  %v4119_v49 = vld [vmem:[%s7879_s2 + $0x10] sm:$0xff]  }
  0xcb   :  { %vm3405_vm8 = vmpackc.low %vm324_vm6, %vm323_vm7 }
  0xcc   :  { %3574 = vmatprep.mubr.msk.bf16.mxu0 %vm3405_vm8, %v4148_v16 }
  0xcd   :  { %v214_v51 = vpop.permute.xlu1 %213  ;;  %v211_v52 = vpop.permute.xlu0 %210 }
  0xce   :  { %vm326_vm9 = vcmp.eq.s32.totalorder %v214_v51, %v4413_v13  ;;  %vm325_vm10 = vcmp.eq.s32.totalorder %v211_v52, %v4413_v13 }
  0xcf   :  { %vm3407_vm11 = vmpackc.low %vm326_vm9, %vm325_vm10 }
  0xd1   :  { %v220_v53 = vpop.permute.xlu1 %219  ;;  %v217_v54 = vpop.permute.xlu0 %216 }
  0xd2   :  { %vm328_vm12 = vcmp.eq.s32.totalorder %v220_v53, %v4413_v13  ;;  %3575 = vmatmul.mubr.msk.bf16.gmra.mrb[36].mxu0 %vm3407_vm11, %v4148_v16  ;;  %vm327_vm13 = vcmp.eq.s32.totalorder %v217_v54, %v4413_v13 }
  0xd3   :  { %vm3409_vm14 = vmpackc.low %vm328_vm12, %vm327_vm13 }
  0xd4   :  { %3578 = vmatprep.mubr.msk.bf16.mxu0 %vm3409_vm14, %v4148_v16 }
  0xd5   :  { %v226_v55 = vpop.permute.xlu1 %225  ;;  %v223_v56 = vpop.permute.xlu0 %222 }
  0xd6   :  { %vm330_vm15 = vcmp.eq.s32.totalorder %v226_v55, %v4413_v13  ;;  %vm329_vm0 = vcmp.eq.s32.totalorder %v223_v56, %v4413_v13 }
  0xd7   :  { %vm3411_vm1 = vmpackc.low %vm330_vm15, %vm329_vm0 }
  0xd9   :  { %v232_v57 = vpop.permute.xlu1 %231  ;;  %v229_v58 = vpop.permute.xlu0 %228 }
  0xda   :  { %vm332_vm2 = vcmp.eq.s32.totalorder %v232_v57, %v4413_v13  ;;  %3579 = vmatmul.mubr.msk.bf16.gmra.mrb[40].mxu0 %vm3411_vm1, %v4148_v16  ;;  %vm331_vm3 = vcmp.eq.s32.totalorder %v229_v58, %v4413_v13 }
  0xdb   :  { %vm3413_vm4 = vmpackc.low %vm332_vm2, %vm331_vm3 }
  0xdc   :  { %3582 = vmatprep.mubr.msk.bf16.mxu0 %vm3413_vm4, %v4148_v16 }
  0xdd   :  { %v238_v59 = vpop.permute.xlu1 %237  ;;  %v235_v60 = vpop.permute.xlu0 %234 }
  0xde   :  { %vm334_vm5 = vcmp.eq.s32.totalorder %v238_v59, %v4413_v13  ;;  %vm333_vm6 = vcmp.eq.s32.totalorder %v235_v60, %v4413_v13 }
  0xdf   :  { %vm3415_vm7 = vmpackc.low %vm334_vm5, %vm333_vm6 }
  0xe1   :  { %v244_v61 = vpop.permute.xlu1 %243  ;;  %v241_v62 = vpop.permute.xlu0 %240 }
  0xe2   :  { %vm336_vm8 = vcmp.eq.s32.totalorder %v244_v61, %v4413_v13  ;;  %3583 = vmatmul.mubr.msk.bf16.gmra.mrb[44].mxu0 %vm3415_vm7, %v4148_v16  ;;  %vm335_vm9 = vcmp.eq.s32.totalorder %v241_v62, %v4413_v13 }
  0xe3   :  { %vm3417_vm10 = vmpackc.low %vm336_vm8, %vm335_vm9 }
  0xe4   :  { %3586 = vmatprep.mubr.msk.bf16.mxu0 %vm3417_vm10, %v4148_v16 }
  0xe5   :  { %v250_v63 = vpop.permute.xlu1 %249  ;;  %v247_v1 = vpop.permute.xlu0 %246 }
  0xe6   :  { %vm338_vm11 = vcmp.eq.s32.totalorder %v250_v63, %v4413_v13  ;;  %vm337_vm12 = vcmp.eq.s32.totalorder %v247_v1, %v4413_v13 }
  0xe7   :  { %vm3419_vm13 = vmpackc.low %vm338_vm11, %vm337_vm12 }
  0xe9   :  { %v256_v2 = vpop.permute.xlu1 %255  ;;  %v253_v3 = vpop.permute.xlu0 %252 }
  0xea   :  { %vm340_vm14 = vcmp.eq.s32.totalorder %v256_v2, %v4413_v13  ;;  %3587 = vmatmul.mubr.msk.bf16.gmra.mrb[48].mxu0 %vm3419_vm13, %v4148_v16  ;;  %vm339_vm15 = vcmp.eq.s32.totalorder %v253_v3, %v4413_v13 }
  0xeb   :  { %vm3421_vm0 = vmpackc.low %vm340_vm14, %vm339_vm15 }
  0xec   :  { %3590 = vmatprep.mubr.msk.bf16.mxu0 %vm3421_vm0, %v4148_v16  ;;  %vm1253_vm0 = vcmp.lt.s32.totalorder %v4512_v17, 4 }
  0xed   :  { %v262_v4 = vpop.permute.xlu1 %261  ;;  %v259_v5 = vpop.permute.xlu0 %258 }
  0xee   :  { %vm342_vm1 = vcmp.eq.s32.totalorder %v262_v4, %v4413_v13  ;;  %vm341_vm2 = vcmp.eq.s32.totalorder %v259_v5, %v4413_v13  ;;  %v4120_v4 = vld [vmem:[%s7879_s2 + $0x18] sm:$0xff]  }
  0xef   :  { %vm3423_vm3 = vmpackc.low %vm342_vm1, %vm341_vm2  ;;  %vm2086_vm1 = vcmask 261120   ;;  %vm995_vm2 = vcmp.lt.s32.totalorder %v4512_v17, 6 }
  0xf1   :  { %v268_v6 = vpop.permute.xlu1 %267  ;;  %v265_v7 = vpop.permute.xlu0 %264 }
  0xf2   :  { %vm344_vm4 = vcmp.eq.s32.totalorder %v268_v6, %v4413_v13  ;;  %3591 = vmatmul.mubr.msk.bf16.gmra.mrb[52].mxu0 %vm3423_vm3, %v4148_v16  ;;  %vm343_vm5 = vcmp.eq.s32.totalorder %v265_v7, %v4413_v13  ;;  %vm866_vm3 = vcmp.lt.s32.totalorder %v4512_v17, 7 }
  0xf3   :  { %vm3425_vm6 = vmpackc.low %vm344_vm4, %vm343_vm5  ;;  %vm1124_vm4 = vcmp.lt.s32.totalorder %v4512_v17, 5  ;;  %vm2151_vm5 = vcmask 523264  }
  0xf4   :  { %3594 = vmatprep.mubr.msk.bf16.mxu0 %vm3425_vm6, %v4148_v16  ;;  %vm2216_vm6 = vcmask 785408  }
  0xf5   :  { %v274_v8 = vpop.permute.xlu1 %273  ;;  %v271_v9 = vpop.permute.xlu0 %270 }
  0xf6   :  { %vm346_vm7 = vcmp.eq.s32.totalorder %v274_v8, %v4413_v13  ;;  %vm345_vm8 = vcmp.eq.s32.totalorder %v271_v9, %v4413_v13 }
  0xf7   :  { %vm3427_vm9 = vmpackc.low %vm346_vm7, %vm345_vm8  ;;  %vm3243_vm7 = vcmask 1041409   ;;  %vm3246_vm8 = vcmask 1042434  }
  0xf9   :  { %v280_v11 = vpop.permute.xlu1 %279  ;;  %v277_v12 = vpop.permute.xlu0 %276 }
  0xfa   :  { %vm348_vm10 = vcmp.eq.s32.totalorder %v280_v11, %v4413_v13  ;;  %3595 = vmatmul.mubr.msk.bf16.gmra.mrb[56].mxu0 %vm3427_vm9, %v4148_v16  ;;  %vm347_vm11 = vcmp.eq.s32.totalorder %v277_v12, %v4413_v13  ;;  %vm3249_vm9 = vcmask 1043459  }
  0xfb   :  { %vm3429_vm12 = vmpackc.low %vm348_vm10, %vm347_vm11  ;;  %vm3252_vm10 = vcmask 1044484   ;;  %vm3255_vm11 = vcmask 1045509  }
  0xfc   :  { %3598 = vmatprep.mubr.msk.bf16.mxu0 %vm3429_vm12, %v4148_v16  ;;  %vm3258_vm12 = vcmask 1046534  }
  0xfd   :  { %v286_v14 = vpop.permute.xlu1 %285  ;;  %v283_v15 = vpop.permute.xlu0 %282 }
  0xfe   :  { %vm350_vm13 = vcmp.eq.s32.totalorder %v286_v14, %v4413_v13  ;;  %vm349_vm14 = vcmp.eq.s32.totalorder %v283_v15, %v4413_v13  ;;  %v4117_v13 = vld [vmem:[%s7879_s2] sm:$0xff]  }
  0xff   :  { %vm3431_vm15 = vmpackc.low %vm350_vm13, %vm349_vm14  ;;  %3612 = vmatpush1.bf16.msra.mxu1 %v4117_v13  ;;  %2529 = vmatpush1.bf16.msra.mxu0 %v4117_v13  ;;  %vm3261_vm13 = vcmask 1047559   ;;  %vm3352_vm14 = vcmask 7168  }
 0x100   :  { %3603 = vmatprep.subr.bf16.mxu1 %v7892_v0  ;;  %2530 = vmatprep.subr.bf16.mxu0 %v7892_v0 }
 0x102   :  { %3599 = vmatmul.mubr.msk.bf16.gmra.mrb[60].mxu0 %vm3431_vm15, %v4148_v16 }
 0x103   :  { %3613 = vmatpush1.bf16.msra.mxu1 %v4118_v32  ;;  %2531 = vmatpush1.bf16.msra.mxu0 %v4118_v32 }
 0x104   :  { %3604 = vmatprep.subr.bf16.mxu1 %v7892_v0  ;;  %2532 = vmatprep.subr.bf16.mxu0 %v7892_v0 }
 0x107   :  { %3614 = vmatpush1.bf16.msra.mxu1 %v4119_v49  ;;  %2533 = vmatpush1.bf16.msra.mxu0 %v4119_v49 }
 0x108   :  { %3605 = vmatprep.subr.bf16.mxu1 %v7892_v0  ;;  %2534 = vmatprep.subr.bf16.mxu0 %v7892_v0 }
 0x10b   :  { %3615 = vmatpush1.bf16.msra.mxu1 %v4120_v4  ;;  %2535 = vmatpush1.bf16.msra.mxu0 %v4120_v4 }
 0x10c   :  { %3606 = vmatprep.subr.bf16.mxu1 %v7892_v0  ;;  %2536 = vmatprep.subr.bf16.mxu0 %v7892_v0 }
 0x15d   :  { %v4518_v18 = vpop.f32.mrb[0].mxu0 }
 0x15e   :  { %8128 = vst [vmem:[#allocation3_spill] sm:$0xff] %v4518_v18  ;;  %v802_v16 = vrot.slane %v4518_v18, 1  ;;  %v933_v10 = vrot.slane %v4518_v18, 2  ;;  %v1062_v19 = vrot.slane %v4518_v18, 3  ;;  %v1191_v20 = vrot.slane %v4518_v18, 4  ;;  %v4527_v21 = vpop.f32.mrb[1].mxu0 }
 0x15f   :  { %8129 = vst [vmem:[#allocation4_spill] sm:$0xff] %v4527_v21  ;;  %v7888_v22 = vrot.slane %v4527_v21, 1  ;;  %v7887_v23 = vrot.slane %v4527_v21, 2  ;;  %v7886_v24 = vrot.slane %v4527_v21, 3  ;;  %v7885_v25 = vrot.slane %v4527_v21, 4  ;;  %v4533_v26 = vpop.f32.mrb[2].mxu0 }
 0x160   :  { %8130 = vst [vmem:[#allocation5_spill] sm:$0xff] %v4533_v26  ;;  %v803_v27 = vrot.slane %v4533_v26, 1  ;;  %v934_v28 = vrot.slane %v4533_v26, 2  ;;  %v1063_v29 = vrot.slane %v4533_v26, 3  ;;  %v7889_v30 = vrot.slane %v4533_v26, 4  ;;  %v4539_v31 = vpop.f32.mrb[3].mxu0 }
 0x161   :  { %8131 = vst [vmem:[#allocation6_spill] sm:$0xff] %v4539_v31  ;;  %v801_v33 = vrot.slane %v4539_v31, 1  ;;  %v932_v34 = vrot.slane %v4539_v31, 2  ;;  %v1061_v35 = vrot.slane %v4539_v31, 3  ;;  %v1190_v36 = vrot.slane %v4539_v31, 4 }
 0x162   :  { %v4552_v37 = vsel %vm866_vm3, %v802_v16, %v803_v27  ;;  %v4556_v38 = vsel %vm995_vm2, %v933_v10, %v934_v28  ;;  %v4560_v39 = vsel %vm1124_vm4, %v1062_v19, %v1063_v29  ;;  %v4566_v40 = vsel %vm1253_vm0, %v1191_v20, %v7889_v30 }
 0x163   :  { %8132 = vst [vmem:[#allocation7_spill] sm:$0xff] %v4560_v39  ;;  %8133 = vst [vmem:[#allocation8_spill] sm:$0xff] %v4566_v40  ;;  %v1315_v41 = vsel %vm1253_vm0, %v1190_v36, %v1191_v20  ;;  %v1316_v42 = vsel %vm1253_vm0, %v7885_v25, %v1190_v36  ;;  %v4576_v43 = vsel %vm866_vm3, %v801_v33, %v802_v16 }
 0x164   :  { %v4582_v44 = vsel %vm866_vm3, %v7888_v22, %v801_v33  ;;  %v2282_v45 = vpack.c.bf16 %v1315_v41, %v1316_v42  ;;  %v4588_v47 = vsel %vm995_vm2, %v932_v34, %v933_v10  ;;  %v4594_v48 = vsel %vm995_vm2, %v7887_v23, %v932_v34  ;;  %v4122_v33 = vld [vmem:[%s7879_s2 + $0x28] sm:$0xff]  }
 0x165   :  { %v4600_v50 = vpop.f32.mrb[4].mxu0  ;;  %v4606_v52 = vsel %vm1124_vm4, %v1061_v35, %v1062_v19  ;;  %v4617_v56 = vsel %vm1124_vm4, %v7886_v24, %v1061_v35  ;;  %v4121_v19 = vld [vmem:[%s7879_s2 + $0x20] sm:$0xff]  }
 0x166   :  { %8134 = vst [vmem:[#allocation9_spill] sm:$0xff] %v4600_v50  ;;  %v806_v53 = vrot.slane %v4600_v50, 1  ;;  %v937_v54 = vrot.slane %v4600_v50, 2  ;;  %v4610_v55 = vpop.f32.mrb[5].mxu0  ;;  %3444 = vmatprep.mubr.msk.bf16.mxu0 %vm2086_vm1, %v2282_v45  ;;  %v1066_v57 = vrot.slane %v4600_v50, 3  ;;  %3616 = vmatpush1.bf16.msra.mxu1 %v4121_v19 }
 0x167   :  { %8135 = vst [vmem:[#allocation10_spill] sm:$0xff] %v4610_v55  ;;  %v804_v58 = vrot.slane %v4610_v55, 1  ;;  %v935_v59 = vrot.slane %v4610_v55, 2  ;;  %v1064_v60 = vrot.slane %v4610_v55, 3  ;;  %v4624_v61 = vpop.f32.mrb[6].mxu0  ;;  %3607 = vmatprep.subr.bf16.mxu1 %v7892_v0  ;;  %2537 = vmatpush1.bf16.msra.mxu0 %v4121_v19 }
 0x168   :  { %8136 = vst [vmem:[#allocation11_spill] sm:$0xff] %v4624_v61  ;;  %v807_v1 = vrot.slane %v4624_v61, 1  ;;  %v938_v2 = vrot.slane %v4624_v61, 2  ;;  %v4630_v3 = vpop.f32.mrb[7].mxu0  ;;  %v1067_v5 = vrot.slane %v4624_v61, 3  ;;  %2538 = vmatprep.subr.bf16.mxu0 %v7892_v0 }
 0x169   :  { %8137 = vst [vmem:[#allocation12_spill] sm:$0xff] %v4630_v3  ;;  %v805_v6 = vrot.slane %v4630_v3, 1  ;;  %v936_v7 = vrot.slane %v4630_v3, 2  ;;  %v1065_v8 = vrot.slane %v4630_v3, 3  ;;  %v4644_v11 = vsel %vm866_vm3, %v803_v27, %v804_v58 }
 0x16a   :  { %v4648_v12 = vsel %vm995_vm2, %v934_v28, %v935_v59  ;;  %v4652_v14 = vsel %vm1124_vm4, %v1063_v29, %v1064_v60  ;;  %v4701_v36 = vsel %vm866_vm3, %v806_v53, %v807_v1  ;;  %v4744_v16 = vsel %vm995_vm2, %v937_v54, %v938_v2  ;;  %3617 = vmatpush1.bf16.msra.mxu1 %v4122_v33 }
 0x16b   :  { %8138 = vst [vmem:[#allocation13_spill] sm:$0xff] %v4652_v14  ;;  %v4663_v10 = vsel %vm866_vm3, %v805_v6, %v806_v53  ;;  %v4671_v20 = vsel %vm866_vm3, %v804_v58, %v805_v6  ;;  %v4677_v27 = vsel %vm995_vm2, %v936_v7, %v937_v54  ;;  %v4681_v28 = vsel %vm995_vm2, %v935_v59, %v936_v7  ;;  %v4123_v54 = vld [vmem:[%s7879_s2 + $0x30] sm:$0xff]  }
 0x16c   :  { %8139 = vst [vmem:[#allocation14_spill] sm:$0xff] %v4663_v10  ;;  %8140 = vst [vmem:[#allocation15_spill] sm:$0xff] %v4671_v20  ;;  %v4687_v29 = vsel %vm1124_vm4, %v1065_v8, %v1066_v57  ;;  %v4697_v35 = vsel %vm1124_vm4, %v1064_v60, %v1065_v8  ;;  %v4759_v13 = vsel %vm1124_vm4, %v1066_v57, %v1067_v5  ;;  %3608 = vmatprep.subr.bf16.mxu1 %v7892_v0 }
 0x16d   :  { %8141 = vst [vmem:[#allocation16_spill] sm:$0xff] %v4677_v27  ;;  %8142 = vst [vmem:[#allocation17_spill] sm:$0xff] %v4681_v28  ;;  %v4689_v32 = vpop.f32.mrb[8].mxu0  ;;  %2539 = vmatpush1.bf16.msra.mxu0 %v4122_v33 }
 0x16e   :  { %8143 = vst [vmem:[#allocation18_spill] sm:$0xff] %v4687_v29  ;;  %8144 = vst [vmem:[#allocation19_spill] sm:$0xff] %v4689_v32  ;;  %v810_v45 = vrot.slane %v4689_v32, 1  ;;  %v941_v49 = vrot.slane %v4689_v32, 2  ;;  %v4707_v58 = vpop.f32.mrb[9].mxu0  ;;  %v7890_v59 = vrot.slane %v4689_v32, 3  ;;  %2540 = vmatprep.subr.bf16.mxu0 %v7892_v0  ;;  %3618 = vmatpush1.bf16.msra.mxu1 %v4123_v54 }
 0x16f   :  { %8145 = vst [vmem:[#allocation20_spill] sm:$0xff] %v4697_v35  ;;  %8146 = vst [vmem:[#allocation21_spill] sm:$0xff] %v4701_v36  ;;  %v808_v60 = vrot.slane %v4707_v58, 1  ;;  %v939_v53 = vrot.slane %v4707_v58, 2  ;;  %v1068_v4 = vrot.slane %v4707_v58, 3  ;;  %v4714_v6 = vpop.f32.mrb[10].mxu0  ;;  %3609 = vmatprep.subr.bf16.mxu1 %v7892_v0 }
 0x170   :  { %8147 = vst [vmem:[#allocation22_spill] sm:$0xff] %v4707_v58  ;;  %8148 = vst [vmem:[#allocation23_spill] sm:$0xff] %v4714_v6  ;;  %v811_v34 = vrot.slane %v4714_v6, 1  ;;  %v942_v25 = vrot.slane %v4714_v6, 2  ;;  %v4720_v41 = vpop.f32.mrb[11].mxu0 }
 0x171   :  { %8149 = vst [vmem:[#allocation24_spill] sm:$0xff] %v4720_v41  ;;  %v809_v62 = vrot.slane %v4720_v41, 1  ;;  %v940_v7 = vrot.slane %v4720_v41, 2  ;;  %v1069_v8 = vrot.slane %v4720_v41, 3  ;;  %v4734_v23 = vsel %vm866_vm3, %v807_v1, %v808_v60  ;;  %8152 = vst [vmem:[#allocation27_spill] sm:$0xff] %v4744_v16  ;;  %2541 = vmatpush1.bf16.msra.mxu0 %v4123_v54 }
 0x172   :  { %8150 = vst [vmem:[#allocation25_spill] sm:$0xff] %v4734_v23  ;;  %v4738_v22 = vsel %vm995_vm2, %v938_v2, %v939_v53  ;;  %v4753_v24 = vsel %vm1124_vm4, %v1067_v5, %v1068_v4  ;;  %8154 = vst [vmem:[#allocation29_spill] sm:$0xff] %v4759_v13  ;;  %2542 = vmatprep.subr.bf16.mxu0 %v7892_v0  ;;  %v4841_v42 = vsel %vm866_vm3, %v810_v45, %v811_v34 }
 0x173   :  { %8151 = vst [vmem:[#allocation26_spill] sm:$0xff] %v4738_v22  ;;  %8153 = vst [vmem:[#allocation28_spill] sm:$0xff] %v4753_v24  ;;  %v4771_v1 = vsel %vm866_vm3, %v809_v62, %v810_v45  ;;  %v4775_v19 = vsel %vm866_vm3, %v808_v60, %v809_v62  ;;  %v4781_v57 = vsel %vm995_vm2, %v940_v7, %v941_v49  ;;  %v8170_v54 = vrot.slane %v4714_v6, 3 }
 0x174   :  { %8155 = vst [vmem:[#allocation30_spill] sm:$0xff] %v4771_v1  ;;  %8156 = vst [vmem:[#allocation31_spill] sm:$0xff] %v4775_v19  ;;  %v4789_v15 = vsel %vm995_vm2, %v939_v53, %v940_v7  ;;  %v4795_v62 = vsel %vm1124_vm4, %v1069_v8, %v7890_v59  ;;  %v4799_v60 = vsel %vm1124_vm4, %v1068_v4, %v1069_v8  ;;  %v4124_v7 = vld [vmem:[%s7879_s2 + $0x38] sm:$0xff]   ;;  %v4125_v59 = vld [vmem:[%s7879_s2 + $0x40] sm:$0xff]  }
 0x175   :  { %8157 = vst [vmem:[#allocation32_spill] sm:$0xff] %v4781_v57  ;;  %v4783_v5 = vpop.f32.mrb[12].mxu0  ;;  %8159 = vst [vmem:[#allocation34_spill] sm:$0xff] %v4789_v15  ;;  %3619 = vmatpush1.bf16.msra.mxu1 %v4124_v7  ;;  %2543 = vmatpush1.bf16.msra.mxu0 %v4124_v7  ;;  %v4126_v57 = vld [vmem:[%s7879_s2 + $0x48] sm:$0xff]   ;;  %s4149_s2 = smov 64  }
 0x176   :  { %8158 = vst [vmem:[#allocation33_spill] sm:$0xff] %v4783_v5  ;;  %8160 = vst [vmem:[#allocation35_spill] sm:$0xff] %v4795_v62  ;;  %v4805_v53 = vpop.f32.mrb[13].mxu0  ;;  %3610 = vmatprep.subr.bf16.mxu1 %v7892_v0  ;;  %v8178_v18 = vrot.slane %v4783_v5, 1  ;;  %v8710_v17 = vld [vmem:[#allocation16_spill] sm:$0xff] }
 0x177   :  { %8161 = vst [vmem:[#allocation36_spill] sm:$0xff] %v4799_v60  ;;  %8162 = vst [vmem:[#allocation37_spill] sm:$0xff] %v4805_v53  ;;  %v812_v46 = vrot.slane %v4805_v53, 1  ;;  %v7891_v30 = vrot.slane %v4805_v53, 2  ;;  %v4812_v8 = vpop.f32.mrb[14].mxu0  ;;  %v8169_v45 = vrot.slane %v4805_v53, 3 }
 0x178   :  { %8163 = vst [vmem:[#allocation38_spill] sm:$0xff] %v4812_v8  ;;  %v4818_v63 = vpop.f32.mrb[15].mxu0  ;;  %8166 = vst [vmem:[#allocation41_spill] sm:$0xff] %v4841_v42 }
 0x179   :  { %8164 = vst [vmem:[#allocation39_spill] sm:$0xff] %v4818_v63  ;;  %v813_v9 = vrot.slane %v4818_v63, 1  ;;  %v4835_v4 = vsel %vm866_vm3, %v811_v34, %v812_v46  ;;  %v4851_v2 = vsel %vm995_vm2, %v942_v25, %v7891_v30  ;;  %v4859_v34 = vsel %vm995_vm2, %v941_v49, %v942_v25  ;;  %3620 = vmatpush1.bf16.msra.mxu1 %v4125_v59 }
 0x17a   :  { %8165 = vst [vmem:[#allocation40_spill] sm:$0xff] %v4835_v4  ;;  %8167 = vst [vmem:[#allocation42_spill] sm:$0xff] %v4851_v2  ;;  %v4867_v33 = vsel %vm1124_vm4, %v8170_v54, %v8169_v45  ;;  %v8172_v25 = vmov %v8170_v54  ;;  %v8173_v49 = vrot.slane %v4689_v32, 3  ;;  %v8175_v54 = vrot.slane %v4610_v55, 4 }
 0x17b   :  { %8168 = vst [vmem:[#allocation43_spill] sm:$0xff] %v4859_v34  ;;  %8171 = vst [vmem:[#allocation44_spill] sm:$0xff] %v4867_v33  ;;  %v8176_v45 = vrot.slane %v4533_v26, 4  ;;  %v4895_v30 = vsel %vm866_vm3, %v813_v9, %v8178_v18  ;;  %v4905_v26 = vsel %vm866_vm3, %v812_v46, %v813_v9  ;;  %v8186_v46 = vmov 0  }
 0x17c   :  { %v4881_v51 = vsel %vm1124_vm4, %v8173_v49, %v8172_v25  ;;  %8179 = vst [vmem:[#allocation47_spill] sm:$0xff] %v4895_v30  ;;  %8181 = vst [vmem:[#allocation49_spill] sm:$0xff] %v4905_v26  ;;  %2544 = vmatprep.subr.bf16.mxu0 %v8186_v46  ;;  %3611 = vmatprep.subr.bf16.mxu1 %v8186_v46 }
 0x17d   :  { %8174 = vst [vmem:[#allocation45_spill] sm:$0xff] %v4881_v51  ;;  %v4889_v0 = vsel %vm1253_vm0, %v8176_v45, %v8175_v54  ;;  %v4897_v34 = vpop.f32.mrb[16].mxu0  ;;  %v8182_v54 = vrot.slane %v4783_v5, 2  ;;  %v8183_v45 = vrot.slane %v4818_v63, 2  ;;  %2545 = vmatpush1.bf16.msra.mxu0 %v4125_v59  ;;  %3621 = vmatpush1.bf16.msra.mxu1 %v4126_v57 }
 0x17e   :  { %8177 = vst [vmem:[#allocation46_spill] sm:$0xff] %v4889_v0  ;;  %8180 = vst [vmem:[#allocation48_spill] sm:$0xff] %v4897_v34  ;;  %v818_v25 = vrot.slane %v4897_v34, 1  ;;  %v949_v49 = vrot.slane %v4897_v34, 2  ;;  %v4919_v40 = vpop.f32.mrb[17].mxu0  ;;  %v1078_v9 = vrot.slane %v4897_v34, 3  ;;  %2546 = vmatprep.subr.bf16.mxu0 %v8186_v46 }
 0x17f   :  { %v4913_v18 = vsel %vm995_vm2, %v8183_v45, %v8182_v54  ;;  %8185 = vst [vmem:[#allocation51_spill] sm:$0xff] %v4919_v40  ;;  %v4925_v54 = vpop.f32.mrb[18].mxu0  ;;  %v8189_v59 = vrot.slane %v4897_v34, 4  ;;  %v8190_v19 = vrot.slane %v4919_v40, 4  ;;  %v8191_v24 = vrot.slane %v4919_v40, 2 }
 0x180   :  { %8184 = vst [vmem:[#allocation50_spill] sm:$0xff] %v4913_v18  ;;  %8187 = vst [vmem:[#allocation52_spill] sm:$0xff] %v4925_v54  ;;  %v819_v2 = vrot.slane %v4925_v54, 1  ;;  %v950_v7 = vrot.slane %v4925_v54, 2  ;;  %v1079_v33 = vrot.slane %v4925_v54, 3  ;;  %v4931_v31 = vpop.f32.mrb[19].mxu0 }
 0x181   :  { %8188 = vst [vmem:[#allocation53_spill] sm:$0xff] %v4931_v31  ;;  %v817_v0 = vrot.slane %v4931_v31, 1  ;;  %v948_v51 = vrot.slane %v4931_v31, 2  ;;  %v1077_v4 = vrot.slane %v4931_v31, 3  ;;  %v1206_v45 = vrot.slane %v4931_v31, 4  ;;  %2547 = vmatpush1.bf16.msra.mxu0 %v4126_v57 }
 0x182   :  { %v911_v62 = vsel %vm866_vm3, %v818_v25, %v819_v2  ;;  %v4944_v15 = vsel %vm995_vm2, %v949_v49, %v950_v7  ;;  %v4948_v42 = vsel %vm1124_vm4, %v1078_v9, %v1079_v33 }
 0x183   :  { %v1299_v60 = vsel %vm1253_vm0, %v1206_v45, %v8189_v59  ;;  %v1300_v1 = vsel %vm1253_vm0, %v8190_v19, %v1206_v45  ;;  %v1041_v13 = vsel %vm995_vm2, %v948_v51, %v949_v49  ;;  %v1042_v16 = vsel %vm995_vm2, %v8191_v24, %v948_v51 }
 0x184   :  { %v2298_v22 = vpack.c.bf16 %v1299_v60, %v1300_v1  ;;  %v3634_v46 = vpack.i.bf16 %v1041_v13, %v1042_v16  ;;  %v912_v36 = vsel %vm866_vm3, %v817_v0, %v818_v25  ;;  %v8192_v59 = vrot.slane %v4919_v40, 1 }
 0x185   :  { %v4975_v45 = vpop.f32.mrb[20].mxu0  ;;  %v1170_v35 = vsel %vm1124_vm4, %v1077_v4, %v1078_v9  ;;  %v8194_v24 = vrot.slane %v4919_v40, 3 }
 0x186   :  { %v913_v23 = vsel %vm866_vm3, %v8192_v59, %v817_v0  ;;  %8193 = vst [vmem:[#allocation54_spill] sm:$0xff] %v4975_v45  ;;  %v822_v13 = vrot.slane %v4975_v45, 1  ;;  %3452 = vmatprep.mubr.msk.bf16.mxu1 %vm2086_vm1, %v2298_v22  ;;  %3635 = vrot.lane.b32.xlu1 %v3634_v46, %s4149_s2  ;;  %v8198_v6 = vrot.slane %v4975_v45, 2  ;;  %v8204_v41 = vrot.slane %v4975_v45, 3 }
 0x187   :  { %v3629_v49 = vpack.i.bf16 %v912_v36, %v913_v23  ;;  %v1171_v51 = vsel %vm1124_vm4, %v8194_v24, %v1077_v4  ;;  %v4989_v23 = vpop.f32.mrb[21].mxu0 }
 0x188   :  { %8195 = vst [vmem:[#allocation55_spill] sm:$0xff] %v4989_v23  ;;  %v820_v36 = vrot.slane %v4989_v23, 1  ;;  %v951_v57 = vrot.slane %v4989_v23, 2  ;;  %v1080_v60 = vrot.slane %v4989_v23, 3  ;;  %v4996_v25 = vpop.f32.mrb[22].mxu0  ;;  %v3639_v0 = vpack.i.bf16 %v1170_v35, %v1171_v51 }
 0x189   :  { %3630 = vrot.lane.b32.xlu0 %v3629_v49, %s4150_s22  ;;  %8196 = vst [vmem:[#allocation56_spill] sm:$0xff] %v4996_v25  ;;  %v823_v22 = vrot.slane %v4996_v25, 1  ;;  %v954_v9 = vrot.slane %v4996_v25, 2  ;;  %v1083_v46 = vrot.slane %v4996_v25, 3  ;;  %v5002_v24 = vpop.f32.mrb[23].mxu0 }
 0x18a   :  { %8197 = vst [vmem:[#allocation57_spill] sm:$0xff] %v5002_v24  ;;  %v821_v49 = vrot.slane %v5002_v24, 1  ;;  %v952_v1 = vrot.slane %v5002_v24, 2  ;;  %v1081_v19 = vrot.slane %v5002_v24, 3  ;;  %v910_v16 = vsel %vm866_vm3, %v819_v2, %v820_v36 }
 0x18b   :  { %v1039_v29 = vsel %vm995_vm2, %v950_v7, %v951_v57  ;;  %v1168_v59 = vsel %vm1124_vm4, %v1079_v33, %v1080_v60  ;;  %v3644_v28 = vpack.i.bf16 %v910_v16, %v911_v62  ;;  %v8200_v33 = vrot.slane %v4975_v45, 3 }
 0x18c   :  { %v3649_v27 = vpack.i.bf16 %v1039_v29, %v4944_v15  ;;  %v3659_v31 = vpack.i.bf16 %v1168_v59, %v4948_v42  ;;  %v1037_v4 = vsel %vm995_vm2, %v952_v1, %v8198_v6  ;;  %v1038_v35 = vsel %vm995_vm2, %v951_v57, %v952_v1 }
 0x18d   :  { %3640 = vrot.lane.b32.xlu0 %v3639_v0, %s4151_s23  ;;  %v908_v2 = vsel %vm866_vm3, %v821_v49, %v822_v13  ;;  %v909_v62 = vsel %vm866_vm3, %v820_v36, %v821_v49  ;;  %v5029_v15 = vsel %vm866_vm3, %v822_v13, %v823_v22  ;;  %3645 = vrot.lane.b32.xlu1 %v3644_v28, %s4150_s22  ;;  %v5032_v29 = vpop.f32.mrb[24].mxu0 }
 0x18e   :  { %8199 = vst [vmem:[#allocation58_spill] sm:$0xff] %v5032_v29  ;;  %v3669_v42 = vpack.i.bf16 %v1037_v4, %v1038_v35  ;;  %v3664_v6 = vpack.i.bf16 %v908_v2, %v909_v62  ;;  %v5038_v7 = vsel %vm1124_vm4, %v1081_v19, %v8200_v33  ;;  %v5042_v51 = vsel %vm1124_vm4, %v1080_v60, %v1081_v19  ;;  %v5048_v1 = vpop.f32.mrb[25].mxu0 }
 0x18f   :  { %v826_v16 = vrot.slane %v5032_v29, 1  ;;  %8201 = vst [vmem:[#allocation59_spill] sm:$0xff] %v5048_v1  ;;  %v824_v36 = vrot.slane %v5048_v1, 1  ;;  %v955_v57 = vrot.slane %v5048_v1, 2  ;;  %v1084_v4 = vrot.slane %v5048_v1, 3  ;;  %v5054_v19 = vpop.f32.mrb[26].mxu0 }
 0x190   :  { %8202 = vst [vmem:[#allocation60_spill] sm:$0xff] %v5054_v19  ;;  %v827_v60 = vrot.slane %v5054_v19, 1  ;;  %v958_v49 = vrot.slane %v5054_v19, 2  ;;  %v1087_v35 = vrot.slane %v5054_v19, 3  ;;  %v5061_v62 = vpop.f32.mrb[27].mxu0  ;;  %v3674_v13 = vpack.i.bf16 %v5038_v7, %v5042_v51 }
 0x191   :  { %3650 = vrot.lane.b32.xlu0 %v3649_v27, %s4149_s2  ;;  %8203 = vst [vmem:[#allocation61_spill] sm:$0xff] %v5061_v62  ;;  %3660 = vrot.lane.b32.xlu1 %v3659_v31, %s4151_s23  ;;  %v825_v33 = vrot.slane %v5061_v62, 1  ;;  %v956_v0 = vrot.slane %v5061_v62, 2  ;;  %v1085_v59 = vrot.slane %v5061_v62, 3  ;;  %v906_v28 = vsel %vm866_vm3, %v823_v22, %v824_v36 }
 0x192   :  { %v1164_v2 = vsel %vm1124_vm4, %v1083_v46, %v1084_v4  ;;  %v1165_v31 = vsel %vm1124_vm4, %v8204_v41, %v1083_v46  ;;  %v3679_v32 = vpack.i.bf16 %v906_v28, %v5029_v15  ;;  %v5081_v27 = vsel %vm995_vm2, %v954_v9, %v955_v57 }
 0x193   :  { %v3694_v61 = vpack.i.bf16 %v1164_v2, %v1165_v31  ;;  %v8205_v22 = vrot.slane %v4975_v45, 2  ;;  %v8206_v51 = vpack.i.bf16 %v4576_v43, %v4582_v44  ;;  %v8207_v41 = vrot.slane %v5032_v29, 2 }
 0x194   :  { %v5100_v15 = vsel %vm995_vm2, %v955_v57, %v956_v0  ;;  %v5113_v28 = vsel %vm866_vm3, %v825_v33, %v826_v16  ;;  %v5117_v2 = vsel %vm866_vm3, %v824_v36, %v825_v33 }
 0x195   :  { %v1036_v7 = vsel %vm995_vm2, %v8205_v22, %v954_v9  ;;  %3655 = vrot.lane.b32.xlu0 %v8206_v51, %s4150_s22  ;;  %v5096_v46 = vsel %vm995_vm2, %v956_v0, %v8207_v41  ;;  %v5104_v9 = vsel %vm866_vm3, %v826_v16, %v827_v60  ;;  %3670 = vrot.lane.b32.xlu1 %v3669_v42, %s4149_s2  ;;  %v5107_v43 = vpop.f32.mrb[28].mxu0  ;;  %v8209_v0 = vrot.slane %v5032_v29, 3 }
 0x196   :  { %v3684_v58 = vpack.i.bf16 %v5081_v27, %v1036_v7  ;;  %8208 = vst [vmem:[#allocation62_spill] sm:$0xff] %v5107_v43  ;;  %v3704_v44 = vpack.i.bf16 %v5096_v46, %v5100_v15  ;;  %v5129_v16 = vpop.f32.mrb[29].mxu0  ;;  %v5170_v15 = vsel %vm1124_vm4, %v1084_v4, %v1085_v59  ;;  %v8215_v55 = vrot.slane %v5107_v43, 2 }
 0x197   :  { %v5123_v57 = vsel %vm1124_vm4, %v8209_v0, %v1087_v35  ;;  %8210 = vst [vmem:[#allocation63_spill] sm:$0xff] %v5129_v16  ;;  %v828_v7 = vrot.slane %v5129_v16, 1  ;;  %v959_v36 = vrot.slane %v5129_v16, 2  ;;  %v5135_v41 = vpop.f32.mrb[30].mxu0  ;;  %v8213_v22 = vrot.slane %v5129_v16, 3 }
 0x198   :  { %8211 = vst [vmem:[#allocation64_spill] sm:$0xff] %v5135_v41  ;;  %v831_v46 = vrot.slane %v5135_v41, 1  ;;  %v1091_v0 = vrot.slane %v5135_v41, 3  ;;  %v5142_v31 = vpop.f32.mrb[31].mxu0  ;;  %v8216_v4 = vrot.slane %v5032_v29, 2 }
 0x199   :  { %3665 = vrot.lane.b32.xlu0 %v3664_v6, %s4150_s22  ;;  %8212 = vst [vmem:[#allocation65_spill] sm:$0xff] %v5142_v31  ;;  %3680 = vrot.lane.b32.xlu1 %v3679_v32, %s4150_s22  ;;  %v829_v42 = vrot.slane %v5142_v31, 1  ;;  %v960_v51 = vrot.slane %v5142_v31, 2  ;;  %v1089_v27 = vrot.slane %v5142_v31, 3  ;;  %v902_v33 = vsel %vm866_vm3, %v827_v60, %v828_v7 }
 0x19a   :  { %v5157_v20 = vsel %vm1124_vm4, %v1087_v35, %v8213_v22  ;;  %v8214_v32 = vrot.slane %v5032_v29, 3  ;;  %v3714_v6 = vpack.i.bf16 %v902_v33, %v5104_v9  ;;  %v5187_v33 = vsel %vm995_vm2, %v958_v49, %v959_v36 }
 0x19b   :  { %v5176_v35 = vsel %vm995_vm2, %v960_v51, %v8215_v55  ;;  %v5183_v9 = vsel %vm995_vm2, %v959_v36, %v960_v51  ;;  %v8219_v22 = vrot.slane %v5107_v43, 3  ;;  %v8239_v26 = vpack.i.bf16 %v5157_v20, %v5123_v57 }
 0x19c   :  { %v5163_v10 = vsel %vm1124_vm4, %v1085_v59, %v8214_v32  ;;  %v5193_v59 = vsel %vm995_vm2, %v8216_v4, %v958_v49  ;;  %v8218_v32 = vrot.slane %v5107_v43, 1 }
 0x19d   :  { %3675 = vrot.lane.b32.xlu0 %v3674_v13, %s4151_s23  ;;  %3695 = vrot.lane.b32.xlu1 %v3694_v61, %s4151_s23  ;;  %v5196_v55 = vpop.f32.mrb[32].mxu0  ;;  %v5212_v49 = vsel %vm1124_vm4, %v8219_v22, %v1091_v0 }
 0x19e   :  { %8217 = vst [vmem:[#allocation66_spill] sm:$0xff] %v5196_v55  ;;  %v5206_v36 = vsel %vm866_vm3, %v8218_v32, %v831_v46  ;;  %v5218_v60 = vpop.f32.mrb[33].mxu0  ;;  %v8242_v57 = vrot.slane %v5196_v55, 3 }
 0x19f   :  { %8220 = vst [vmem:[#allocation67_spill] sm:$0xff] %v5218_v60  ;;  %v963_v32 = vrot.slane %v5218_v60, 2  ;;  %v5224_v22 = vpop.f32.mrb[34].mxu0  ;;  %v8223_v5 = vrot.slane %v5218_v60, 1  ;;  %v8224_v4 = vrot.slane %v5218_v60, 3 }
 0x1a0   :  { %8221 = vst [vmem:[#allocation68_spill] sm:$0xff] %v5224_v22  ;;  %v835_v61 = vrot.slane %v5224_v22, 1  ;;  %v1095_v51 = vrot.slane %v5224_v22, 3  ;;  %v5231_v40 = vpop.f32.mrb[35].mxu0 }
 0x1a1   :  { %3685 = vrot.lane.b32.xlu0 %v3684_v58, %s4149_s2  ;;  %8222 = vst [vmem:[#allocation69_spill] sm:$0xff] %v5231_v40  ;;  %3705 = vrot.lane.b32.xlu1 %v3704_v44, %s4149_s2  ;;  %v833_v50 = vrot.slane %v5231_v40, 1  ;;  %v964_v8 = vrot.slane %v5231_v40, 2  ;;  %v1093_v3 = vrot.slane %v5231_v40, 3  ;;  %v5242_v13 = vsel %vm866_vm3, %v831_v46, %v8223_v5 }
 0x1a2   :  { %v5248_v18 = vsel %vm1124_vm4, %v1091_v0, %v8224_v4  ;;  %v8225_v44 = vrot.slane %v5107_v43, 1  ;;  %v5258_v58 = vsel %vm866_vm3, %v828_v7, %v829_v42  ;;  %v8226_v4 = vrot.slane %v5196_v55, 2 }
 0x1a3   :  { %v5278_v7 = vsel %vm995_vm2, %v963_v32, %v964_v8  ;;  %v8229_v46 = vrot.slane %v5129_v16, 3  ;;  %v8230_v5 = vrot.slane %v5196_v55, 1  ;;  %v8256_v19 = vpack.i.bf16 %v5242_v13, %v5206_v36 }
 0x1a4   :  { %v5254_v53 = vsel %vm866_vm3, %v829_v42, %v8225_v44  ;;  %v5270_v40 = vsel %vm995_vm2, %v964_v8, %v8226_v4  ;;  %v8227_v42 = vpack.i.bf16 %v4588_v47, %v4594_v48  ;;  %v8228_v44 = vrot.slane %v5107_v43, 3 }
 0x1a5   :  { %v5290_v4 = vsel %vm1124_vm4, %v8229_v46, %v1089_v27  ;;  %v5296_v47 = vsel %vm866_vm3, %v8230_v5, %v835_v61  ;;  %3715 = vrot.lane.b32.xlu1 %v3714_v6, %s4150_s22  ;;  %v5299_v48 = vpop.f32.mrb[36].mxu0  ;;  %v8234_v5 = vrot.slane %v5107_v43, 2  ;;  %v8259_v36 = vrot.slane %v5224_v22, 2 }
 0x1a6   :  { %3690 = vrot.lane.b32.xlu0 %v8227_v42, %s4149_s2  ;;  %v5284_v0 = vsel %vm1124_vm4, %v1089_v27, %v8228_v44  ;;  %8231 = vst [vmem:[#allocation70_spill] sm:$0xff] %v5299_v48  ;;  %v8232_v44 = vrot.slane %v5135_v41, 2  ;;  %v5323_v30 = vpop.f32.mrb[37].mxu0  ;;  %v8247_v14 = vrot.slane %v5299_v48, 1  ;;  %v8261_v16 = vrot.slane %v5196_v55, 2 }
 0x1a7   :  { %8235 = vst [vmem:[#allocation71_spill] sm:$0xff] %v5323_v30  ;;  %v8240_v21 = vrot.slane %v5323_v30, 1  ;;  %v8241_v20 = vrot.slane %v5323_v30, 3  ;;  %v8276_v25 = vpack.i.bf16 %v5270_v40, %v5278_v7 }
 0x1a8   :  { %v5309_v27 = vsel %vm995_vm2, %v8232_v44, %v963_v32  ;;  %v8233_v46 = vmov %v8232_v44  ;;  %v967_v44 = vrot.slane %v5323_v30, 2 }
 0x1a9   :  { %v5317_v6 = vsel %vm995_vm2, %v8234_v5, %v8233_v46  ;;  %v5329_v46 = vpop.f32.mrb[38].mxu0  ;;  %v8237_v5 = vpack.i.bf16 %v5113_v28, %v5117_v2  ;;  %3730 = vrot.lane.b32.xlu1 %v8239_v26, %s4151_s23  ;;  %v5353_v8 = vsel %vm866_vm3, %v835_v61, %v8240_v21  ;;  %v5361_v26 = vsel %vm1124_vm4, %v1095_v51, %v8241_v20 }
 0x1aa   :  { %8236 = vst [vmem:[#allocation72_spill] sm:$0xff] %v5329_v46  ;;  %v839_v42 = vrot.slane %v5329_v46, 1  ;;  %v1099_v63 = vrot.slane %v5329_v46, 3  ;;  %v5339_v32 = vpop.f32.mrb[39].mxu0  ;;  %v8243_v61 = vrot.slane %v5299_v48, 2  ;;  %v8245_v21 = vrot.slane %v5196_v55, 1 }
 0x1ab   :  { %3700 = vrot.lane.b32.xlu0 %v8237_v5, %s4150_s22  ;;  %8238 = vst [vmem:[#allocation73_spill] sm:$0xff] %v5339_v32  ;;  %v837_v41 = vrot.slane %v5339_v32, 1  ;;  %v968_v28 = vrot.slane %v5339_v32, 2  ;;  %v5367_v5 = vsel %vm1124_vm4, %v8242_v57, %v1095_v51  ;;  %v8244_v51 = vpack.i.bf16 %v5163_v10, %v5170_v15 }
 0x1ac   :  { %v5393_v2 = vsel %vm866_vm3, %v833_v50, %v8245_v21  ;;  %v5405_v10 = vsel %vm866_vm3, %v8247_v14, %v839_v42  ;;  %v8248_v15 = vpack.i.bf16 %v5176_v35, %v5183_v9  ;;  %v8251_v35 = vrot.slane %v5299_v48, 3 }
 0x1ad   :  { %v5377_v39 = vsel %vm995_vm2, %v968_v28, %v8243_v61  ;;  %v5381_v20 = vsel %vm995_vm2, %v967_v44, %v968_v28  ;;  %v8246_v61 = vrot.slane %v5218_v60, 1  ;;  %v8278_v7 = vrot.slane %v5339_v32, 3 }
 0x1ae   :  { %3740 = vrot.lane.b32.xlu1 %v8248_v15, %s4149_s2  ;;  %v5431_v9 = vsel %vm1124_vm4, %v8251_v35, %v1099_v63  ;;  %v8254_v15 = vpack.i.bf16 %v5187_v33, %v5193_v59 }
 0x1af   :  { %3710 = vrot.lane.b32.xlu0 %v8244_v51, %s4151_s23  ;;  %v5399_v28 = vsel %vm866_vm3, %v8246_v61, %v833_v50  ;;  %v5411_v51 = vpop.f32.mrb[40].mxu0  ;;  %v5419_v50 = vsel %vm1124_vm4, %v1093_v3, %v8242_v57  ;;  %v8250_v61 = vrot.slane %v5218_v60, 3 }
 0x1b0   :  { %8249 = vst [vmem:[#allocation74_spill] sm:$0xff] %v5411_v51  ;;  %v5437_v43 = vpop.f32.mrb[41].mxu0 }
 0x1b1   :  { %v5425_v14 = vsel %vm1124_vm4, %v8250_v61, %v1093_v3  ;;  %8252 = vst [vmem:[#allocation75_spill] sm:$0xff] %v5437_v43  ;;  %v5443_v35 = vpop.f32.mrb[42].mxu0  ;;  %v8257_v57 = vrot.slane %v5437_v43, 1  ;;  %v8258_v13 = vrot.slane %v5437_v43, 3  ;;  %v8264_v59 = vrot.slane %v5437_v43, 2 }
 0x1b2   :  { %8253 = vst [vmem:[#allocation76_spill] sm:$0xff] %v5443_v35  ;;  %v843_v31 = vrot.slane %v5443_v35, 1  ;;  %v1103_v21 = vrot.slane %v5443_v35, 3  ;;  %v5453_v3 = vpop.f32.mrb[43].mxu0  ;;  %3750 = vrot.lane.b32.xlu1 %v8256_v19, %s4150_s22  ;;  %v8266_v61 = vrot.slane %v5299_v48, 1 }
 0x1b3   :  { %3720 = vrot.lane.b32.xlu0 %v8254_v15, %s4149_s2  ;;  %8255 = vst [vmem:[#allocation77_spill] sm:$0xff] %v5453_v3  ;;  %v972_v33 = vrot.slane %v5453_v3, 2  ;;  %v5467_v60 = vsel %vm866_vm3, %v839_v42, %v8257_v57  ;;  %v5475_v19 = vsel %vm1124_vm4, %v1099_v63, %v8258_v13  ;;  %v5481_v15 = vsel %vm995_vm2, %v8259_v36, %v967_v44 }
 0x1b4   :  { %v8260_v57 = vmov %v8259_v36  ;;  %v8262_v13 = vrot.slane %v5411_v51, 2  ;;  %v8263_v36 = vpack.i.bf16 %v4606_v52, %v4617_v56  ;;  %v5523_v52 = vsel %vm866_vm3, %v837_v41, %v8266_v61 }
 0x1b5   :  { %v5493_v63 = vsel %vm995_vm2, %v8261_v16, %v8260_v57  ;;  %v5511_v16 = vsel %vm995_vm2, %v8264_v59, %v972_v33  ;;  %v8265_v57 = vrot.slane %v5411_v51, 1  ;;  %v8267_v56 = vpack.i.bf16 %v5248_v18, %v5212_v49 }
 0x1b6   :  { %v5499_v44 = vsel %vm995_vm2, %v972_v33, %v8262_v13  ;;  %v8269_v59 = vrot.slane %v5323_v30, 1  ;;  %v8270_v42 = vrot.slane %v5411_v51, 3  ;;  %v8271_v18 = vrot.slane %v5299_v48, 3 }
 0x1b7   :  { %3725 = vrot.lane.b32.xlu0 %v8263_v36, %s4151_s23  ;;  %v5517_v13 = vsel %vm866_vm3, %v8265_v57, %v843_v31  ;;  %3765 = vrot.lane.b32.xlu1 %v8267_v56, %s4151_s23  ;;  %v5529_v36 = vpop.f32.mrb[44].mxu0  ;;  %v8272_v49 = vrot.slane %v5339_v32, 3  ;;  %v8289_v32 = vrot.slane %v5299_v48, 2 }
 0x1b8   :  { %8268 = vst [vmem:[#allocation78_spill] sm:$0xff] %v5529_v36  ;;  %v5537_v57 = vsel %vm866_vm3, %v8269_v59, %v837_v41  ;;  %v5543_v61 = vsel %vm1124_vm4, %v8270_v42, %v1103_v21  ;;  %v5557_v55 = vpop.f32.mrb[45].mxu0  ;;  %v8285_v59 = vrot.slane %v5437_v43, 2 }
 0x1b9   :  { %v5551_v56 = vsel %vm1124_vm4, %v8272_v49, %v8271_v18  ;;  %8273 = vst [vmem:[#allocation79_spill] sm:$0xff] %v5557_v55  ;;  %v7981_v42 = vrot.slane %v5557_v55, 1  ;;  %v5563_v18 = vpop.f32.mrb[46].mxu0  ;;  %v8275_v49 = vpack.i.bf16 %v5254_v53, %v5258_v58  ;;  %v8277_v40 = vrot.slane %v5557_v55, 3 }
 0x1ba   :  { %8274 = vst [vmem:[#allocation80_spill] sm:$0xff] %v5563_v18  ;;  %v847_v41 = vrot.slane %v5563_v18, 1  ;;  %v1107_v33 = vrot.slane %v5563_v18, 3  ;;  %v5573_v62 = vpop.f32.mrb[47].mxu0  ;;  %v8279_v58 = vrot.slane %v5323_v30, 3 }
 0x1bb   :  { %3735 = vrot.lane.b32.xlu0 %v8275_v49, %s4150_s22  ;;  %3775 = vrot.lane.b32.xlu1 %v8276_v25, %s4149_s2  ;;  %v976_v53 = vrot.slane %v5573_v62, 2  ;;  %v5587_v22 = vsel %vm866_vm3, %v843_v31, %v7981_v42  ;;  %v5595_v25 = vsel %vm1124_vm4, %v1103_v21, %v8277_v40  ;;  %v8280_v21 = vrot.slane %v5529_v36, 2 }
 0x1bc   :  { %v5603_v49 = vsel %vm1124_vm4, %v8279_v58, %v8278_v7  ;;  %v8282_v58 = vpack.i.bf16 %v5284_v0, %v5290_v4  ;;  %v8283_v7 = vrot.slane %v5557_v55, 2  ;;  %v8286_v42 = vrot.slane %v5329_v46, 2 }
 0x1bd   :  { %v5615_v40 = vsel %vm995_vm2, %v976_v53, %v8280_v21  ;;  %v8291_v4 = vrot.slane %v5529_v36, 1  ;;  %v8295_v46 = vrot.slane %v5453_v3, 1 }
 0x1be   :  { %8281 = vst [vmem:[#allocation81_spill] sm:$0xff] %v5615_v40  ;;  %v5625_v31 = vsel %vm995_vm2, %v8283_v7, %v976_v53  ;;  %v5633_v29 = vsel %vm995_vm2, %v8286_v42, %v8285_v59  ;;  %v8288_v21 = vmov %v8286_v42  ;;  %v5653_v59 = vpop.f32.mrb[48].mxu0  ;;  %v8293_v7 = vrot.slane %v5529_v36, 3 }
 0x1bf   :  { %3745 = vrot.lane.b32.xlu0 %v8282_v58, %s4151_s23  ;;  %8284 = vst [vmem:[#allocation82_spill] sm:$0xff] %v5625_v31  ;;  %8287 = vst [vmem:[#allocation83_spill] sm:$0xff] %v5633_v29  ;;  %v5641_v0 = vsel %vm995_vm2, %v8289_v32, %v8288_v21  ;;  %v5647_v53 = vsel %vm866_vm3, %v8291_v4, %v847_v41  ;;  %v8292_v58 = vpack.i.bf16 %v5353_v8, %v5296_v47  ;;  %v5677_v48 = vpop.f32.mrb[49].mxu0 }
 0x1c0   :  { %8290 = vst [vmem:[#allocation84_spill] sm:$0xff] %v5641_v0  ;;  %v5663_v21 = vsel %vm1124_vm4, %v8293_v7, %v1107_v33  ;;  %v8294_v4 = vrot.slane %v5411_v51, 1  ;;  %v848_v7 = vrot.slane %v5677_v48, 1  ;;  %v1108_v0 = vrot.slane %v5677_v48, 3 }
 0x1c1   :  { %3785 = vrot.lane.b32.xlu1 %v8292_v58, %s4150_s22  ;;  %v8298_v29 = vpack.i.bf16 %v5361_v26, %v5367_v5  ;;  %v8299_v40 = vrot.slane %v5453_v3, 1  ;;  %v8302_v26 = vrot.slane %v5411_v51, 3 }
 0x1c2   :  { %v5671_v47 = vsel %vm866_vm3, %v8295_v46, %v8294_v4  ;;  %v5683_v46 = vpop.f32.mrb[50].mxu0  ;;  %v8296_v4 = vpack.i.bf16 %v5309_v27, %v5317_v6  ;;  %v5705_v58 = vsel %vm866_vm3, %v847_v41, %v848_v7  ;;  %v5709_v8 = vsel %vm1124_vm4, %v1107_v33, %v1108_v0 }
 0x1c3   :  { %v851_v32 = vrot.slane %v5683_v46, 1  ;;  %v982_v42 = vrot.slane %v5683_v46, 2  ;;  %v5693_v30 = vpop.f32.mrb[51].mxu0  ;;  %v8307_v33 = vrot.slane %v5437_v43, 3 }
 0x1c4   :  { %3755 = vrot.lane.b32.xlu0 %v8296_v4, %s4149_s2  ;;  %8297 = vst [vmem:[#allocation85_spill] sm:$0xff] %v5693_v30  ;;  %v849_v31 = vrot.slane %v5693_v30, 1  ;;  %v980_v27 = vrot.slane %v5693_v30, 2  ;;  %v1109_v6 = vrot.slane %v5693_v30, 3  ;;  %v8303_v4 = vrot.slane %v5453_v3, 3 }
 0x1c5   :  { %3800 = vrot.lane.b32.xlu1 %v8298_v29, %s4151_s23  ;;  %v8300_v29 = vrot.slane %v5437_v43, 1  ;;  %v8306_v30 = vrot.slane %v5453_v3, 3 }
 0x1c6   :  { %v5725_v41 = vsel %vm1124_vm4, %v8303_v4, %v8302_v26  ;;  %v8305_v4 = vpack.i.bf16 %v4644_v11, %v4552_v37  ;;  %v5745_v26 = vsel %vm866_vm3, %v848_v7, %v849_v31  ;;  %v8309_v37 = vrot.slane %v5677_v48, 2  ;;  %v5771_v7 = vpop.f32.mrb[52].mxu0 }
 0x1c7   :  { %v5717_v5 = vsel %vm866_vm3, %v8300_v29, %v8299_v40  ;;  %v8304_v40 = vrot.slane %v5653_v59, 1  ;;  %v5753_v1 = vsel %vm1124_vm4, %v8307_v33, %v8306_v30  ;;  %8312 = vst [vmem:[#allocation88_spill] sm:$0xff] %v5771_v7  ;;  %v5791_v33 = vpop.f32.mrb[53].mxu0  ;;  %v8320_v30 = vrot.slane %v5443_v35, 2 }
 0x1c8   :  { %8301 = vst [vmem:[#allocation86_spill] sm:$0xff] %v5717_v5  ;;  %3760 = vrot.lane.b32.xlu0 %v8305_v4, %s4150_s22  ;;  %v5765_v11 = vsel %vm995_vm2, %v8309_v37, %v980_v27  ;;  %8315 = vst [vmem:[#allocation89_spill] sm:$0xff] %v5791_v33  ;;  %v8004_v4 = vrot.slane %v5791_v33, 1 }
 0x1c9   :  { %v5737_v29 = vsel %vm866_vm3, %v849_v31, %v8304_v40  ;;  %v8308_v40 = vrot.slane %v5653_v59, 2  ;;  %8310 = vst [vmem:[#allocation87_spill] sm:$0xff] %v5765_v11  ;;  %v8311_v31 = vpack.i.bf16 %v5377_v39, %v5381_v20  ;;  %v8319_v11 = vpack.i.bf16 %v5467_v60, %v5405_v10 }
 0x1ca   :  { %v8321_v20 = vrot.slane %v5411_v51, 2  ;;  %v5833_v10 = vsel %vm1124_vm4, %v1108_v0, %v1109_v6  ;;  %v8324_v0 = vrot.slane %v5529_v36, 1 }
 0x1cb   :  { %v5759_v5 = vsel %vm995_vm2, %v980_v27, %v8308_v40  ;;  %3810 = vrot.lane.b32.xlu1 %v8311_v31, %s4149_s2  ;;  %v8313_v40 = vrot.slane %v5557_v55, 2  ;;  %v8314_v27 = vrot.slane %v5443_v35, 2  ;;  %v8322_v31 = vrot.slane %v5653_v59, 3 }
 0x1cc   :  { %v5823_v39 = vsel %vm995_vm2, %v8321_v20, %v8320_v30  ;;  %v8327_v30 = vpack.i.bf16 %v5419_v50, %v5425_v14  ;;  %v8331_v35 = vrot.slane %v5791_v33, 2  ;;  %v8333_v50 = vrot.slane %v5653_v59, 2 }
 0x1cd   :  { %v5785_v37 = vsel %vm995_vm2, %v8314_v27, %v8313_v40  ;;  %v5797_v40 = vpop.f32.mrb[54].mxu0  ;;  %v8317_v27 = vpack.i.bf16 %v5393_v2, %v5399_v28  ;;  %v5829_v60 = vsel %vm1124_vm4, %v1109_v6, %v8322_v31  ;;  %v8325_v6 = vrot.slane %v5573_v62, 1 }
 0x1ce   :  { %8316 = vst [vmem:[#allocation90_spill] sm:$0xff] %v5797_v40  ;;  %v5807_v3 = vpop.f32.mrb[55].mxu0  ;;  %v5883_v14 = vsel %vm995_vm2, %v8333_v50, %v982_v42  ;;  %v8337_v20 = vrot.slane %v5573_v62, 3 }
 0x1cf   :  { %3770 = vrot.lane.b32.xlu0 %v8317_v27, %s4150_s22  ;;  %8318 = vst [vmem:[#allocation91_spill] sm:$0xff] %v5807_v3  ;;  %3820 = vrot.lane.b32.xlu1 %v8319_v11, %s4150_s22  ;;  %v853_v43 = vrot.slane %v5807_v3, 1  ;;  %v984_v2 = vrot.slane %v5807_v3, 2  ;;  %v5839_v11 = vsel %vm866_vm3, %v851_v32, %v8004_v4  ;;  %v8323_v27 = vrot.slane %v5653_v59, 1  ;;  %8334 = vst [vmem:[#allocation95_spill] sm:$0xff] %v5883_v14 }
 0x1d0   :  { %v5857_v28 = vsel %vm866_vm3, %v8325_v6, %v8324_v0  ;;  %v8328_v4 = vmov %v8325_v6  ;;  %v5877_v0 = vsel %vm995_vm2, %v982_v42, %v8331_v35  ;;  %v5889_v6 = vpop.f32.mrb[56].mxu0  ;;  %v8338_v50 = vmov %v8337_v20 }
 0x1d1   :  { %v5849_v31 = vsel %vm866_vm3, %v8323_v27, %v851_v32  ;;  %8326 = vst [vmem:[#allocation92_spill] sm:$0xff] %v5857_v28  ;;  %v8329_v32 = vrot.slane %v5557_v55, 1  ;;  %8332 = vst [vmem:[#allocation94_spill] sm:$0xff] %v5877_v0  ;;  %v5915_v0 = vpop.f32.mrb[57].mxu0  ;;  %v8341_v28 = vpack.i.bf16 %v5499_v44, %v5511_v16  ;;  %v8343_v14 = vrot.slane %v5683_v46, 3 }
 0x1d2   :  { %v8345_v16 = vrot.slane %v5653_v59, 3  ;;  %v8348_v35 = vrot.slane %v5563_v18, 2 }
 0x1d3   :  { %3780 = vrot.lane.b32.xlu0 %v8327_v30, %s4151_s23  ;;  %v5871_v27 = vsel %vm866_vm3, %v8329_v32, %v8328_v4  ;;  %v8335_v30 = vpack.i.bf16 %v5475_v19, %v5431_v9  ;;  %v8336_v32 = vrot.slane %v5529_v36, 3  ;;  %v8339_v9 = vrot.slane %v5557_v55, 3 }
 0x1d4   :  { %8330 = vst [vmem:[#allocation93_spill] sm:$0xff] %v5871_v27  ;;  %v8344_v44 = vmov %v8343_v14 }
 0x1d5   :  { %3835 = vrot.lane.b32.xlu1 %v8335_v30, %s4151_s23  ;;  %v5901_v42 = vsel %vm1124_vm4, %v8337_v20, %v8336_v32  ;;  %v5909_v19 = vsel %vm1124_vm4, %v8339_v9, %v8338_v50  ;;  %v5921_v50 = vpop.f32.mrb[58].mxu0  ;;  %v8340_v9 = vpack.i.bf16 %v5481_v15, %v5493_v63  ;;  %v8342_v30 = vrot.slane %v5791_v33, 3 }
 0x1d6   :  { %v5931_v32 = vpop.f32.mrb[59].mxu0  ;;  %v8350_v15 = vrot.slane %v5529_v36, 2  ;;  %v8355_v20 = vrot.slane %v4925_v54, 4  ;;  %v8370_v54 = vpack.i.bf16 %v5595_v25, %v5543_v61  ;;  %v8374_v61 = vrot.slane %v5002_v24, 4 }
 0x1d7   :  { %3790 = vrot.lane.b32.xlu0 %v8340_v9, %s4149_s2  ;;  %v5949_v4 = vsel %vm1124_vm4, %v8343_v14, %v8342_v30  ;;  %v8347_v9 = vrot.slane %v5677_v48, 2  ;;  %v8349_v30 = vmov %v8348_v35  ;;  %v8353_v14 = vpack.i.bf16 %v4648_v12, %v4556_v38 }
 0x1d8   :  { %v5975_v27 = vsel %vm995_vm2, %v8350_v15, %v8349_v30  ;;  %v8360_v12 = vpack.i.bf16 %v5587_v22, %v5517_v13  ;;  %v8363_v15 = vrot.slane %v5791_v33, 2  ;;  %v8364_v22 = vrot.slane %v5771_v7, 3 }
 0x1d9   :  { %3845 = vrot.lane.b32.xlu1 %v8341_v28, %s4149_s2  ;;  %v5957_v28 = vsel %vm1124_vm4, %v8345_v16, %v8344_v44  ;;  %v5965_v63 = vsel %vm995_vm2, %v8348_v35, %v8347_v9  ;;  %v8351_v44 = vrot.slane %v5771_v7, 1  ;;  %v8352_v35 = vrot.slane %v5791_v33, 1 }
 0x1da   :  { %8346 = vst [vmem:[#allocation96_spill] sm:$0xff] %v5957_v28  ;;  %v8365_v13 = vrot.slane %v5807_v3, 3  ;;  %v8377_v30 = vrot.slane %v4989_v23, 4  ;;  %v8402_v24 = vrot.slane %v5915_v0, 3 }
 0x1db   :  { %v5981_v16 = vsel %vm866_vm3, %v853_v43, %v8351_v44  ;;  %v5987_v9 = vsel %vm866_vm3, %v8352_v35, %v853_v43  ;;  %3795 = vrot.lane.b32.xlu0 %v8353_v14, %s4149_s2  ;;  %v8354_v44 = vrot.slane %v4989_v23, 4  ;;  %v8357_v43 = vmov %v8355_v20  ;;  %v6017_v14 = vpop.f32.mrb[60].mxu0 }
 0x1dc   :  { %v8358_v35 = vrot.slane %v4897_v34, 4  ;;  %8361 = vst [vmem:[#allocation99_spill] sm:$0xff] %v6017_v14  ;;  %v8380_v34 = vrot.slane %v5797_v40, 1 }
 0x1dd   :  { %v6003_v28 = vsel %vm1253_vm0, %v8355_v20, %v8354_v44  ;;  %3855 = vrot.lane.b32.xlu1 %v8360_v12, %s4150_s22  ;;  %v8362_v20 = vrot.slane %v5771_v7, 2  ;;  %v8371_v12 = vrot.slane %v5807_v3, 3 }
 0x1de   :  { %8356 = vst [vmem:[#allocation97_spill] sm:$0xff] %v6003_v28  ;;  %v6011_v38 = vsel %vm1253_vm0, %v8358_v35, %v8357_v43  ;;  %v6031_v43 = vsel %vm995_vm2, %v8363_v15, %v984_v2  ;;  %v6039_v35 = vsel %vm1124_vm4, %v8365_v13, %v8364_v22  ;;  %v6045_v28 = vpop.f32.mrb[61].mxu0  ;;  %v8368_v13 = vpack.i.bf16 %v5523_v52, %v5537_v57 }
 0x1df   :  { %8359 = vst [vmem:[#allocation98_spill] sm:$0xff] %v6011_v38  ;;  %v6025_v44 = vsel %vm995_vm2, %v984_v2, %v8362_v20  ;;  %8366 = vst [vmem:[#allocation100_spill] sm:$0xff] %v6045_v28  ;;  %v6051_v22 = vpop.f32.mrb[62].mxu0  ;;  %v8372_v38 = vrot.slane %v5791_v33, 3  ;;  %v8379_v52 = vrot.slane %v5915_v0, 1  ;;  %v8383_v2 = vrot.slane %v5771_v7, 1 }
 0x1e0   :  { %8367 = vst [vmem:[#allocation101_spill] sm:$0xff] %v6051_v22  ;;  %3805 = vrot.lane.b32.xlu0 %v8368_v13, %s4150_s22  ;;  %v6061_v15 = vpop.f32.mrb[63].mxu0  ;;  %v8376_v13 = vmov %v8374_v61 }
 0x1e1   :  { %8369 = vst [vmem:[#allocation102_spill] sm:$0xff] %v6061_v15  ;;  %3870 = vrot.lane.b32.xlu1 %v8370_v54, %s4151_s23  ;;  %v6079_v20 = vsel %vm1124_vm4, %v8372_v38, %v8371_v12  ;;  %v8373_v54 = vrot.slane %v4975_v45, 4  ;;  %v6095_v57 = vsel %vm1253_vm0, %v8377_v30, %v8376_v13  ;;  %v8385_v13 = vpack.i.bf16 %v5551_v56, %v5603_v49  ;;  %v8391_v56 = vld [vmem:[#allocation59_spill] sm:$0xff] }
 0x1e2   :  { %8378 = vst [vmem:[#allocation104_spill] sm:$0xff] %v6095_v57  ;;  %v8386_v38 = vrot.slane %v5915_v0, 2  ;;  %v8392_v49 = vrot.slane %v8391_v56, 4 }
 0x1e3   :  { %v6087_v25 = vsel %vm1253_vm0, %v8374_v61, %v8373_v54  ;;  %v6107_v54 = vsel %vm866_vm3, %v8380_v34, %v8379_v52  ;;  %v8382_v61 = vmov %v8380_v34  ;;  %v8387_v34 = vrot.slane %v5797_v40, 2 }
 0x1e4   :  { %8375 = vst [vmem:[#allocation103_spill] sm:$0xff] %v6087_v25  ;;  %8381 = vst [vmem:[#allocation105_spill] sm:$0xff] %v6107_v54  ;;  %v6115_v30 = vsel %vm866_vm3, %v8383_v2, %v8382_v61  ;;  %3815 = vrot.lane.b32.xlu0 %v8385_v13, %s4151_s23  ;;  %v8389_v2 = vrot.slane %v5771_v7, 2  ;;  %v8393_v13 = vld [vmem:[#allocation56_spill] sm:$0xff]  ;;  %v8396_v54 = vld [vmem:[#allocation81_spill] sm:$0xff]  ;;  %v8408_v25 = vrot.slane %v5889_v6, 1 }
 0x1e5   :  { %8384 = vst [vmem:[#allocation106_spill] sm:$0xff] %v6115_v30  ;;  %v6129_v52 = vsel %vm995_vm2, %v8387_v34, %v8386_v38  ;;  %v8388_v57 = vmov %v8387_v34  ;;  %v8394_v12 = vrot.slane %v8393_v13, 4  ;;  %v8397_v38 = vld [vmem:[#allocation82_spill] sm:$0xff]  ;;  %v8412_v13 = vrot.slane %v5915_v0, 1 }
 0x1e6   :  { %v6137_v61 = vsel %vm995_vm2, %v8389_v2, %v8388_v57  ;;  %v8398_v34 = vpack.i.bf16 %v8396_v54, %v8397_v38  ;;  %v8400_v57 = vrot.slane %v4975_v45, 4  ;;  %v8406_v38 = vrot.slane %v5771_v7, 3 }
 0x1e7   :  { %8390 = vst [vmem:[#allocation107_spill] sm:$0xff] %v6137_v61  ;;  %v6145_v30 = vsel %vm1253_vm0, %v8394_v12, %v8392_v49  ;;  %v8399_v23 = vmov %v8394_v12  ;;  %v8403_v12 = vrot.slane %v5797_v40, 3  ;;  %v8409_v45 = vrot.slane %v5931_v32, 1 }
 0x1e8   :  { %8395 = vst [vmem:[#allocation108_spill] sm:$0xff] %v6145_v30  ;;  %3880 = vrot.lane.b32.xlu1 %v8398_v34, %s4149_s2  ;;  %v6159_v2 = vsel %vm1253_vm0, %v8400_v57, %v8399_v23  ;;  %v8414_v57 = vld [vmem:[#allocation58_spill] sm:$0xff] }
 0x1e9   :  { %8401 = vst [vmem:[#allocation81_spill] sm:$0xff] %v6159_v2  ;;  %v6167_v49 = vsel %vm1124_vm4, %v8403_v12, %v8402_v24  ;;  %v8405_v54 = vmov %v8403_v12  ;;  %v6187_v24 = vsel %vm866_vm3, %v8409_v45, %v8408_v25  ;;  %v8411_v12 = vmov %v8409_v45 }
 0x1ea   :  { %8404 = vst [vmem:[#allocation82_spill] sm:$0xff] %v6167_v49  ;;  %v6175_v34 = vsel %vm1124_vm4, %v8406_v38, %v8405_v54  ;;  %8410 = vst [vmem:[#allocation110_spill] sm:$0xff] %v6187_v24  ;;  %v6195_v54 = vsel %vm866_vm3, %v8412_v13, %v8411_v12  ;;  %v8415_v23 = vrot.slane %v8414_v57, 4  ;;  %v8420_v25 = vrot.slane %v8391_v56, 4 }
 0x1eb   :  { %8407 = vst [vmem:[#allocation109_spill] sm:$0xff] %v6175_v34  ;;  %8413 = vst [vmem:[#allocation111_spill] sm:$0xff] %v6195_v54  ;;  %v8416_v34 = vld [vmem:[#allocation61_spill] sm:$0xff]  ;;  %v8422_v13 = vrot.slane %v5889_v6, 2  ;;  %v8423_v12 = vrot.slane %v5931_v32, 2  ;;  %v8425_v54 = vld [vmem:[#allocation83_spill] sm:$0xff] }
 0x1ec   :  { %v8417_v49 = vrot.slane %v8416_v34, 4  ;;  %v8431_v24 = vrot.slane %v5889_v6, 3 }
 0x1ed   :  { %v6221_v38 = vsel %vm995_vm2, %v8423_v12, %v8422_v13  ;;  %v8428_v34 = vmov %v8423_v12  ;;  %v8432_v13 = vrot.slane %v5931_v32, 3 }
 0x1ee   :  { %v6205_v2 = vsel %vm1253_vm0, %v8417_v49, %v8415_v23  ;;  %v8419_v45 = vmov %v8417_v49  ;;  %8424 = vst [vmem:[#allocation114_spill] sm:$0xff] %v6221_v38  ;;  %v8426_v49 = vld [vmem:[#allocation84_spill] sm:$0xff] }
 0x1ef   :  { %8418 = vst [vmem:[#allocation112_spill] sm:$0xff] %v6205_v2  ;;  %v6213_v30 = vsel %vm1253_vm0, %v8420_v25, %v8419_v45  ;;  %v8427_v23 = vpack.i.bf16 %v8425_v54, %v8426_v49  ;;  %v8429_v45 = vrot.slane %v5915_v0, 2  ;;  %v6243_v12 = vsel %vm1124_vm4, %v8432_v13, %v8431_v24 }
 0x1f0   :  { %8421 = vst [vmem:[#allocation113_spill] sm:$0xff] %v6213_v30  ;;  %8433 = vst [vmem:[#allocation84_spill] sm:$0xff] %v6243_v12  ;;  %v8434_v54 = vmov %v8432_v13  ;;  %v8435_v49 = vrot.slane %v5915_v0, 3  ;;  %v8438_v13 = vld [vmem:[#allocation63_spill] sm:$0xff]  ;;  %v8440_v30 = vld [vmem:[#allocation60_spill] sm:$0xff]  ;;  %v8447_v24 = vrot.slane %v5921_v50, 1 }
 0x1f1   :  { %3825 = vrot.lane.b32.xlu0 %v8427_v23, %s4149_s2  ;;  %v6235_v25 = vsel %vm995_vm2, %v8429_v45, %v8428_v34  ;;  %v8437_v34 = vpack.i.bf16 %v5705_v58, %v5647_v53  ;;  %v8439_v56 = vrot.slane %v8438_v13, 4  ;;  %v8441_v2 = vrot.slane %v8440_v30, 4  ;;  %v8460_v30 = vld [vmem:[#allocation65_spill] sm:$0xff] }
 0x1f2   :  { %8430 = vst [vmem:[#allocation83_spill] sm:$0xff] %v6235_v25  ;;  %v6251_v23 = vsel %vm1124_vm4, %v8435_v49, %v8434_v54  ;;  %v8444_v49 = vrot.slane %v8414_v57, 4  ;;  %v8500_v25 = vrot.slane %v6061_v15, 1 }
 0x1f3   :  { %8436 = vst [vmem:[#allocation115_spill] sm:$0xff] %v6251_v23  ;;  %3890 = vrot.lane.b32.xlu1 %v8437_v34, %s4150_s22  ;;  %v6267_v61 = vsel %vm1253_vm0, %v8441_v2, %v8439_v56  ;;  %v8443_v54 = vmov %v8441_v2  ;;  %v8446_v34 = vrot.slane %v6045_v28, 1  ;;  %v8449_v56 = vmov %v8447_v24 }
 0x1f4   :  { %8442 = vst [vmem:[#allocation116_spill] sm:$0xff] %v6267_v61  ;;  %v6275_v53 = vsel %vm1253_vm0, %v8444_v49, %v8443_v54  ;;  %v8450_v2 = vrot.slane %v5889_v6, 1  ;;  %v8452_v54 = vrot.slane %v6045_v28, 2  ;;  %v8453_v49 = vrot.slane %v5921_v50, 2 }
 0x1f5   :  { %8445 = vst [vmem:[#allocation117_spill] sm:$0xff] %v6275_v53  ;;  %v6285_v45 = vsel %vm866_vm3, %v8447_v24, %v8446_v34  ;;  %v8456_v53 = vrot.slane %v5889_v6, 2  ;;  %v8461_v23 = vrot.slane %v8460_v30, 4  ;;  %v8470_v30 = vrot.slane %v5921_v50, 3 }
 0x1f6   :  { %8448 = vst [vmem:[#allocation118_spill] sm:$0xff] %v6285_v45  ;;  %v6293_v57 = vsel %vm866_vm3, %v8450_v2, %v8449_v56  ;;  %v6301_v58 = vsel %vm995_vm2, %v8453_v49, %v8452_v54  ;;  %v8455_v34 = vmov %v8453_v49  ;;  %v8458_v56 = vld [vmem:[#allocation62_spill] sm:$0xff]  ;;  %v8464_v49 = vrot.slane %v8438_v13, 4 }
 0x1f7   :  { %8451 = vst [vmem:[#allocation119_spill] sm:$0xff] %v6293_v57  ;;  %8454 = vst [vmem:[#allocation120_spill] sm:$0xff] %v6301_v58  ;;  %v6311_v61 = vsel %vm995_vm2, %v8456_v53, %v8455_v34  ;;  %v8459_v2 = vrot.slane %v8458_v56, 4  ;;  %v8463_v54 = vmov %v8461_v23  ;;  %v8466_v57 = vld [vmem:[#allocation13_spill] sm:$0xff]  ;;  %v8467_v53 = vld [vmem:[#allocation7_spill] sm:$0xff] }
 0x1f8   :  { %8457 = vst [vmem:[#allocation121_spill] sm:$0xff] %v6311_v61  ;;  %v6327_v24 = vsel %vm1253_vm0, %v8464_v49, %v8463_v54  ;;  %v8468_v34 = vpack.i.bf16 %v8466_v57, %v8467_v53  ;;  %v8472_v54 = vmov %v8470_v30  ;;  %v8473_v49 = vrot.slane %v5889_v6, 3 }
 0x1f9   :  { %v6319_v12 = vsel %vm1253_vm0, %v8461_v23, %v8459_v2  ;;  %8465 = vst [vmem:[#allocation123_spill] sm:$0xff] %v6327_v24  ;;  %v8469_v2 = vrot.slane %v6045_v28, 3  ;;  %v8475_v53 = vpack.i.bf16 %v5709_v8, %v5663_v21  ;;  %v8479_v24 = vrot.slane %v6017_v14, 1 }
 0x1fa   :  { %8462 = vst [vmem:[#allocation122_spill] sm:$0xff] %v6319_v12  ;;  %3830 = vrot.lane.b32.xlu0 %v8468_v34, %s4151_s23  ;;  %v6351_v57 = vsel %vm1124_vm4, %v8473_v49, %v8472_v54  ;;  %v8481_v54 = vld [vmem:[#allocation4_spill] sm:$0xff]  ;;  %v8487_v34 = vld [vmem:[#allocation37_spill] sm:$0xff] }
 0x1fb   :  { %v6343_v13 = vsel %vm1124_vm4, %v8470_v30, %v8469_v2  ;;  %8474 = vst [vmem:[#allocation7_spill] sm:$0xff] %v6351_v57  ;;  %3980 = vrot.lane.b32.xlu1 %v8475_v53, %s4151_s23  ;;  %v8478_v2 = vrot.slane %v6051_v22, 1  ;;  %v8482_v49 = vrot.slane %v8481_v54, 1  ;;  %v8485_v53 = vld [vmem:[#allocation39_spill] sm:$0xff]  ;;  %v8488_v23 = vrot.slane %v8487_v34, 2  ;;  %v8492_v57 = vld [vmem:[#allocation64_spill] sm:$0xff] }
 0x1fc   :  { %8471 = vst [vmem:[#allocation13_spill] sm:$0xff] %v6343_v13  ;;  %v8486_v30 = vrot.slane %v8485_v53, 2  ;;  %v8493_v13 = vrot.slane %v8492_v57, 4 }
 0x1fd   :  { %v6367_v12 = vsel %vm866_vm3, %v8479_v24, %v8478_v2  ;;  %v8483_v61 = vmov %v8478_v2  ;;  %v8490_v24 = vld [vmem:[#allocation67_spill] sm:$0xff] }
 0x1fe   :  { %8480 = vst [vmem:[#allocation124_spill] sm:$0xff] %v6367_v12  ;;  %v6375_v21 = vsel %vm866_vm3, %v8483_v61, %v8482_v49  ;;  %v6385_v45 = vsel %vm995_vm2, %v8488_v23, %v8486_v30  ;;  %v8491_v2 = vrot.slane %v8490_v24, 4  ;;  %v8495_v61 = vmov %v8493_v13 }
 0x1ff   :  { %8484 = vst [vmem:[#allocation4_spill] sm:$0xff] %v6375_v21  ;;  %8489 = vst [vmem:[#allocation39_spill] sm:$0xff] %v6385_v45  ;;  %v8496_v49 = vrot.slane %v8458_v56, 4  ;;  %v8499_v21 = vrot.slane %v6017_v14, 1  ;;  %v8503_v56 = vrot.slane %v6045_v28, 1  ;;  %v8532_v38 = vrot.slane %v8490_v24, 4 }
 0x200   :  { %v6393_v58 = vsel %vm1253_vm0, %v8493_v13, %v8491_v2  ;;  %v8502_v2 = vmov %v8500_v25 }
 0x201   :  { %8494 = vst [vmem:[#allocation125_spill] sm:$0xff] %v6393_v58  ;;  %v6401_v8 = vsel %vm1253_vm0, %v8496_v49, %v8495_v61  ;;  %v6413_v13 = vsel %vm866_vm3, %v8500_v25, %v8499_v21  ;;  %v6421_v61 = vsel %vm866_vm3, %v8503_v56, %v8502_v2  ;;  %v8505_v49 = vld [vmem:[#allocation86_spill] sm:$0xff]  ;;  %v8509_v25 = vrot.slane %v8485_v53, 3 }
 0x202   :  { %8497 = vst [vmem:[#allocation126_spill] sm:$0xff] %v6401_v8  ;;  %8501 = vst [vmem:[#allocation127_spill] sm:$0xff] %v6413_v13  ;;  %v8506_v30 = vpack.i.bf16 %v5671_v47, %v8505_v49  ;;  %v8507_v8 = vld [vmem:[#allocation33_spill] sm:$0xff]  ;;  %v8512_v56 = vrot.slane %v8487_v34, 3  ;;  %v8514_v47 = vrot.slane %v6017_v14, 2 }
 0x203   :  { %8504 = vst [vmem:[#allocation128_spill] sm:$0xff] %v6421_v61  ;;  %v8508_v58 = vrot.slane %v8507_v8, 3  ;;  %v8511_v45 = vmov %v8509_v25  ;;  %v8519_v61 = vld [vmem:[#allocation51_spill] sm:$0xff] }
 0x204   :  { %3840 = vrot.lane.b32.xlu0 %v8506_v30, %s4150_s22  ;;  %v6443_v2 = vsel %vm1124_vm4, %v8512_v56, %v8511_v45  ;;  %v8515_v30 = vrot.slane %v6061_v15, 2  ;;  %v8518_v45 = vrot.slane %v6045_v28, 2  ;;  %v8520_v13 = vrot.slane %v8519_v61, 1 }
 0x205   :  { %v6435_v21 = vsel %vm1124_vm4, %v8509_v25, %v8508_v58  ;;  %8513 = vst [vmem:[#allocation129_spill] sm:$0xff] %v6443_v2  ;;  %v8516_v58 = vpack.i.bf16 %v5737_v29, %v5745_v26  ;;  %v8524_v26 = vrot.slane %v8507_v8, 1  ;;  %v8526_v25 = vld [vmem:[#allocation66_spill] sm:$0xff] }
 0x206   :  { %8510 = vst [vmem:[#allocation86_spill] sm:$0xff] %v6435_v21  ;;  %v6451_v49 = vsel %vm995_vm2, %v8515_v30, %v8514_v47  ;;  %v8517_v23 = vmov %v8515_v30  ;;  %v8521_v47 = vld [vmem:[#allocation38_spill] sm:$0xff]  ;;  %v8527_v2 = vrot.slane %v8526_v25, 4  ;;  %v8528_v21 = vld [vmem:[#allocation69_spill] sm:$0xff] }
 0x207   :  { %3985 = vrot.lane.b32.xlu1 %v8516_v58, %s4150_s22  ;;  %v6465_v56 = vsel %vm995_vm2, %v8518_v45, %v8517_v23  ;;  %v8522_v30 = vrot.slane %v8521_v47, 1  ;;  %v8529_v57 = vrot.slane %v8528_v21, 4  ;;  %v8534_v45 = vrot.slane %v6017_v14, 3 }
 0x208   :  { %v8535_v23 = vrot.slane %v6061_v15, 3 }
 0x209   :  { %v6473_v12 = vsel %vm866_vm3, %v8522_v30, %v8520_v13  ;;  %v8523_v29 = vmov %v8522_v30  ;;  %v6493_v13 = vsel %vm1253_vm0, %v8529_v57, %v8527_v2  ;;  %v8531_v30 = vmov %v8529_v57 }
 0x20a   :  { %v6481_v58 = vsel %vm866_vm3, %v8524_v26, %v8523_v29  ;;  %8530 = vst [vmem:[#allocation38_spill] sm:$0xff] %v6493_v13  ;;  %v6501_v29 = vsel %vm1253_vm0, %v8532_v38, %v8531_v30  ;;  %v8537_v57 = vmov %v8535_v23  ;;  %v8538_v2 = vrot.slane %v6045_v28, 3 }
 0x20b   :  { %8525 = vst [vmem:[#allocation51_spill] sm:$0xff] %v6481_v58  ;;  %8533 = vst [vmem:[#allocation69_spill] sm:$0xff] %v6501_v29  ;;  %v6511_v58 = vsel %vm1124_vm4, %v8535_v23, %v8534_v45  ;;  %v8540_v38 = vrot.slane %v8519_v61, 2  ;;  %v8541_v30 = vrot.slane %v8521_v47, 2  ;;  %v8543_v23 = vpack.i.bf16 %v5725_v41, %v5753_v1  ;;  %v8563_v45 = vld [vmem:[#allocation68_spill] sm:$0xff] }
 0x20c   :  { %8536 = vst [vmem:[#allocation130_spill] sm:$0xff] %v6511_v58  ;;  %v6519_v24 = vsel %vm1124_vm4, %v8538_v2, %v8537_v57  ;;  %v8545_v57 = vrot.slane %v8507_v8, 2  ;;  %v8547_v13 = vrot.slane %v6051_v22, 2  ;;  %v8550_v1 = vrot.slane %v8481_v54, 2 }
 0x20d   :  { %8539 = vst [vmem:[#allocation131_spill] sm:$0xff] %v6519_v24  ;;  %v6527_v26 = vsel %vm995_vm2, %v8541_v30, %v8540_v38  ;;  %3850 = vrot.lane.b32.xlu0 %v8543_v23, %s4151_s23  ;;  %v8544_v29 = vmov %v8541_v30  ;;  %v8548_v38 = vrot.slane %v6017_v14, 2  ;;  %v8556_v24 = vrot.slane %v8521_v47, 3 }
 0x20e   :  { %8542 = vst [vmem:[#allocation132_spill] sm:$0xff] %v6527_v26  ;;  %v6541_v2 = vsel %vm995_vm2, %v8545_v57, %v8544_v29  ;;  %v8551_v41 = vmov %v8547_v13  ;;  %v8553_v29 = vld [vmem:[#allocation87_spill] sm:$0xff] }
 0x20f   :  { %8546 = vst [vmem:[#allocation133_spill] sm:$0xff] %v6541_v2  ;;  %v6549_v30 = vsel %vm995_vm2, %v8548_v38, %v8547_v13  ;;  %v6557_v23 = vsel %vm995_vm2, %v8551_v41, %v8550_v1  ;;  %v8554_v57 = vpack.i.bf16 %v5759_v5, %v8553_v29  ;;  %v8555_v38 = vrot.slane %v8519_v61, 3 }
 0x210   :  { %8549 = vst [vmem:[#allocation134_spill] sm:$0xff] %v6549_v30  ;;  %8552 = vst [vmem:[#allocation135_spill] sm:$0xff] %v6557_v23  ;;  %v8558_v1 = vmov %v8556_v24  ;;  %v8559_v41 = vrot.slane %v8507_v8, 3  ;;  %v8564_v30 = vrot.slane %v8563_v45, 4 }
 0x211   :  { %3990 = vrot.lane.b32.xlu1 %v8554_v57, %s4149_s2  ;;  %v6573_v58 = vsel %vm1124_vm4, %v8556_v24, %v8555_v38  ;;  %v8561_v57 = vld [vmem:[#allocation71_spill] sm:$0xff]  ;;  %v8567_v38 = vrot.slane %v8526_v25, 4  ;;  %v8575_v25 = vld [vmem:[#allocation73_spill] sm:$0xff] }
 0x212   :  { %8557 = vst [vmem:[#allocation87_spill] sm:$0xff] %v6573_v58  ;;  %v6581_v5 = vsel %vm1124_vm4, %v8559_v41, %v8558_v1  ;;  %v8562_v13 = vrot.slane %v8561_v57, 4  ;;  %v8566_v24 = vmov %v8564_v30  ;;  %v8569_v1 = vrot.slane %v6051_v22, 3 }
 0x213   :  { %8560 = vst [vmem:[#allocation136_spill] sm:$0xff] %v6581_v5  ;;  %v6599_v2 = vsel %vm1253_vm0, %v8567_v38, %v8566_v24  ;;  %v8570_v41 = vrot.slane %v6017_v14, 3  ;;  %v8573_v24 = vld [vmem:[#allocation70_spill] sm:$0xff]  ;;  %v8576_v45 = vrot.slane %v8575_v25, 4  ;;  %v8583_v25 = vld [vmem:[#allocation72_spill] sm:$0xff] }
 0x214   :  { %v6591_v23 = vsel %vm1253_vm0, %v8564_v30, %v8562_v13  ;;  %8568 = vst [vmem:[#allocation138_spill] sm:$0xff] %v6599_v2  ;;  %v8571_v13 = vrot.slane %v8481_v54, 3  ;;  %v8572_v5 = vmov %v8569_v1  ;;  %v8574_v38 = vrot.slane %v8573_v24, 4 }
 0x215   :  { %8565 = vst [vmem:[#allocation137_spill] sm:$0xff] %v6591_v23  ;;  %v6607_v29 = vsel %vm1124_vm4, %v8570_v41, %v8569_v1  ;;  %v8577_v1 = vmov %v8576_v45  ;;  %v8578_v41 = vrot.slane %v8561_v57, 4  ;;  %v8584_v23 = vrot.slane %v8583_v25, 4 }
 0x216   :  { %v6617_v58 = vsel %vm1124_vm4, %v8572_v5, %v8571_v13  ;;  %v6625_v26 = vsel %vm1253_vm0, %v8576_v45, %v8574_v38  ;;  %v8580_v5 = vpack.i.bf16 %v5785_v37, %v5823_v39  ;;  %v8581_v38 = vld [vmem:[#allocation75_spill] sm:$0xff]  ;;  %v8588_v39 = vpack.i.bf16 %v5829_v60, %v5833_v10  ;;  %v8589_v45 = vld [vmem:[#allocation9_spill] sm:$0xff] }
 0x217   :  { %v6633_v30 = vsel %vm1253_vm0, %v8578_v41, %v8577_v1  ;;  %v8582_v2 = vrot.slane %v8581_v38, 4  ;;  %v8585_v1 = vmov %v8584_v23  ;;  %v8586_v41 = vrot.slane %v8573_v24, 4  ;;  %v8599_v10 = vld [vmem:[#allocation77_spill] sm:$0xff] }
 0x218   :  { %8579 = vst [vmem:[#allocation139_spill] sm:$0xff] %v6633_v30  ;;  %3860 = vrot.lane.b32.xlu0 %v8580_v5, %s4149_s2  ;;  %3995 = vrot.lane.b32.xlu1 %v8588_v39, %s4151_s23  ;;  %v8590_v13 = vrot.slane %v8589_v45, 4  ;;  %v8598_v60 = vrot.slane %v5411_v51, 4  ;;  %v8600_v39 = vrot.slane %v8599_v10, 4 }
 0x219   :  { %v6649_v57 = vsel %vm1253_vm0, %v8584_v23, %v8582_v2  ;;  %v6657_v37 = vsel %vm1253_vm0, %v8586_v41, %v8585_v1  ;;  %v8591_v2 = vld [vmem:[#allocation12_spill] sm:$0xff]  ;;  %v8595_v1 = vld [vmem:[#allocation10_spill] sm:$0xff] }
 0x21a   :  { %8587 = vst [vmem:[#allocation140_spill] sm:$0xff] %v6657_v37  ;;  %v8592_v23 = vrot.slane %v8591_v2, 4  ;;  %v8596_v41 = vrot.slane %v8595_v1, 4  ;;  %v6687_v5 = vsel %vm1253_vm0, %v8600_v39, %v8598_v60  ;;  %v8602_v1 = vrot.slane %v8581_v38, 4  ;;  %v8604_v2 = vld [vmem:[#allocation76_spill] sm:$0xff] }
 0x21b   :  { %v8605_v37 = vrot.slane %v8604_v2, 4  ;;  %v8611_v38 = vrot.slane %v5573_v62, 4 }
 0x21c   :  { %v6671_v25 = vsel %vm1253_vm0, %v8592_v23, %v8590_v13  ;;  %v8594_v24 = vmov %v8592_v23  ;;  %v8601_v23 = vmov %v8600_v39  ;;  %v8608_v13 = vrot.slane %v5411_v51, 4 }
 0x21d   :  { %8593 = vst [vmem:[#allocation141_spill] sm:$0xff] %v6671_v25  ;;  %v6679_v30 = vsel %vm1253_vm0, %v8596_v41, %v8594_v24  ;;  %v6697_v24 = vsel %vm1253_vm0, %v8602_v1, %v8601_v23  ;;  %v8603_v41 = vrot.slane %v5557_v55, 4  ;;  %v8607_v39 = vmov %v8605_v37  ;;  %v8617_v1 = vld [vmem:[#allocation15_spill] sm:$0xff] }
 0x21e   :  { %8597 = vst [vmem:[#allocation142_spill] sm:$0xff] %v6679_v30  ;;  %v6713_v30 = vsel %vm1253_vm0, %v8608_v13, %v8607_v39  ;;  %v8610_v25 = vrot.slane %v5529_v36, 4  ;;  %v8614_v51 = vrot.slane %v5557_v55, 4  ;;  %v8616_v39 = vld [vmem:[#allocation14_spill] sm:$0xff] }
 0x21f   :  { %v6705_v60 = vsel %vm1253_vm0, %v8605_v37, %v8603_v41  ;;  %8609 = vst [vmem:[#allocation76_spill] sm:$0xff] %v6713_v30  ;;  %v8613_v41 = vmov %v8611_v38  ;;  %v8618_v23 = vpack.i.bf16 %v8616_v39, %v8617_v1  ;;  %v8624_v1 = vrot.slane %v5653_v59, 4 }
 0x220   :  { %8606 = vst [vmem:[#allocation77_spill] sm:$0xff] %v6705_v60  ;;  %v6725_v37 = vsel %vm1253_vm0, %v8611_v38, %v8610_v25  ;;  %v6733_v13 = vsel %vm1253_vm0, %v8614_v51, %v8613_v41  ;;  %v8619_v60 = vrot.slane %v5677_v48, 4  ;;  %v8620_v25 = vrot.slane %v5563_v18, 4  ;;  %v8632_v18 = vld [vmem:[#allocation22_spill] sm:$0xff] }
 0x221   :  { %8612 = vst [vmem:[#allocation143_spill] sm:$0xff] %v6725_v37  ;;  %8615 = vst [vmem:[#allocation144_spill] sm:$0xff] %v6733_v13  ;;  %3865 = vrot.lane.b32.xlu0 %v8618_v23, %s4150_s22  ;;  %v8622_v51 = vrot.slane %v5529_v36, 4  ;;  %v8625_v23 = vld [vmem:[#allocation85_spill] sm:$0xff]  ;;  %v8633_v13 = vrot.slane %v8632_v18, 4 }
 0x222   :  { %v6747_v38 = vsel %vm1253_vm0, %v8620_v25, %v8619_v60  ;;  %v8621_v55 = vmov %v8620_v25  ;;  %v8626_v39 = vrot.slane %v8625_v23, 4  ;;  %v8628_v60 = vpack.i.bf16 %v5839_v11, %v5849_v31 }
 0x223   :  { %v6755_v41 = vsel %vm1253_vm0, %v8622_v51, %v8621_v55  ;;  %v8630_v55 = vrot.slane %v5677_v48, 4  ;;  %v8638_v31 = vrot.slane %v8589_v45, 4  ;;  %v8640_v25 = vrot.slane %v5791_v33, 4 }
 0x224   :  { %8623 = vst [vmem:[#allocation14_spill] sm:$0xff] %v6755_v41  ;;  %v6763_v30 = vsel %vm1253_vm0, %v8626_v39, %v8624_v1  ;;  %4000 = vrot.lane.b32.xlu1 %v8628_v60, %s4150_s22  ;;  %v8629_v36 = vmov %v8626_v39  ;;  %v8634_v1 = vld [vmem:[#allocation11_spill] sm:$0xff]  ;;  %v8669_v41 = vrot.slane %v8487_v34, 4 }
 0x225   :  { %8627 = vst [vmem:[#allocation15_spill] sm:$0xff] %v6763_v30  ;;  %v6777_v51 = vsel %vm1253_vm0, %v8630_v55, %v8629_v36  ;;  %v8635_v39 = vrot.slane %v8634_v1, 4  ;;  %v8646_v55 = vld [vmem:[#allocation19_spill] sm:$0xff] }
 0x226   :  { %8631 = vst [vmem:[#allocation85_spill] sm:$0xff] %v6777_v51  ;;  %v8647_v1 = vrot.slane %v8646_v55, 4 }
 0x227   :  { %v6785_v37 = vsel %vm1253_vm0, %v8635_v39, %v8633_v13  ;;  %v8637_v11 = vmov %v8635_v39  ;;  %v8641_v13 = vrot.slane %v5683_v46, 4 }
 0x228   :  { %8636 = vst [vmem:[#allocation145_spill] sm:$0xff] %v6785_v37  ;;  %v6793_v60 = vsel %vm1253_vm0, %v8638_v31, %v8637_v11  ;;  %v8644_v11 = vrot.slane %v5653_v59, 4 }
 0x229   :  { %8639 = vst [vmem:[#allocation146_spill] sm:$0xff] %v6793_v60  ;;  %v6805_v39 = vsel %vm1253_vm0, %v8641_v13, %v8640_v25  ;;  %v8643_v45 = vmov %v8641_v13  ;;  %v8648_v60 = vld [vmem:[#allocation24_spill] sm:$0xff]  ;;  %v8652_v13 = vrot.slane %v8632_v18, 4 }
 0x22a   :  { %8642 = vst [vmem:[#allocation147_spill] sm:$0xff] %v6805_v39  ;;  %v6813_v31 = vsel %vm1253_vm0, %v8644_v11, %v8643_v45  ;;  %v8649_v37 = vrot.slane %v8648_v60, 4  ;;  %v8654_v45 = vrot.slane %v5771_v7, 4  ;;  %v8655_v11 = vrot.slane %v5807_v3, 4  ;;  %v3636_v60 = vpop.permute.xlu1 %3635  ;;  %v3631_v3 = vpop.permute.xlu0 %3630 }
 0x22b   :  { %8645 = vst [vmem:[#allocation148_spill] sm:$0xff] %v6813_v31  ;;  %v8656_v31 = vld [vmem:[#allocation92_spill] sm:$0xff] }
 0x22c   :  { %v6823_v51 = vsel %vm1253_vm0, %v8649_v37, %v8647_v1  ;;  %v8651_v25 = vmov %v8649_v37  ;;  %v6839_v36 = vsel %vm1253_vm0, %v8655_v11, %v8654_v45  ;;  %v8657_v37 = vld [vmem:[#allocation93_spill] sm:$0xff]  ;;  %v8661_v45 = vrot.slane %v5915_v0, 4 }
 0x22d   :  { %8650 = vst [vmem:[#allocation149_spill] sm:$0xff] %v6823_v51  ;;  %v6831_v30 = vsel %vm1253_vm0, %v8652_v13, %v8651_v25  ;;  %v8658_v1 = vpack.i.bf16 %v8656_v31, %v8657_v37  ;;  %v8659_v25 = vmov %v8655_v11  ;;  %v8660_v13 = vrot.slane %v5791_v33, 4 }
 0x22e   :  { %8653 = vst [vmem:[#allocation150_spill] sm:$0xff] %v6831_v30  ;;  %v8662_v11 = vrot.slane %v5797_v40, 4  ;;  %v3638_v30 = vunpack.i.h.bf16 %v3636_v60  ;;  %v3637_v51 = vunpack.i.l.bf16 %v3636_v60  ;;  %v3633_v40 = vunpack.i.h.bf16 %v3631_v3 }
 0x22f   :  { %3875 = vrot.lane.b32.xlu0 %v8658_v1, %s4150_s22  ;;  %v6853_v39 = vsel %vm1253_vm0, %v8660_v13, %v8659_v25  ;;  %v8664_v1 = vrot.slane %v5771_v7, 4  ;;  %v8666_v25 = vld [vmem:[#allocation94_spill] sm:$0xff]  ;;  %v8667_v13 = vld [vmem:[#allocation95_spill] sm:$0xff]  ;;  %v3632_v7 = vunpack.i.l.bf16 %v3631_v3  ;;  %v8676_v3 = vrot.slane %v5889_v6, 4 }
 0x230   :  { %v6861_v31 = vsel %vm1253_vm0, %v8662_v11, %v8661_v45  ;;  %v8663_v37 = vmov %v8662_v11  ;;  %v8668_v33 = vpack.i.bf16 %v8666_v25, %v8667_v13  ;;  %v8677_v45 = vrot.slane %v5931_v32, 4 }
 0x231   :  { %v6869_v18 = vsel %vm1253_vm0, %v8664_v1, %v8663_v37  ;;  %v8670_v37 = vld [vmem:[#allocation23_spill] sm:$0xff] }
 0x232   :  { %8665 = vst [vmem:[#allocation92_spill] sm:$0xff] %v6869_v18  ;;  %4005 = vrot.lane.b32.xlu1 %v8668_v33, %s4149_s2  ;;  %v8671_v1 = vrot.slane %v8670_v37, 4  ;;  %v8674_v33 = vrot.slane %v8646_v55, 4  ;;  %v6903_v18 = vsel %vm1253_vm0, %v8677_v45, %v8676_v3  ;;  %v8682_v37 = vld [vmem:[#allocation53_spill] sm:$0xff]  ;;  %v2103_v3 = vsel %vm2086_vm1, %v8519_v61, %v3632_v7 }
 0x234   :  { %v6885_v60 = vsel %vm1253_vm0, %v8671_v1, %v8669_v41  ;;  %v8673_v25 = vmov %v8671_v1  ;;  %v8678_v41 = vmov %v8677_v45  ;;  %v8679_v1 = vrot.slane %v5915_v0, 4 }
 0x235   :  { %8672 = vst [vmem:[#allocation93_spill] sm:$0xff] %v6885_v60  ;;  %v6893_v13 = vsel %vm1253_vm0, %v8674_v33, %v8673_v25  ;;  %v8680_v25 = vrot.slane %v8507_v8, 4  ;;  %v8681_v33 = vrot.slane %v8485_v53, 4  ;;  %v2104_v45 = vsel %vm2086_vm1, %v8682_v37, %v3633_v40  ;;  %v8686_v40 = vld [vmem:[#allocation96_spill] sm:$0xff] }
 0x236   :  { %8675 = vst [vmem:[#allocation94_spill] sm:$0xff] %v6893_v13  ;;  %v6911_v55 = vsel %vm1253_vm0, %v8679_v1, %v8678_v41  ;;  %v8683_v13 = vpack.i.bf16 %v5901_v42, %v5909_v19  ;;  %v8685_v60 = vrot.slane %v8487_v34, 4  ;;  %v8687_v7 = vpack.i.bf16 %v5949_v4, %v8686_v40 }
 0x237   :  { %v6919_v11 = vsel %vm1253_vm0, %v8681_v33, %v8680_v25  ;;  %v8684_v1 = vmov %v8681_v33  ;;  %v2168_v37 = vsel %vm2151_vm5, %v2103_v3, %v3637_v51  ;;  %v2169_v42 = vsel %vm2151_vm5, %v2104_v45, %v3638_v30 }
 0x238   :  { %3885 = vrot.lane.b32.xlu0 %v8683_v13, %s4151_s23  ;;  %v6937_v25 = vsel %vm1253_vm0, %v8685_v60, %v8684_v1  ;;  %4010 = vrot.lane.b32.xlu1 %v8687_v7, %s4151_s23  ;;  %v8688_v13 = vrot.slane %v6045_v28, 4  ;;  %v8689_v33 = vrot.slane %v5921_v50, 4  ;;  %v3641_v1 = vpop.permute.xlu0 %3640  ;;  %v8691_v4 = vrot.slane %v5889_v6, 4 }
 0x239   :  { %v8692_v30 = vrot.slane %v6017_v14, 4  ;;  %v8693_v45 = vrot.slane %v6061_v15, 4  ;;  %v3643_v19 = vunpack.i.h.bf16 %v3641_v1  ;;  %v3642_v34 = vunpack.i.l.bf16 %v3641_v1 }
 0x23a   :  { %v6953_v60 = vsel %vm1253_vm0, %v8689_v33, %v8688_v13  ;;  %v8690_v41 = vmov %v8689_v33  ;;  %v8695_v7 = vmov %v8688_v13  ;;  %v8696_v33 = vrot.slane %v8519_v61, 4 }
 0x23b   :  { %v6961_v51 = vsel %vm1253_vm0, %v8691_v4, %v8690_v41  ;;  %v6969_v3 = vsel %vm1253_vm0, %v8693_v45, %v8692_v30  ;;  %v8694_v40 = vmov %v8693_v45  ;;  %v8697_v41 = vrot.slane %v8521_v47, 4  ;;  %v3646_v30 = vpop.permute.xlu1 %3645 }
 0x23c   :  { %v6977_v13 = vsel %vm1253_vm0, %v8695_v7, %v8694_v40  ;;  %v3648_v15 = vunpack.i.h.bf16 %v3646_v30  ;;  %v3647_v40 = vunpack.i.l.bf16 %v3646_v30  ;;  %v8698_v61 = vpack.i.bf16 %v5965_v63, %v5975_v27 }
 0x23d   :  { %v6985_v4 = vsel %vm1253_vm0, %v8697_v41, %v8696_v33  ;;  %v8699_v7 = vmov %v8697_v41  ;;  %v8700_v33 = vrot.slane %v8507_v8, 4  ;;  %v8701_v41 = vrot.slane %v6051_v22, 4 }
 0x23e   :  { %3895 = vrot.lane.b32.xlu0 %v8698_v61, %s4149_s2  ;;  %v8702_v45 = vrot.slane %v6017_v14, 4  ;;  %v8704_v27 = vpack.i.bf16 %v5981_v16, %v5987_v9  ;;  %v2233_v63 = vsel %vm2216_vm6, %v2168_v37, %v3642_v34  ;;  %v2234_v61 = vsel %vm2216_vm6, %v2169_v42, %v3643_v19  ;;  %v8709_v16 = vld [vmem:[#allocation48_spill] sm:$0xff]  ;;  %v3651_v34 = vpop.permute.xlu0 %3650 }
 0x23f   :  { %v7001_v1 = vsel %vm1253_vm0, %v8700_v33, %v8699_v7  ;;  %v8705_v33 = vrot.slane %v8481_v54, 4  ;;  %v8706_v28 = vmov %v8701_v41  ;;  %v2105_v9 = vsel %vm2086_vm1, %v8709_v16, %v3647_v40  ;;  %v3661_v7 = vpop.permute.xlu1 %3660 }
 0x240   :  { %v7009_v30 = vsel %vm1253_vm0, %v8702_v45, %v8701_v41  ;;  %4015 = vrot.lane.b32.xlu1 %v8704_v27, %s4150_s22  ;;  %v8708_v41 = vld [vmem:[#allocation52_spill] sm:$0xff]  ;;  %v2297_v37 = vpack.c.bf16 %v2234_v61, %v2233_v63  ;;  %v3653_v19 = vunpack.i.h.bf16 %v3651_v34  ;;  %v3652_v27 = vunpack.i.l.bf16 %v3651_v34  ;;  %v8714_v63 = vld [vmem:[#allocation98_spill] sm:$0xff] }
 0x241   :  { %8703 = vst [vmem:[#allocation95_spill] sm:$0xff] %v7009_v30  ;;  %v7025_v45 = vsel %vm1253_vm0, %v8706_v28, %v8705_v33  ;;  %v2106_v14 = vsel %vm2086_vm1, %v8708_v41, %v3648_v15  ;;  %v3663_v8 = vunpack.i.h.bf16 %v3661_v7  ;;  %v3662_v22 = vunpack.i.l.bf16 %v3661_v7  ;;  %v8711_v28 = vld [vmem:[#allocation17_spill] sm:$0xff] }
 0x242   :  { %8707 = vst [vmem:[#allocation53_spill] sm:$0xff] %v7025_v45  ;;  %v8712_v33 = vpack.i.bf16 %v8710_v17, %v8711_v28  ;;  %2625 = vmatmul.mubr.bf16.vlgmr.msra.gmra.mrb[0].mxu1 %v2297_v37  ;;  %v2171_v15 = vsel %vm2151_vm5, %v2106_v14, %v3653_v19  ;;  %v2170_v40 = vsel %vm2151_vm5, %v2105_v9, %v3652_v27  ;;  %v8713_v41 = vld [vmem:[#allocation97_spill] sm:$0xff]  ;;  %v7047_v7 = vpop.permute.xlu0 %3655  ;;  %v8717_v9 = vld [vmem:[#allocation18_spill] sm:$0xff]  ;;  %v8718_v19 = vld [vmem:[#allocation20_spill] sm:$0xff] }
 0x243   :  { %v8715_v61 = vpack.c.bf16 %v8713_v41, %v8714_v63  ;;  %v8716_v16 = vpack.i.bf16 %v6025_v44, %v6031_v43  ;;  %v2235_v34 = vsel %vm2216_vm6, %v2170_v40, %v3662_v22  ;;  %v2236_v37 = vsel %vm2216_vm6, %v2171_v15, %v3663_v8  ;;  %v3671_v17 = vpop.permute.xlu1 %3670  ;;  %v8721_v22 = vld [vmem:[#allocation25_spill] sm:$0xff] }
 0x244   :  { %3900 = vrot.lane.b32.xlu0 %v8712_v33, %s4149_s2  ;;  %v2299_v14 = vpack.c.bf16 %v2236_v37, %v2235_v34  ;;  %v8719_v27 = vpack.i.bf16 %v8717_v9, %v8718_v19  ;;  %v8720_v28 = vpack.i.bf16 %v6039_v35, %v6079_v20  ;;  %v8722_v40 = vld [vmem:[#allocation21_spill] sm:$0xff]  ;;  %v8726_v34 = vld [vmem:[#allocation103_spill] sm:$0xff]  ;;  %v8727_v37 = vld [vmem:[#allocation104_spill] sm:$0xff] }
 0x245   :  { %3453 = vmatprep.mubr.msk.bf16.mxu1 %vm2086_vm1, %v8715_v61  ;;  %4020 = vrot.lane.b32.xlu1 %v8716_v16, %s4149_s2  ;;  %v8723_v8 = vpack.i.bf16 %v8721_v22, %v8722_v40  ;;  %v8724_v15 = vld [vmem:[#allocation57_spill] sm:$0xff]  ;;  %v8725_v61 = vld [vmem:[#allocation55_spill] sm:$0xff]  ;;  %v8728_v35 = vpack.c.bf16 %v8726_v34, %v8727_v37  ;;  %v8730_v9 = vld [vmem:[#allocation106_spill] sm:$0xff] }
 0x246   :  { %v3666_v44 = vpop.permute.xlu0 %3665  ;;  %v8729_v20 = vld [vmem:[#allocation105_spill] sm:$0xff] }
 0x247   :  { %v3668_v43 = vunpack.i.h.bf16 %v3666_v44  ;;  %v3667_v33 = vunpack.i.l.bf16 %v3666_v44  ;;  %v3681_v41 = vpop.permute.xlu1 %3680  ;;  %v8731_v19 = vpack.i.bf16 %v8729_v20, %v8730_v9 }
 0x248   :  { %3905 = vrot.lane.b32.xlu0 %v8719_v27, %s4151_s23  ;;  %v3673_v27 = vunpack.i.h.bf16 %v3671_v17 }
 0x249   :  { %4025 = vrot.lane.b32.xlu1 %v8720_v28, %s4151_s23  ;;  %v2108_v63 = vsel %vm2086_vm1, %v8724_v15, %v3668_v43  ;;  %v2107_v16 = vsel %vm2086_vm1, %v8725_v61, %v3667_v33  ;;  %v3672_v28 = vunpack.i.l.bf16 %v3671_v17  ;;  %v3683_v43 = vunpack.i.h.bf16 %v3681_v41  ;;  %v8732_v33 = vld [vmem:[#allocation26_spill] sm:$0xff]  ;;  %v8733_v15 = vld [vmem:[#allocation27_spill] sm:$0xff] }
 0x24a   :  { %2633 = vmatmul.mubr.bf16.gmra.mrb[4].mxu1 %v2299_v14  ;;  %v3676_v44 = vpop.permute.xlu0 %3675  ;;  %v8734_v61 = vpack.i.bf16 %v8732_v33, %v8733_v15  ;;  %v2173_v37 = vsel %vm2151_vm5, %v2108_v63, %v3673_v27  ;;  %v8737_v33 = vld [vmem:[#allocation56_spill] sm:$0xff] }
 0x24b   :  { %3454 = vmatprep.mubr.msk.bf16.mxu1 %vm2086_vm1, %v8728_v35  ;;  %v3678_v14 = vunpack.i.h.bf16 %v3676_v44  ;;  %v3677_v22 = vunpack.i.l.bf16 %v3676_v44  ;;  %v3696_v40 = vpop.permute.xlu1 %3695  ;;  %v2172_v34 = vsel %vm2151_vm5, %v2107_v16, %v3672_v28  ;;  %v8735_v35 = vld [vmem:[#allocation107_spill] sm:$0xff]  ;;  %v2110_v15 = vsel %vm2086_vm1, %v8737_v33, %v3683_v43  ;;  %v8738_v16 = vld [vmem:[#allocation54_spill] sm:$0xff] }
 0x24c   :  { %3910 = vrot.lane.b32.xlu0 %v8723_v8, %s4150_s22  ;;  %v3682_v8 = vunpack.i.l.bf16 %v3681_v41  ;;  %v8736_v20 = vpack.i.bf16 %v6129_v52, %v8735_v35  ;;  %v3698_v27 = vunpack.i.h.bf16 %v3696_v40  ;;  %v3697_v28 = vunpack.i.l.bf16 %v3696_v40  ;;  %v8739_v52 = vld [vmem:[#allocation28_spill] sm:$0xff]  ;;  %v8745_v43 = vld [vmem:[#allocation82_spill] sm:$0xff] }
 0x24d   :  { %4030 = vrot.lane.b32.xlu1 %v8731_v19, %s4150_s22  ;;  %v2237_v17 = vsel %vm2216_vm6, %v2172_v34, %v3677_v22  ;;  %v2238_v9 = vsel %vm2216_vm6, %v2173_v37, %v3678_v14  ;;  %v8742_v34 = vld [vmem:[#allocation108_spill] sm:$0xff]  ;;  %v8743_v37 = vld [vmem:[#allocation81_spill] sm:$0xff] }
 0x24e   :  { %v3686_v19 = vpop.permute.xlu0 %3685  ;;  %v2301_v41 = vpack.c.bf16 %v2238_v9, %v2237_v17  ;;  %v2109_v63 = vsel %vm2086_vm1, %v8738_v16, %v3682_v8  ;;  %v8746_v8 = vld [vmem:[#allocation109_spill] sm:$0xff]  ;;  %v8751_v16 = vld [vmem:[#allocation110_spill] sm:$0xff] }
 0x24f   :  { %v3688_v44 = vunpack.i.h.bf16 %v3686_v19  ;;  %v3687_v42 = vunpack.i.l.bf16 %v3686_v19  ;;  %v3706_v30 = vpop.permute.xlu1 %3705  ;;  %v8747_v17 = vpack.i.bf16 %v8745_v43, %v8746_v8  ;;  %v8758_v43 = vld [vmem:[#allocation59_spill] sm:$0xff] }
 0x250   :  { %3915 = vrot.lane.b32.xlu0 %v8734_v61, %s4149_s2  ;;  %v8740_v61 = vld [vmem:[#allocation29_spill] sm:$0xff] }
 0x251   :  { %4035 = vrot.lane.b32.xlu1 %v8736_v20, %s4149_s2  ;;  %v8741_v35 = vpack.i.bf16 %v8739_v52, %v8740_v61  ;;  %v2175_v14 = vsel %vm2151_vm5, %v2110_v15, %v3688_v44  ;;  %v2174_v22 = vsel %vm2151_vm5, %v2109_v63, %v3687_v42  ;;  %v8744_v20 = vpack.c.bf16 %v8742_v34, %v8743_v37  ;;  %v8748_v44 = vld [vmem:[#allocation30_spill] sm:$0xff]  ;;  %v8749_v42 = vld [vmem:[#allocation31_spill] sm:$0xff] }
 0x252   :  { %2641 = vmatmul.mubr.bf16.gmra.mrb[8].mxu1 %v2301_v41  ;;  %v3691_v40 = vpop.permute.xlu0 %3690  ;;  %v2239_v9 = vsel %vm2216_vm6, %v2174_v22, %v3697_v28  ;;  %v2240_v19 = vsel %vm2216_vm6, %v2175_v14, %v3698_v27  ;;  %v8750_v15 = vpack.i.bf16 %v8748_v44, %v8749_v42  ;;  %v8752_v63 = vld [vmem:[#allocation111_spill] sm:$0xff]  ;;  %v8754_v28 = vld [vmem:[#allocation32_spill] sm:$0xff]  ;;  %v8755_v22 = vld [vmem:[#allocation34_spill] sm:$0xff] }
 0x253   :  { %3455 = vmatprep.mubr.msk.bf16.mxu1 %vm2086_vm1, %v8744_v20  ;;  %v3716_v41 = vpop.permute.xlu1 %3715  ;;  %v2303_v33 = vpack.c.bf16 %v2240_v19, %v2239_v9  ;;  %v8753_v52 = vpack.i.bf16 %v8751_v16, %v8752_v63  ;;  %v8756_v27 = vpack.i.bf16 %v8754_v28, %v8755_v22  ;;  %v8757_v14 = vld [vmem:[#allocation61_spill] sm:$0xff]  ;;  %v8762_v44 = vld [vmem:[#allocation114_spill] sm:$0xff]  ;;  %v8763_v42 = vld [vmem:[#allocation83_spill] sm:$0xff]  ;;  %v3708_v16 = vunpack.i.h.bf16 %v3706_v30 }
 0x254   :  { %3920 = vrot.lane.b32.xlu0 %v8741_v35, %s4151_s23  ;;  %v8760_v9 = vld [vmem:[#allocation113_spill] sm:$0xff]  ;;  %v3707_v63 = vunpack.i.l.bf16 %v3706_v30  ;;  %v3717_v22 = vunpack.i.l.bf16 %v3716_v41 }
 0x255   :  { %4040 = vrot.lane.b32.xlu1 %v8747_v17, %s4151_s23  ;;  %v8759_v17 = vld [vmem:[#allocation112_spill] sm:$0xff] }
 0x256   :  { %v3701_v61 = vpop.permute.xlu0 %3700  ;;  %v8761_v19 = vpack.c.bf16 %v8759_v17, %v8760_v9  ;;  %v8768_v9 = vld [vmem:[#allocation84_spill] sm:$0xff] }
 0x257   :  { %v3703_v35 = vunpack.i.h.bf16 %v3701_v61  ;;  %v3702_v34 = vunpack.i.l.bf16 %v3701_v61  ;;  %v3731_v37 = vpop.permute.xlu1 %3730 }
 0x258   :  { %3925 = vrot.lane.b32.xlu0 %v8750_v15, %s4150_s22  ;;  %v8764_v15 = vpack.i.bf16 %v8762_v44, %v8763_v42 }
 0x259   :  { %4045 = vrot.lane.b32.xlu1 %v8753_v52, %s4150_s22  ;;  %v2112_v20 = vsel %vm2086_vm1, %v8757_v14, %v3703_v35  ;;  %v2111_v8 = vsel %vm2086_vm1, %v8758_v43, %v3702_v34  ;;  %v3718_v35 = vunpack.i.h.bf16 %v3716_v41  ;;  %v8765_v34 = vld [vmem:[#allocation35_spill] sm:$0xff]  ;;  %v3658_v41 = vunpack.i.h.bf16 %v7047_v7 }
 0x25a   :  { %2649 = vmatmul.mubr.bf16.gmra.mrb[12].mxu1 %v2303_v33  ;;  %v3711_v52 = vpop.permute.xlu0 %3710  ;;  %v2176_v43 = vsel %vm2151_vm5, %v2111_v8, %v3707_v63  ;;  %v2177_v17 = vsel %vm2151_vm5, %v2112_v20, %v3708_v16  ;;  %v8771_v16 = vld [vmem:[#allocation60_spill] sm:$0xff] }
 0x25b   :  { %3456 = vmatprep.mubr.msk.bf16.mxu1 %vm2086_vm1, %v8761_v19  ;;  %v3713_v33 = vunpack.i.h.bf16 %v3711_v52  ;;  %v3712_v61 = vunpack.i.l.bf16 %v3711_v52  ;;  %v7131_v28 = vpop.permute.xlu1 %3740  ;;  %v8769_v19 = vld [vmem:[#allocation115_spill] sm:$0xff]  ;;  %v2114_v45 = vsel %vm2086_vm1, %v8771_v16, %v3718_v35  ;;  %v8779_v35 = vld [vmem:[#allocation118_spill] sm:$0xff] }
 0x25c   :  { %3930 = vrot.lane.b32.xlu0 %v8756_v27, %s4149_s2  ;;  %v8766_v27 = vld [vmem:[#allocation36_spill] sm:$0xff]  ;;  %v8770_v30 = vpack.i.bf16 %v8768_v9, %v8769_v19  ;;  %v8772_v9 = vld [vmem:[#allocation58_spill] sm:$0xff] }
 0x25d   :  { %4050 = vrot.lane.b32.xlu1 %v8764_v15, %s4149_s2  ;;  %v8767_v14 = vpack.i.bf16 %v8765_v34, %v8766_v27  ;;  %v2241_v44 = vsel %vm2216_vm6, %v2176_v43, %v3712_v61  ;;  %v2242_v42 = vsel %vm2216_vm6, %v2177_v17, %v3713_v33  ;;  %v3657_v15 = vunpack.i.l.bf16 %v7047_v7  ;;  %v8773_v33 = vld [vmem:[#allocation40_spill] sm:$0xff]  ;;  %v8774_v17 = vld [vmem:[#allocation41_spill] sm:$0xff] }
 0x25e   :  { %v3721_v52 = vpop.permute.xlu0 %3720  ;;  %v2305_v34 = vpack.c.bf16 %v2242_v42, %v2241_v44  ;;  %v3693_v27 = vunpack.i.h.bf16 %v3691_v40  ;;  %v2113_v19 = vsel %vm2086_vm1, %v8772_v9, %v3717_v22  ;;  %v3733_v61 = vunpack.i.h.bf16 %v3731_v37  ;;  %v8776_v44 = vld [vmem:[#allocation116_spill] sm:$0xff]  ;;  %v8777_v42 = vld [vmem:[#allocation117_spill] sm:$0xff]  ;;  %v8780_v22 = vld [vmem:[#allocation119_spill] sm:$0xff] }
 0x25f   :  { %v3723_v8 = vunpack.i.h.bf16 %v3721_v52  ;;  %v3722_v63 = vunpack.i.l.bf16 %v3721_v52  ;;  %v3751_v20 = vpop.permute.xlu1 %3750  ;;  %v3732_v43 = vunpack.i.l.bf16 %v3731_v37  ;;  %v8778_v52 = vpack.c.bf16 %v8776_v44, %v8777_v42  ;;  %v8782_v37 = vld [vmem:[#allocation6_spill] sm:$0xff] }
 0x260   :  { %3935 = vrot.lane.b32.xlu0 %v8767_v14, %s4151_s23  ;;  %v3692_v14 = vunpack.i.l.bf16 %v3691_v40  ;;  %v8781_v16 = vpack.i.bf16 %v8779_v35, %v8780_v22  ;;  %v2088_v9 = vsel %vm2086_vm1, %v8782_v37, %v3658_v41  ;;  %v8784_v35 = vld [vmem:[#allocation43_spill] sm:$0xff] }
 0x261   :  { %4055 = vrot.lane.b32.xlu1 %v8770_v30, %s4151_s23  ;;  %v8775_v30 = vpack.i.bf16 %v8773_v33, %v8774_v17  ;;  %v2179_v7 = vsel %vm2151_vm5, %v2114_v45, %v3723_v8  ;;  %v2178_v40 = vsel %vm2151_vm5, %v2113_v19, %v3722_v63  ;;  %v2087_v8 = vsel %vm2086_vm1, %v8481_v54, %v3657_v15  ;;  %v8787_v54 = vld [vmem:[#allocation121_spill] sm:$0xff] }
 0x262   :  { %2657 = vmatmul.mubr.bf16.gmra.mrb[16].mxu1 %v2305_v34  ;;  %v3726_v33 = vpop.permute.xlu0 %3725  ;;  %v2243_v34 = vsel %vm2216_vm6, %v2178_v40, %v3732_v43  ;;  %v2244_v45 = vsel %vm2216_vm6, %v2179_v7, %v3733_v61  ;;  %v2152_v44 = vsel %vm2151_vm5, %v2087_v8, %v3692_v14  ;;  %v2153_v42 = vsel %vm2151_vm5, %v2088_v9, %v3693_v27  ;;  %v8786_v7 = vld [vmem:[#allocation120_spill] sm:$0xff]  ;;  %v8790_v9 = vld [vmem:[#allocation45_spill] sm:$0xff]  ;;  %v8793_v8 = vld [vmem:[#allocation63_spill] sm:$0xff] }
 0x263   :  { %3457 = vmatprep.mubr.msk.bf16.mxu1 %vm2086_vm1, %v8778_v52  ;;  %v3728_v63 = vunpack.i.h.bf16 %v3726_v33  ;;  %v3727_v19 = vunpack.i.l.bf16 %v3726_v33  ;;  %v3766_v17 = vpop.permute.xlu1 %3765  ;;  %v8783_v52 = vld [vmem:[#allocation42_spill] sm:$0xff]  ;;  %v8788_v15 = vpack.i.bf16 %v8786_v7, %v8787_v54  ;;  %v8789_v27 = vld [vmem:[#allocation44_spill] sm:$0xff]  ;;  %v8800_v7 = vld [vmem:[#allocation13_spill] sm:$0xff] }
 0x264   :  { %3940 = vrot.lane.b32.xlu0 %v8775_v30, %s4150_s22  ;;  %v2307_v30 = vpack.c.bf16 %v2244_v45, %v2243_v34  ;;  %v8785_v41 = vpack.i.bf16 %v8783_v52, %v8784_v35  ;;  %v8791_v33 = vpack.i.bf16 %v8789_v27, %v8790_v9  ;;  %v8792_v34 = vld [vmem:[#allocation65_spill] sm:$0xff]  ;;  %v3743_v52 = vunpack.i.h.bf16 %v7131_v28  ;;  %v8801_v54 = vld [vmem:[#allocation7_spill] sm:$0xff] }
 0x265   :  { %4060 = vrot.lane.b32.xlu1 %v8781_v16, %s4150_s22  ;;  %v2217_v43 = vsel %vm2216_vm6, %v2152_v44, %v3727_v19  ;;  %v2218_v61 = vsel %vm2216_vm6, %v2153_v42, %v3728_v63  ;;  %v8794_v19 = vld [vmem:[#allocation46_spill] sm:$0xff]  ;;  %v8795_v44 = vld [vmem:[#allocation8_spill] sm:$0xff]  ;;  %v3742_v35 = vunpack.i.l.bf16 %v7131_v28  ;;  %v3752_v27 = vunpack.i.l.bf16 %v3751_v20  ;;  %v8803_v9 = vld [vmem:[#allocation47_spill] sm:$0xff] }
 0x266   :  { %v2281_v40 = vpack.c.bf16 %v2218_v61, %v2217_v43  ;;  %v3736_v22 = vpop.permute.xlu0 %3735  ;;  %v8796_v42 = vpack.c.bf16 %v8794_v19, %v8795_v44  ;;  %v8798_v43 = vld [vmem:[#allocation123_spill] sm:$0xff]  ;;  %v8804_v28 = vld [vmem:[#allocation49_spill] sm:$0xff] }
 0x267   :  { %v3738_v16 = vunpack.i.h.bf16 %v3736_v22  ;;  %v3737_v14 = vunpack.i.l.bf16 %v3736_v22  ;;  %v7183_v37 = vpop.permute.xlu1 %3775 }
 0x268   :  { %3945 = vrot.lane.b32.xlu0 %v8785_v41, %s4149_s2  ;;  %2561 = vmatmul.mubr.bf16.vlgmr.msra.gmra.mrb[64].mxu0 %v2281_v40  ;;  %v8797_v41 = vld [vmem:[#allocation122_spill] sm:$0xff] }
 0x269   :  { %4065 = vrot.lane.b32.xlu1 %v8788_v15, %s4149_s2  ;;  %v2116_v45 = vsel %vm2086_vm1, %v8792_v34, %v3738_v16  ;;  %v2115_v63 = vsel %vm2086_vm1, %v8793_v8, %v3737_v14  ;;  %3445 = vmatprep.mubr.msk.bf16.mxu0 %vm2086_vm1, %v8796_v42  ;;  %v8799_v61 = vpack.c.bf16 %v8797_v41, %v8798_v43  ;;  %v3753_v14 = vunpack.i.h.bf16 %v3751_v20  ;;  %v8806_v42 = vld [vmem:[#allocation4_spill] sm:$0xff] }
 0x26a   :  { %2665 = vmatmul.mubr.bf16.gmra.mrb[20].mxu1 %v2307_v30  ;;  %v8802_v15 = vpack.i.bf16 %v8800_v7, %v8801_v54  ;;  %v3746_v30 = vpop.permute.xlu0 %3745  ;;  %v2180_v34 = vsel %vm2151_vm5, %v2115_v63, %v3742_v35  ;;  %v2181_v8 = vsel %vm2151_vm5, %v2116_v45, %v3743_v52  ;;  %v8807_v41 = vld [vmem:[#allocation124_spill] sm:$0xff]  ;;  %v8810_v63 = vld [vmem:[#allocation62_spill] sm:$0xff]  ;;  %v3768_v52 = vunpack.i.h.bf16 %v3766_v17 }
 0x26b   :  { %3458 = vmatprep.mubr.msk.bf16.mxu1 %vm2086_vm1, %v8799_v61  ;;  %v3748_v40 = vunpack.i.h.bf16 %v3746_v30  ;;  %v3747_v22 = vunpack.i.l.bf16 %v3746_v30  ;;  %v7207_v16 = vpop.permute.xlu1 %3785  ;;  %v8808_v43 = vpack.i.bf16 %v8806_v42, %v8807_v41  ;;  %v8809_v30 = vld [vmem:[#allocation64_spill] sm:$0xff]  ;;  %v2117_v45 = vsel %vm2086_vm1, %v8810_v63, %v3752_v27 }
 0x26c   :  { %3950 = vrot.lane.b32.xlu0 %v8791_v33, %s4151_s23  ;;  %v8805_v33 = vpack.i.bf16 %v8803_v9, %v8804_v28  ;;  %v2118_v9 = vsel %vm2086_vm1, %v8809_v30, %v3753_v14  ;;  %v3767_v35 = vunpack.i.l.bf16 %v3766_v17  ;;  %v8817_v14 = vld [vmem:[#allocation127_spill] sm:$0xff]  ;;  %v8818_v27 = vld [vmem:[#allocation128_spill] sm:$0xff] }
 0x26d   :  { %4070 = vrot.lane.b32.xlu1 %v8802_v15, %s4151_s23  ;;  %v2245_v19 = vsel %vm2216_vm6, %v2180_v34, %v3747_v22  ;;  %v2246_v44 = vsel %vm2216_vm6, %v2181_v8, %v3748_v40  ;;  %v8811_v40 = vld [vmem:[#allocation50_spill] sm:$0xff]  ;;  %v8812_v22 = vld [vmem:[#allocation39_spill] sm:$0xff]  ;;  %v8814_v8 = vld [vmem:[#allocation125_spill] sm:$0xff]  ;;  %v8819_v42 = vpack.i.bf16 %v8817_v14, %v8818_v27 }
 0x26e   :  { %v3756_v61 = vpop.permute.xlu0 %3755  ;;  %v2309_v20 = vpack.c.bf16 %v2246_v44, %v2245_v19  ;;  %v8813_v28 = vpack.i.bf16 %v8811_v40, %v8812_v22  ;;  %v8815_v19 = vld [vmem:[#allocation126_spill] sm:$0xff] }
 0x26f   :  { %v3758_v7 = vunpack.i.h.bf16 %v3756_v61  ;;  %v3757_v54 = vunpack.i.l.bf16 %v3756_v61  ;;  %v3801_v15 = vpop.permute.xlu1 %3800  ;;  %v8816_v44 = vpack.c.bf16 %v8814_v8, %v8815_v19  ;;  %v8827_v8 = vld [vmem:[#allocation38_spill] sm:$0xff]  ;;  %v8828_v19 = vld [vmem:[#allocation69_spill] sm:$0xff] }
 0x270   :  { %3955 = vrot.lane.b32.xlu0 %v8805_v33, %s4150_s22  ;;  %v8830_v14 = vld [vmem:[#allocation130_spill] sm:$0xff] }
 0x271   :  { %4075 = vrot.lane.b32.xlu1 %v8808_v43, %s4150_s22  ;;  %v2183_v33 = vsel %vm2151_vm5, %v2118_v9, %v3758_v7  ;;  %v2182_v34 = vsel %vm2151_vm5, %v2117_v45, %v3757_v54  ;;  %v8821_v54 = vld [vmem:[#allocation129_spill] sm:$0xff]  ;;  %v8823_v9 = vpack.i.bf16 %v6451_v49, %v6465_v56  ;;  %v3778_v49 = vunpack.i.h.bf16 %v7183_v37 }
 0x272   :  { %2673 = vmatmul.mubr.bf16.gmra.mrb[24].mxu1 %v2309_v20  ;;  %v7239_v17 = vpop.permute.xlu0 %3760  ;;  %v2247_v41 = vsel %vm2216_vm6, %v2182_v34, %v3767_v35  ;;  %v2248_v43 = vsel %vm2216_vm6, %v2183_v33, %v3768_v52  ;;  %v8820_v20 = vld [vmem:[#allocation86_spill] sm:$0xff]  ;;  %v8824_v52 = vld [vmem:[#allocation51_spill] sm:$0xff]  ;;  %v3777_v56 = vunpack.i.l.bf16 %v7183_v37  ;;  %v8833_v37 = vld [vmem:[#allocation132_spill] sm:$0xff] }
 0x273   :  { %3459 = vmatprep.mubr.msk.bf16.mxu1 %vm2086_vm1, %v8816_v44  ;;  %v7243_v61 = vpop.permute.xlu1 %3810  ;;  %v2311_v7 = vpack.c.bf16 %v2248_v43, %v2247_v41  ;;  %v8822_v30 = vpack.i.bf16 %v8820_v20, %v8821_v54  ;;  %v8825_v35 = vpack.i.bf16 %v6473_v12, %v8824_v52  ;;  %v8826_v33 = vld [vmem:[#allocation67_spill] sm:$0xff]  ;;  %v8829_v44 = vpack.c.bf16 %v8827_v8, %v8828_v19  ;;  %v8834_v54 = vld [vmem:[#allocation133_spill] sm:$0xff] }
 0x274   :  { %3960 = vrot.lane.b32.xlu0 %v8813_v28, %s4149_s2  ;;  %v8831_v12 = vld [vmem:[#allocation131_spill] sm:$0xff]  ;;  %v3787_v20 = vunpack.i.l.bf16 %v7207_v16 }
 0x275   :  { %4080 = vrot.lane.b32.xlu1 %v8819_v42, %s4150_s22  ;;  %v8832_v27 = vpack.i.bf16 %v8830_v14, %v8831_v12  ;;  %v8836_v52 = vld [vmem:[#allocation135_spill] sm:$0xff]  ;;  %v8839_v12 = vld [vmem:[#allocation68_spill] sm:$0xff] }
 0x276   :  { %v3771_v63 = vpop.permute.xlu0 %3770 }
 0x277   :  { %v3773_v45 = vunpack.i.h.bf16 %v3771_v63  ;;  %v3772_v40 = vunpack.i.l.bf16 %v3771_v63  ;;  %v7253_v22 = vpop.permute.xlu1 %3820 }
 0x278   :  { %3965 = vrot.lane.b32.xlu0 %v8822_v30, %s4151_s23  ;;  %v8835_v30 = vpack.i.bf16 %v8833_v37, %v8834_v54 }
 0x279   :  { %4085 = vrot.lane.b32.xlu1 %v8823_v9, %s4149_s2  ;;  %v2120_v28 = vsel %vm2086_vm1, %v8528_v21, %v3773_v45  ;;  %v2119_v34 = vsel %vm2086_vm1, %v8826_v33, %v3772_v40 }
 0x27a   :  { %2681 = vmatmul.mubr.bf16.gmra.mrb[28].mxu1 %v2311_v7  ;;  %v3781_v42 = vpop.permute.xlu0 %3780  ;;  %v3788_v7 = vunpack.i.h.bf16 %v7207_v16  ;;  %v2184_v9 = vsel %vm2151_vm5, %v2119_v34, %v3777_v56  ;;  %v2185_v63 = vsel %vm2151_vm5, %v2120_v28, %v3778_v49  ;;  %v8840_v56 = vld [vmem:[#allocation66_spill] sm:$0xff]  ;;  %v3803_v49 = vunpack.i.h.bf16 %v3801_v15 }
 0x27b   :  { %3460 = vmatprep.mubr.msk.bf16.mxu1 %vm2086_vm1, %v8829_v44  ;;  %v3783_v21 = vunpack.i.h.bf16 %v3781_v42  ;;  %v3782_v41 = vunpack.i.l.bf16 %v3781_v42  ;;  %v7273_v43 = vpop.permute.xlu1 %3835  ;;  %v2121_v28 = vsel %vm2086_vm1, %v8840_v56, %v3787_v20  ;;  %v8841_v42 = vld [vmem:[#allocation87_spill] sm:$0xff] }
 0x27c   :  { %3970 = vrot.lane.b32.xlu0 %v8825_v35, %s4150_s22  ;;  %v8837_v35 = vld [vmem:[#allocation134_spill] sm:$0xff]  ;;  %v2122_v34 = vsel %vm2086_vm1, %v8839_v12, %v3788_v7  ;;  %v8847_v7 = vpack.i.bf16 %v6617_v58, %v6607_v29  ;;  %v8849_v12 = vld [vmem:[#allocation71_spill] sm:$0xff]  ;;  %v3813_v29 = vunpack.i.h.bf16 %v7243_v61 }
 0x27d   :  { %4090 = vrot.lane.b32.xlu1 %v8832_v27, %s4151_s23  ;;  %v2249_v45 = vsel %vm2216_vm6, %v2184_v9, %v3782_v41  ;;  %v2250_v40 = vsel %vm2216_vm6, %v2185_v63, %v3783_v21  ;;  %v8838_v33 = vpack.i.bf16 %v8836_v52, %v8837_v35  ;;  %v3802_v27 = vunpack.i.l.bf16 %v3801_v15  ;;  %v8842_v21 = vld [vmem:[#allocation136_spill] sm:$0xff]  ;;  %v8845_v9 = vld [vmem:[#allocation138_spill] sm:$0xff]  ;;  %v8850_v56 = vld [vmem:[#allocation139_spill] sm:$0xff] }
 0x27e   :  { %v3791_v8 = vpop.permute.xlu0 %3790  ;;  %v2313_v16 = vpack.c.bf16 %v2250_v40, %v2249_v45  ;;  %v8843_v41 = vpack.i.bf16 %v8841_v42, %v8842_v21  ;;  %v3822_v42 = vunpack.i.l.bf16 %v7253_v22 }
 0x27f   :  { %v3793_v19 = vunpack.i.h.bf16 %v3791_v8  ;;  %v3792_v44 = vunpack.i.l.bf16 %v3791_v8  ;;  %v7289_v14 = vpop.permute.xlu1 %3845 }
 0x280   :  { %3975 = vrot.lane.b32.xlu0 %v8835_v30, %s4149_s2  ;;  %v8844_v30 = vld [vmem:[#allocation137_spill] sm:$0xff] }
 0x281   :  { %4095 = vrot.lane.b32.xlu1 %v8838_v33, %s4149_s2  ;;  %v2187_v37 = vsel %vm2151_vm5, %v2122_v34, %v3793_v19  ;;  %v2186_v54 = vsel %vm2151_vm5, %v2121_v28, %v3792_v44  ;;  %v8846_v63 = vpack.c.bf16 %v8844_v30, %v8845_v9  ;;  %v8848_v19 = vld [vmem:[#allocation73_spill] sm:$0xff]  ;;  %v3812_v34 = vunpack.i.l.bf16 %v7243_v61 }
 0x282   :  { %2689 = vmatmul.mubr.bf16.gmra.mrb[32].mxu1 %v2313_v16  ;;  %v3796_v15 = vpop.permute.xlu0 %3795  ;;  %v2251_v20 = vsel %vm2216_vm6, %v2186_v54, %v3802_v27  ;;  %v2252_v45 = vsel %vm2216_vm6, %v2187_v37, %v3803_v49  ;;  %v8851_v28 = vpack.c.bf16 %v6625_v26, %v8850_v56  ;;  %v3823_v27 = vunpack.i.h.bf16 %v7253_v22  ;;  %v8854_v56 = vld [vmem:[#allocation5_spill] sm:$0xff] }
 0x283   :  { %3461 = vmatprep.mubr.msk.bf16.mxu1 %vm2086_vm1, %v8846_v63  ;;  %v7311_v40 = vpop.permute.xlu1 %3855  ;;  %v2315_v52 = vpack.c.bf16 %v2252_v45, %v2251_v20  ;;  %v3763_v26 = vunpack.i.h.bf16 %v7239_v17  ;;  %v3762_v63 = vunpack.i.l.bf16 %v7239_v17  ;;  %v8852_v45 = vld [vmem:[#allocation72_spill] sm:$0xff] }
 0x284   :  { %4100 = vrot.lane.b32.xlu0 %v8843_v41, %s4151_s23  ;;  %v2126_v22 = vsel %vm2086_vm1, %v8852_v45, %v3823_v27 }
 0x285   :  { %4105 = vrot.lane.b32.xlu1 %v8847_v7, %s4151_s23 }
 0x286   :  { %v3806_v35 = vpop.permute.xlu0 %3805 }
 0x287   :  { %v3808_v33 = vunpack.i.h.bf16 %v3806_v35  ;;  %v3807_v8 = vunpack.i.l.bf16 %v3806_v35  ;;  %v7313_v16 = vpop.permute.xlu1 %3870 }
 0x289   :  { %v2124_v44 = vsel %vm2086_vm1, %v8848_v19, %v3808_v33  ;;  %v2123_v58 = vsel %vm2086_vm1, %v8849_v12, %v3807_v8  ;;  %v3837_v12 = vunpack.i.l.bf16 %v7273_v43 }
 0x28a   :  { %2697 = vmatmul.mubr.bf16.gmra.mrb[36].mxu1 %v2315_v52  ;;  %v3816_v49 = vpop.permute.xlu0 %3815  ;;  %v2188_v54 = vsel %vm2151_vm5, %v2123_v58, %v3812_v34  ;;  %v2189_v30 = vsel %vm2151_vm5, %v2124_v44, %v3813_v29  ;;  %v8853_v52 = vld [vmem:[#allocation70_spill] sm:$0xff]  ;;  %v3838_v44 = vunpack.i.h.bf16 %v7273_v43  ;;  %v3798_v58 = vunpack.i.h.bf16 %v3796_v15 }
 0x28b   :  { %3462 = vmatprep.mubr.msk.bf16.mxu1 %vm2086_vm1, %v8851_v28  ;;  %v3818_v21 = vunpack.i.h.bf16 %v3816_v49  ;;  %v3817_v41 = vunpack.i.l.bf16 %v3816_v49  ;;  %v7327_v37 = vpop.permute.xlu1 %3880  ;;  %v2125_v35 = vsel %vm2086_vm1, %v8853_v52, %v3822_v42  ;;  %v3797_v29 = vunpack.i.l.bf16 %v3796_v15  ;;  %v8855_v49 = vld [vmem:[#allocation140_spill] sm:$0xff] }
 0x28c   :  { %v2090_v28 = vsel %vm2086_vm1, %v8854_v56, %v3763_v26  ;;  %v8856_v27 = vpack.c.bf16 %v6649_v57, %v8855_v49  ;;  %v3858_v56 = vunpack.i.h.bf16 %v7311_v40 }
 0x28d   :  { %v2253_v61 = vsel %vm2216_vm6, %v2188_v54, %v3817_v41  ;;  %v2254_v9 = vsel %vm2216_vm6, %v2189_v30, %v3818_v21  ;;  %v8857_v41 = vld [vmem:[#allocation3_spill] sm:$0xff] }
 0x28e   :  { %v3826_v7 = vpop.permute.xlu0 %3825  ;;  %v2317_v20 = vpack.c.bf16 %v2254_v9, %v2253_v61  ;;  %v2089_v15 = vsel %vm2086_vm1, %v8857_v41, %v3762_v63 }
 0x28f   :  { %v3828_v33 = vunpack.i.h.bf16 %v3826_v7  ;;  %v3827_v8 = vunpack.i.l.bf16 %v3826_v7  ;;  %v7339_v19 = vpop.permute.xlu1 %3890  ;;  %v2154_v26 = vsel %vm2151_vm5, %v2089_v15, %v3797_v29  ;;  %v2155_v7 = vsel %vm2151_vm5, %v2090_v28, %v3798_v58  ;;  %v8860_v29 = vld [vmem:[#allocation142_spill] sm:$0xff] }
 0x290   :  { %v3857_v28 = vunpack.i.l.bf16 %v7311_v40 }
 0x291   :  { %v2191_v17 = vsel %vm2151_vm5, %v2126_v22, %v3828_v33  ;;  %v2190_v34 = vsel %vm2151_vm5, %v2125_v35, %v3827_v8  ;;  %v8858_v8 = vld [vmem:[#allocation75_spill] sm:$0xff] }
 0x292   :  { %2705 = vmatmul.mubr.bf16.gmra.mrb[40].mxu1 %v2317_v20  ;;  %v3831_v42 = vpop.permute.xlu0 %3830  ;;  %v2255_v21 = vsel %vm2216_vm6, %v2190_v34, %v3837_v12  ;;  %v2256_v43 = vsel %vm2216_vm6, %v2191_v17, %v3838_v44  ;;  %v8859_v12 = vld [vmem:[#allocation141_spill] sm:$0xff]  ;;  %v3848_v17 = vunpack.i.h.bf16 %v7289_v14  ;;  %v3847_v34 = vunpack.i.l.bf16 %v7289_v14 }
 0x293   :  { %3463 = vmatprep.mubr.msk.bf16.mxu1 %vm2086_vm1, %v8856_v27  ;;  %v3833_v54 = vunpack.i.h.bf16 %v3831_v42  ;;  %v3832_v30 = vunpack.i.l.bf16 %v3831_v42  ;;  %v7355_v61 = vpop.permute.xlu1 %3980  ;;  %v2319_v9 = vpack.c.bf16 %v2256_v43, %v2255_v21  ;;  %v8861_v58 = vpack.c.bf16 %v8859_v12, %v8860_v29 }
 0x295   :  { %v2219_v57 = vsel %vm2216_vm6, %v2154_v26, %v3832_v30  ;;  %v2220_v20 = vsel %vm2216_vm6, %v2155_v7, %v3833_v54 }
 0x296   :  { %v3841_v45 = vpop.permute.xlu0 %3840  ;;  %v2283_v22 = vpack.c.bf16 %v2220_v20, %v2219_v57  ;;  %v3873_v20 = vunpack.i.h.bf16 %v7313_v16 }
 0x297   :  { %v3843_v52 = vunpack.i.h.bf16 %v3841_v45  ;;  %v3842_v35 = vunpack.i.l.bf16 %v3841_v45  ;;  %v3986_v33 = vpop.permute.xlu1 %3985  ;;  %v3872_v45 = vunpack.i.l.bf16 %v7313_v16  ;;  %v8864_v16 = vld [vmem:[#allocation77_spill] sm:$0xff] }
 0x298   :  { %2569 = vmatmul.mubr.bf16.gmra.mrb[68].mxu0 %v2283_v22  ;;  %v3988_v43 = vunpack.i.h.bf16 %v3986_v33  ;;  %v3987_v41 = vunpack.i.l.bf16 %v3986_v33 }
 0x299   :  { %v2128_v63 = vsel %vm2086_vm1, %v8599_v10, %v3843_v52  ;;  %v2127_v44 = vsel %vm2086_vm1, %v8858_v8, %v3842_v35  ;;  %3446 = vmatprep.mubr.msk.bf16.mxu0 %vm2086_vm1, %v8861_v58  ;;  %v8862_v10 = vpack.c.bf16 %v6687_v5, %v6697_v24  ;;  %v2130_v5 = vsel %vm2086_vm1, %v8604_v2, %v3858_v56  ;;  %v8863_v24 = vld [vmem:[#allocation74_spill] sm:$0xff] }
 0x29a   :  { %2713 = vmatmul.mubr.bf16.gmra.mrb[44].mxu1 %v2319_v9  ;;  %v3851_v49 = vpop.permute.xlu0 %3850  ;;  %v2192_v15 = vsel %vm2151_vm5, %v2127_v44, %v3847_v34  ;;  %v2193_v54 = vsel %vm2151_vm5, %v2128_v63, %v3848_v17  ;;  %v2129_v26 = vsel %vm2086_vm1, %v8863_v24, %v3857_v28  ;;  %v2136_v33 = vsel %vm2086_vm1, %v8625_v23, %v3988_v43  ;;  %v8865_v17 = vld [vmem:[#allocation76_spill] sm:$0xff] }
 0x29b   :  { %3464 = vmatprep.mubr.msk.bf16.mxu1 %vm2086_vm1, %v8862_v10  ;;  %v3853_v27 = vunpack.i.h.bf16 %v3851_v49  ;;  %v3852_v42 = vunpack.i.l.bf16 %v3851_v49  ;;  %v3991_v21 = vpop.permute.xlu1 %3990  ;;  %v2135_v63 = vsel %vm2086_vm1, %v5677_v48, %v3987_v41  ;;  %v8866_v34 = vpack.c.bf16 %v8864_v16, %v8865_v17 }
 0x29c   :  { %v3993_v14 = vunpack.i.h.bf16 %v3991_v21  ;;  %v3992_v30 = vunpack.i.l.bf16 %v3991_v21 }
 0x29d   :  { %v2257_v9 = vsel %vm2216_vm6, %v2192_v15, %v3852_v42  ;;  %v2258_v40 = vsel %vm2216_vm6, %v2193_v54, %v3853_v27 }
 0x29e   :  { %v3861_v7 = vpop.permute.xlu0 %3860  ;;  %v2321_v57 = vpack.c.bf16 %v2258_v40, %v2257_v9  ;;  %v2200_v44 = vsel %vm2151_vm5, %v2135_v63, %v3992_v30  ;;  %v2201_v12 = vsel %vm2151_vm5, %v2136_v33, %v3993_v14  ;;  %v8867_v9 = vld [vmem:[#allocation79_spill] sm:$0xff] }
 0x29f   :  { %v3863_v22 = vunpack.i.h.bf16 %v3861_v7  ;;  %v3862_v52 = vunpack.i.l.bf16 %v3861_v7  ;;  %v3996_v35 = vpop.permute.xlu1 %3995  ;;  %v3882_v7 = vunpack.i.l.bf16 %v7327_v37 }
 0x2a0   :  { %v3998_v8 = vunpack.i.h.bf16 %v3996_v35  ;;  %v3997_v2 = vunpack.i.l.bf16 %v3996_v35 }
 0x2a1   :  { %v2195_v29 = vsel %vm2151_vm5, %v2130_v5, %v3863_v22  ;;  %v2194_v58 = vsel %vm2151_vm5, %v2129_v26, %v3862_v52  ;;  %v3883_v26 = vunpack.i.h.bf16 %v7327_v37  ;;  %v8869_v22 = vld [vmem:[#allocation144_spill] sm:$0xff] }
 0x2a2   :  { %2721 = vmatmul.mubr.bf16.gmra.mrb[48].mxu1 %v2321_v57  ;;  %v7399_v23 = vpop.permute.xlu0 %3865  ;;  %v2259_v48 = vsel %vm2216_vm6, %v2194_v58, %v3872_v45  ;;  %v2260_v56 = vsel %vm2216_vm6, %v2195_v29, %v3873_v20  ;;  %v7404_v28 = vsel %vm2216_vm6, %v2200_v44, %v3997_v2  ;;  %v7407_v10 = vsel %vm2216_vm6, %v2201_v12, %v3998_v8  ;;  %v8868_v45 = vld [vmem:[#allocation143_spill] sm:$0xff] }
 0x2a3   :  { %3465 = vmatprep.mubr.msk.bf16.mxu1 %vm2086_vm1, %v8866_v34  ;;  %v4001_v49 = vpop.permute.xlu1 %4000  ;;  %v2323_v27 = vpack.c.bf16 %v2260_v56, %v2259_v48  ;;  %v2329_v42 = vpack.c.bf16 %v7407_v10, %v7404_v28  ;;  %v3893_v57 = vunpack.i.h.bf16 %v7339_v19  ;;  %v3892_v20 = vunpack.i.l.bf16 %v7339_v19 }
 0x2a4   :  { %v4003_v43 = vunpack.i.h.bf16 %v4001_v49  ;;  %v4002_v41 = vunpack.i.l.bf16 %v4001_v49  ;;  %v8870_v52 = vpack.c.bf16 %v8868_v45, %v8869_v22 }
 0x2a6   :  { %v3876_v21 = vpop.permute.xlu0 %3875  ;;  %v2138_v35 = vsel %vm2086_vm1, %v5683_v46, %v4003_v43  ;;  %v2137_v33 = vsel %vm2086_vm1, %v5653_v59, %v4002_v41  ;;  %v8871_v43 = vld [vmem:[#allocation80_spill] sm:$0xff] }
 0x2a7   :  { %v3878_v15 = vunpack.i.h.bf16 %v3876_v21  ;;  %v3877_v54 = vunpack.i.l.bf16 %v3876_v21  ;;  %v4006_v14 = vpop.permute.xlu1 %4005  ;;  %v2134_v41 = vsel %vm2086_vm1, %v8871_v43, %v3893_v57 }
 0x2a8   :  { %v4008_v5 = vunpack.i.h.bf16 %v4006_v14  ;;  %v4007_v24 = vunpack.i.l.bf16 %v4006_v14  ;;  %v3983_v14 = vunpack.i.h.bf16 %v7355_v61 }
 0x2a9   :  { %v2132_v30 = vsel %vm2086_vm1, %v5573_v62, %v3878_v15  ;;  %v2131_v40 = vsel %vm2086_vm1, %v8867_v9, %v3877_v54  ;;  %v8872_v15 = vld [vmem:[#allocation78_spill] sm:$0xff] }
 0x2aa   :  { %2729 = vmatmul.mubr.bf16.gmra.mrb[52].mxu1 %v2323_v27  ;;  %v3886_v62 = vpop.permute.xlu0 %3885  ;;  %v2196_v12 = vsel %vm2151_vm5, %v2131_v40, %v3882_v7  ;;  %v2197_v19 = vsel %vm2151_vm5, %v2132_v30, %v3883_v26  ;;  %v2202_v29 = vsel %vm2151_vm5, %v2137_v33, %v4007_v24  ;;  %v2203_v58 = vsel %vm2151_vm5, %v2138_v35, %v4008_v5  ;;  %v8873_v26 = vld [vmem:[#allocation14_spill] sm:$0xff] }
 0x2ab   :  { %3466 = vmatprep.mubr.msk.bf16.mxu1 %vm2086_vm1, %v8870_v52  ;;  %v3888_v63 = vunpack.i.h.bf16 %v3886_v62  ;;  %v3887_v8 = vunpack.i.l.bf16 %v3886_v62  ;;  %v4011_v2 = vpop.permute.xlu1 %4010  ;;  %v2133_v54 = vsel %vm2086_vm1, %v8872_v15, %v3892_v20  ;;  %v3982_v30 = vunpack.i.l.bf16 %v7355_v61 }
 0x2ac   :  { %v4013_v37 = vunpack.i.h.bf16 %v4011_v2  ;;  %v4012_v44 = vunpack.i.l.bf16 %v4011_v2  ;;  %v3868_v5 = vunpack.i.h.bf16 %v7399_v23  ;;  %v3867_v24 = vunpack.i.l.bf16 %v7399_v23  ;;  %v8875_v2 = vld [vmem:[#allocation12_spill] sm:$0xff] }
 0x2ad   :  { %v2261_v16 = vsel %vm2216_vm6, %v2196_v12, %v3887_v8  ;;  %v2262_v46 = vsel %vm2216_vm6, %v2197_v19, %v3888_v63  ;;  %v8874_v7 = vpack.c.bf16 %v6747_v38, %v8873_v26  ;;  %v8877_v12 = vld [vmem:[#allocation91_spill] sm:$0xff] }
 0x2ae   :  { %v2325_v34 = vpack.c.bf16 %v2262_v46, %v2261_v16  ;;  %v7434_v59 = vsel %vm2216_vm6, %v2202_v29, %v4012_v44  ;;  %v7437_v48 = vsel %vm2216_vm6, %v2203_v58, %v4013_v37  ;;  %v2092_v23 = vsel %vm2086_vm1, %v8875_v2, %v3868_v5  ;;  %v8876_v37 = vld [vmem:[#allocation10_spill] sm:$0xff]  ;;  %v8878_v29 = vld [vmem:[#allocation89_spill] sm:$0xff] }
 0x2af   :  { %v2331_v21 = vpack.c.bf16 %v7437_v48, %v7434_v59  ;;  %v2091_v38 = vsel %vm2086_vm1, %v8876_v37, %v3867_v24 }
 0x2b0   :  { %v3896_v17 = vpop.permute.xlu0 %3895 }
 0x2b1   :  { %v3898_v56 = vunpack.i.h.bf16 %v3896_v17  ;;  %v3897_v49 = vunpack.i.l.bf16 %v3896_v17 }
 0x2b2   :  { %v4016_v27 = vpop.permute.xlu1 %4015  ;;  %2737 = vmatmul.mubr.bf16.gmra.mrb[56].mxu1 %v2325_v34 }
 0x2b3   :  { %v2199_v9 = vsel %vm2151_vm5, %v2134_v41, %v3898_v56  ;;  %v2198_v40 = vsel %vm2151_vm5, %v2133_v54, %v3897_v49  ;;  %3467 = vmatprep.mubr.msk.bf16.mxu1 %vm2086_vm1, %v8874_v7  ;;  %v4018_v61 = vunpack.i.h.bf16 %v4016_v27  ;;  %v4017_v22 = vunpack.i.l.bf16 %v4016_v27 }
 0x2b4   :  { %v2263_v20 = vsel %vm2216_vm6, %v2198_v40, %v3982_v30  ;;  %v2264_v45 = vsel %vm2216_vm6, %v2199_v9, %v3983_v14  ;;  %v8879_v14 = vld [vmem:[#allocation15_spill] sm:$0xff]  ;;  %v8880_v30 = vld [vmem:[#allocation85_spill] sm:$0xff] }
 0x2b5   :  { %v2327_v62 = vpack.c.bf16 %v2264_v45, %v2263_v20  ;;  %v2140_v19 = vsel %vm2086_vm1, %v8877_v12, %v4018_v61  ;;  %v2139_v58 = vsel %vm2086_vm1, %v8878_v29, %v4017_v22  ;;  %v8881_v9 = vpack.c.bf16 %v8879_v14, %v8880_v30  ;;  %v8882_v20 = vld [vmem:[#allocation145_spill] sm:$0xff]  ;;  %v8883_v45 = vld [vmem:[#allocation146_spill] sm:$0xff]  ;;  %v8887_v29 = vld [vmem:[#allocation147_spill] sm:$0xff] }
 0x2b6   :  { %v3901_v57 = vpop.permute.xlu0 %3900  ;;  %v8884_v61 = vpack.c.bf16 %v8882_v20, %v8883_v45  ;;  %v8886_v12 = vld [vmem:[#allocation9_spill] sm:$0xff] }
 0x2b7   :  { %v4021_v52 = vpop.permute.xlu1 %4020  ;;  %v3903_v35 = vunpack.i.h.bf16 %v3901_v57  ;;  %v3902_v33 = vunpack.i.l.bf16 %v3901_v57 }
 0x2b8   :  { %v4023_v63 = vunpack.i.h.bf16 %v4021_v52  ;;  %v4022_v8 = vunpack.i.l.bf16 %v4021_v52 }
 0x2b9   :  { %v2156_v34 = vsel %vm2151_vm5, %v2091_v38, %v3902_v33  ;;  %v2157_v56 = vsel %vm2151_vm5, %v2092_v23, %v3903_v35  ;;  %v8885_v38 = vld [vmem:[#allocation11_spill] sm:$0xff] }
 0x2ba   :  { %v3906_v44 = vpop.permute.xlu0 %3905  ;;  %v2204_v43 = vsel %vm2151_vm5, %v2139_v58, %v4022_v8  ;;  %v2205_v41 = vsel %vm2151_vm5, %v2140_v19, %v4023_v63  ;;  %2745 = vmatmul.mubr.bf16.gmra.mrb[60].mxu1 %v2327_v62  ;;  %v8888_v58 = vld [vmem:[#allocation148_spill] sm:$0xff] }
 0x2bb   :  { %v3908_v16 = vunpack.i.h.bf16 %v3906_v44  ;;  %v3907_v46 = vunpack.i.l.bf16 %v3906_v44  ;;  %v4026_v17 = vpop.permute.xlu1 %4025  ;;  %3468 = vmatprep.mubr.msk.bf16.mxu1 %vm2086_vm1, %v8881_v9 }
 0x2bc   :  { %v4028_v49 = vunpack.i.h.bf16 %v4026_v17  ;;  %v4027_v27 = vunpack.i.l.bf16 %v4026_v17  ;;  %v8890_v17 = vld [vmem:[#allocation90_spill] sm:$0xff] }
 0x2bd   :  { %v2221_v15 = vsel %vm2216_vm6, %v2156_v34, %v3907_v46  ;;  %v2222_v54 = vsel %vm2216_vm6, %v2157_v56, %v3908_v16  ;;  %v8889_v16 = vpack.c.bf16 %v8887_v29, %v8888_v58  ;;  %v8891_v56 = vld [vmem:[#allocation88_spill] sm:$0xff] }
 0x2be   :  { %v3911_v40 = vpop.permute.xlu0 %3910  ;;  %v2285_v5 = vpack.c.bf16 %v2222_v54, %v2221_v15  ;;  %v7476_v24 = vsel %vm2216_vm6, %v2204_v43, %v4027_v27  ;;  %v7479_v26 = vsel %vm2216_vm6, %v2205_v41, %v4028_v49 }
 0x2bf   :  { %v4031_v7 = vpop.permute.xlu1 %4030  ;;  %v2333_v57 = vpack.c.bf16 %v7479_v26, %v7476_v24  ;;  %v3913_v22 = vunpack.i.h.bf16 %v3911_v40  ;;  %v3912_v52 = vunpack.i.l.bf16 %v3911_v40  ;;  %v8900_v24 = vld [vmem:[#allocation93_spill] sm:$0xff]  ;;  %v8901_v26 = vld [vmem:[#allocation94_spill] sm:$0xff] }
 0x2c0   :  { %2577 = vmatmul.mubr.bf16.gmra.mrb[72].mxu0 %v2285_v5  ;;  %v4033_v35 = vunpack.i.h.bf16 %v4031_v7  ;;  %v4032_v33 = vunpack.i.l.bf16 %v4031_v7 }
 0x2c1   :  { %3447 = vmatprep.mubr.msk.bf16.mxu0 %vm2086_vm1, %v8884_v61  ;;  %v2094_v44 = vsel %vm2086_vm1, %v8885_v38, %v3913_v22  ;;  %v2093_v19 = vsel %vm2086_vm1, %v8886_v12, %v3912_v52  ;;  %v8892_v22 = vld [vmem:[#allocation149_spill] sm:$0xff]  ;;  %v8893_v52 = vld [vmem:[#allocation150_spill] sm:$0xff] }
 0x2c2   :  { %v3916_v62 = vpop.permute.xlu0 %3915  ;;  %2753 = vmatmul.mubr.bf16.gmra.mrb[64].mxu1 %v2329_v42  ;;  %v2142_v34 = vsel %vm2086_vm1, %v8890_v17, %v4033_v35  ;;  %v2141_v49 = vsel %vm2086_vm1, %v8891_v56, %v4032_v33 }
 0x2c3   :  { %v4036_v63 = vpop.permute.xlu1 %4035  ;;  %v3918_v8 = vunpack.i.h.bf16 %v3916_v62  ;;  %v3917_v2 = vunpack.i.l.bf16 %v3916_v62  ;;  %3469 = vmatprep.mubr.msk.bf16.mxu1 %vm2086_vm1, %v8889_v16  ;;  %v8894_v62 = vpack.c.bf16 %v8892_v22, %v8893_v52 }
 0x2c4   :  { %v4038_v23 = vunpack.i.h.bf16 %v4036_v63  ;;  %v4037_v37 = vunpack.i.l.bf16 %v4036_v63  ;;  %v8895_v63 = vpack.c.bf16 %v6839_v36, %v6853_v39 }
 0x2c5   :  { %v2158_v27 = vsel %vm2151_vm5, %v2093_v19, %v3917_v2  ;;  %v2159_v43 = vsel %vm2151_vm5, %v2094_v44, %v3918_v8  ;;  %v8897_v19 = vld [vmem:[#allocation22_spill] sm:$0xff] }
 0x2c6   :  { %v3921_v46 = vpop.permute.xlu0 %3920  ;;  %v2206_v54 = vsel %vm2151_vm5, %v2141_v49, %v4037_v37  ;;  %v2207_v14 = vsel %vm2151_vm5, %v2142_v34, %v4038_v23 }
 0x2c7   :  { %v3923_v28 = vunpack.i.h.bf16 %v3921_v46  ;;  %v3922_v10 = vunpack.i.l.bf16 %v3921_v46  ;;  %v4041_v42 = vpop.permute.xlu1 %4040 }
 0x2c8   :  { %v4043_v41 = vunpack.i.h.bf16 %v4041_v42  ;;  %v4042_v15 = vunpack.i.l.bf16 %v4041_v42 }
 0x2c9   :  { %v2223_v30 = vsel %vm2216_vm6, %v2158_v27, %v3922_v10  ;;  %v2224_v9 = vsel %vm2216_vm6, %v2159_v43, %v3923_v28  ;;  %v8898_v27 = vld [vmem:[#allocation92_spill] sm:$0xff] }
 0x2ca   :  { %v3926_v40 = vpop.permute.xlu0 %3925  ;;  %v2287_v5 = vpack.c.bf16 %v2224_v9, %v2223_v30  ;;  %v2271_v7 = vsel %vm2216_vm6, %v2206_v54, %v4042_v15  ;;  %v2272_v20 = vsel %vm2216_vm6, %v2207_v14, %v4043_v41  ;;  %2761 = vmatmul.mubr.bf16.gmra.mrb[68].mxu1 %v2331_v21  ;;  %v8896_v21 = vld [vmem:[#allocation24_spill] sm:$0xff]  ;;  %v8899_v43 = vpack.c.bf16 %v6861_v31, %v8898_v27 }
 0x2cb   :  { %v4046_v45 = vpop.permute.xlu1 %4045  ;;  %v2335_v61 = vpack.c.bf16 %v2272_v20, %v2271_v7  ;;  %v3928_v35 = vunpack.i.h.bf16 %v3926_v40  ;;  %v3927_v33 = vunpack.i.l.bf16 %v3926_v40  ;;  %3470 = vmatprep.mubr.msk.bf16.mxu1 %vm2086_vm1, %v8895_v63 }
 0x2cc   :  { %2585 = vmatmul.mubr.bf16.gmra.mrb[76].mxu0 %v2287_v5  ;;  %v4048_v2 = vunpack.i.h.bf16 %v4046_v45  ;;  %v4047_v23 = vunpack.i.l.bf16 %v4046_v45 }
 0x2cd   :  { %3448 = vmatprep.mubr.msk.bf16.mxu0 %vm2086_vm1, %v8894_v62  ;;  %v2096_v12 = vsel %vm2086_vm1, %v8896_v21, %v3928_v35  ;;  %v2095_v29 = vsel %vm2086_vm1, %v8897_v19, %v3927_v33  ;;  %v8903_v33 = vpack.c.bf16 %v6903_v18, %v6911_v55 }
 0x2ce   :  { %v3931_v8 = vpop.permute.xlu0 %3930  ;;  %v2144_v36 = vsel %vm2086_vm1, %v5931_v32, %v4048_v2  ;;  %v2143_v39 = vsel %vm2086_vm1, %v5915_v0, %v4047_v23  ;;  %v8905_v23 = vld [vmem:[#allocation19_spill] sm:$0xff] }
 0x2cf   :  { %v4051_v37 = vpop.permute.xlu1 %4050  ;;  %v3933_v38 = vunpack.i.h.bf16 %v3931_v8  ;;  %v3932_v44 = vunpack.i.l.bf16 %v3931_v8  ;;  %v8904_v8 = vld [vmem:[#allocation23_spill] sm:$0xff] }
 0x2d0   :  { %v4053_v59 = vunpack.i.h.bf16 %v4051_v37  ;;  %v4052_v48 = vunpack.i.l.bf16 %v4051_v37 }
 0x2d1   :  { %v2160_v34 = vsel %vm2151_vm5, %v2095_v29, %v3932_v44  ;;  %v2161_v56 = vsel %vm2151_vm5, %v2096_v12, %v3933_v38 }
 0x2d2   :  { %v3936_v58 = vpop.permute.xlu0 %3935  ;;  %v2208_v10 = vsel %vm2151_vm5, %v2143_v39, %v4052_v48  ;;  %v2209_v42 = vsel %vm2151_vm5, %v2144_v36, %v4053_v59  ;;  %2769 = vmatmul.mubr.bf16.gmra.mrb[72].mxu1 %v2333_v57  ;;  %v8902_v57 = vpack.c.bf16 %v8900_v24, %v8901_v26 }
 0x2d3   :  { %v3938_v16 = vunpack.i.h.bf16 %v3936_v58  ;;  %v3937_v46 = vunpack.i.l.bf16 %v3936_v58  ;;  %v4056_v17 = vpop.permute.xlu1 %4055  ;;  %3471 = vmatprep.mubr.msk.bf16.mxu1 %vm2086_vm1, %v8899_v43 }
 0x2d4   :  { %v4058_v49 = vunpack.i.h.bf16 %v4056_v17  ;;  %v4057_v28 = vunpack.i.l.bf16 %v4056_v17 }
 0x2d5   :  { %v2225_v32 = vsel %vm2216_vm6, %v2160_v34, %v3937_v46  ;;  %v2226_v0 = vsel %vm2216_vm6, %v2161_v56, %v3938_v16  ;;  %v8906_v34 = vpack.c.bf16 %v6919_v11, %v6937_v25  ;;  %v8907_v56 = vpack.c.bf16 %v6953_v60, %v6961_v51 }
 0x2d6   :  { %v3941_v41 = vpop.permute.xlu0 %3940  ;;  %v2289_v15 = vpack.c.bf16 %v2226_v0, %v2225_v32  ;;  %v2273_v54 = vsel %vm2216_vm6, %v2208_v10, %v4057_v28  ;;  %v2274_v14 = vsel %vm2216_vm6, %v2209_v42, %v4058_v49 }
 0x2d7   :  { %v4061_v30 = vpop.permute.xlu1 %4060  ;;  %v2337_v9 = vpack.c.bf16 %v2274_v14, %v2273_v54  ;;  %v3943_v5 = vunpack.i.h.bf16 %v3941_v41  ;;  %v3942_v7 = vunpack.i.l.bf16 %v3941_v41  ;;  %v8908_v41 = vld [vmem:[#allocation37_spill] sm:$0xff] }
 0x2d8   :  { %2593 = vmatmul.mubr.bf16.gmra.mrb[80].mxu0 %v2289_v15  ;;  %v4063_v20 = vunpack.i.h.bf16 %v4061_v30  ;;  %v4062_v45 = vunpack.i.l.bf16 %v4061_v30 }
 0x2d9   :  { %3449 = vmatprep.mubr.msk.bf16.mxu0 %vm2086_vm1, %v8902_v57  ;;  %v2098_v2 = vsel %vm2086_vm1, %v8904_v8, %v3943_v5  ;;  %v2097_v37 = vsel %vm2086_vm1, %v8905_v23, %v3942_v7 }
 0x2da   :  { %v3946_v40 = vpop.permute.xlu0 %3945  ;;  %2777 = vmatmul.mubr.bf16.gmra.mrb[76].mxu1 %v2335_v61  ;;  %v2146_v59 = vsel %vm2086_vm1, %v5921_v50, %v4063_v20  ;;  %v2145_v61 = vsel %vm2086_vm1, %v5889_v6, %v4062_v45  ;;  %v8911_v45 = vld [vmem:[#allocation100_spill] sm:$0xff] }
 0x2db   :  { %v4066_v31 = vpop.permute.xlu1 %4065  ;;  %v3948_v22 = vunpack.i.h.bf16 %v3946_v40  ;;  %v3947_v52 = vunpack.i.l.bf16 %v3946_v40  ;;  %3472 = vmatprep.mubr.msk.bf16.mxu1 %vm2086_vm1, %v8903_v33 }
 0x2dc   :  { %v4068_v62 = vunpack.i.h.bf16 %v4066_v31  ;;  %v4067_v35 = vunpack.i.l.bf16 %v4066_v31  ;;  %v8910_v31 = vld [vmem:[#allocation102_spill] sm:$0xff] }
 0x2dd   :  { %v2162_v48 = vsel %vm2151_vm5, %v2097_v37, %v3947_v52  ;;  %v2163_v18 = vsel %vm2151_vm5, %v2098_v2, %v3948_v22 }
 0x2de   :  { %v3951_v63 = vpop.permute.xlu0 %3950  ;;  %v2210_v58 = vsel %vm2151_vm5, %v2145_v61, %v4067_v35  ;;  %v2211_v36 = vsel %vm2151_vm5, %v2146_v59, %v4068_v62  ;;  %v8912_v35 = vpack.c.bf16 %v6985_v4, %v7001_v1 }
 0x2df   :  { %v3953_v38 = vunpack.i.h.bf16 %v3951_v63  ;;  %v3952_v44 = vunpack.i.l.bf16 %v3951_v63  ;;  %v4071_v55 = vpop.permute.xlu1 %4070 }
 0x2e0   :  { %v4073_v21 = vunpack.i.h.bf16 %v4071_v55  ;;  %v4072_v12 = vunpack.i.l.bf16 %v4071_v55 }
 0x2e1   :  { %v2227_v19 = vsel %vm2216_vm6, %v2162_v48, %v3952_v44  ;;  %v2228_v29 = vsel %vm2216_vm6, %v2163_v18, %v3953_v38 }
 0x2e2   :  { %v3956_v39 = vpop.permute.xlu0 %3955  ;;  %v2291_v50 = vpack.c.bf16 %v2228_v29, %v2227_v19  ;;  %v2275_v16 = vsel %vm2216_vm6, %v2210_v58, %v4072_v12  ;;  %v2276_v6 = vsel %vm2216_vm6, %v2211_v36, %v4073_v21  ;;  %2785 = vmatmul.mubr.bf16.gmra.mrb[80].mxu1 %v2337_v9  ;;  %v8913_v21 = vld [vmem:[#allocation33_spill] sm:$0xff]  ;;  %v8915_v36 = vld [vmem:[#allocation95_spill] sm:$0xff] }
 0x2e3   :  { %v4076_v46 = vpop.permute.xlu1 %4075  ;;  %v2339_v17 = vpack.c.bf16 %v2276_v6, %v2275_v16  ;;  %3473 = vmatprep.mubr.msk.bf16.mxu1 %vm2086_vm1, %v8907_v56  ;;  %v3958_v28 = vunpack.i.h.bf16 %v3956_v39  ;;  %v3957_v10 = vunpack.i.l.bf16 %v3956_v39  ;;  %v8914_v58 = vld [vmem:[#allocation53_spill] sm:$0xff]  ;;  %v8918_v6 = vld [vmem:[#allocation99_spill] sm:$0xff] }
 0x2e4   :  { %2601 = vmatmul.mubr.bf16.gmra.mrb[84].mxu0 %v2291_v50  ;;  %v4077_v38 = vunpack.i.l.bf16 %v4076_v46  ;;  %v8916_v39 = vpack.c.bf16 %v8914_v58, %v8915_v36  ;;  %v8917_v50 = vld [vmem:[#allocation101_spill] sm:$0xff] }
 0x2e5   :  { %3450 = vmatprep.mubr.msk.bf16.mxu0 %vm2086_vm1, %v8906_v34  ;;  %v2100_v43 = vsel %vm2086_vm1, %v8485_v53, %v3958_v28  ;;  %v2099_v11 = vsel %vm2086_vm1, %v8908_v41, %v3957_v10  ;;  %v8909_v53 = vpack.c.bf16 %v6969_v3, %v6977_v13  ;;  %v4078_v3 = vunpack.i.h.bf16 %v4076_v46 }
 0x2e6   :  { %v3961_v49 = vpop.permute.xlu0 %3960  ;;  %v2149_v46 = vsel %vm2086_vm1, %v8918_v6, %v4077_v38 }
 0x2e7   :  { %v3963_v42 = vunpack.i.h.bf16 %v3961_v49  ;;  %v3962_v32 = vunpack.i.l.bf16 %v3961_v49  ;;  %v4081_v0 = vpop.permute.xlu1 %4080  ;;  %v2150_v16 = vsel %vm2086_vm1, %v8917_v50, %v4078_v3 }
 0x2e8   :  { %v4083_v14 = vunpack.i.h.bf16 %v4081_v0  ;;  %v4082_v30 = vunpack.i.l.bf16 %v4081_v0 }
 0x2e9   :  { %v2164_v54 = vsel %vm2151_vm5, %v2099_v11, %v3962_v32  ;;  %v2165_v60 = vsel %vm2151_vm5, %v2100_v43, %v3963_v42  ;;  %v7623_v11 = vld [vmem:[%s7880_s3] ss:$0 sm:$0xff] }
 0x2ea   :  { %v3966_v27 = vpop.permute.xlu0 %3965  ;;  %2793 = vmatmul.mubr.bf16.gmra.mrb[84].mxu1 %v2339_v17  ;;  %v2148_v20 = vsel %vm2086_vm1, %v8910_v31, %v4083_v14  ;;  %v2147_v22 = vsel %vm2086_vm1, %v8911_v45, %v4082_v30 }
 0x2eb   :  { %v3968_v25 = vunpack.i.h.bf16 %v3966_v27  ;;  %v3967_v15 = vunpack.i.l.bf16 %v3966_v27  ;;  %v4086_v51 = vpop.permute.xlu1 %4085  ;;  %3474 = vmatprep.mubr.msk.bf16.mxu1 %vm2086_vm1, %v8909_v53 }
 0x2ec   :  { %v4088_v26 = vunpack.i.h.bf16 %v4086_v51  ;;  %v4087_v57 = vunpack.i.l.bf16 %v4086_v51 }
 0x2ed   :  { %v2229_v9 = vsel %vm2216_vm6, %v2164_v54, %v3967_v15  ;;  %v2230_v24 = vsel %vm2216_vm6, %v2165_v60, %v3968_v25 }
 0x2ee   :  { %v3971_v40 = vpop.permute.xlu0 %3970  ;;  %v2293_v5 = vpack.c.bf16 %v2230_v24, %v2229_v9  ;;  %v2212_v13 = vsel %vm2151_vm5, %v2147_v22, %v4087_v57  ;;  %v2213_v33 = vsel %vm2151_vm5, %v2148_v20, %v4088_v26  ;;  %v7630_v9 = vld [vmem:[%s7881_s4] sm:$0xff]  ;;  %v7635_v24 = vld [vmem:[%s7881_s4 + $0x8] sm:$0xff] }
 0x2ef   :  { %v4091_v7 = vpop.permute.xlu1 %4090  ;;  %v3973_v8 = vunpack.i.h.bf16 %v3971_v40  ;;  %v3972_v2 = vunpack.i.l.bf16 %v3971_v40 }
 0x2f0   :  { %2609 = vmatmul.mubr.bf16.gmra.mrb[88].mxu0 %v2293_v5  ;;  %v4093_v52 = vunpack.i.h.bf16 %v4091_v7  ;;  %v4092_v62 = vunpack.i.l.bf16 %v4091_v7 }
 0x2f1   :  { %3451 = vmatprep.mubr.msk.bf16.mxu0 %vm2086_vm1, %v8912_v35  ;;  %v2102_v55 = vsel %vm2086_vm1, %v8521_v47, %v3973_v8  ;;  %v2101_v12 = vsel %vm2086_vm1, %v8913_v21, %v3972_v2 }
 0x2f2   :  { %v3976_v63 = vpop.permute.xlu0 %3975  ;;  %v2277_v23 = vsel %vm2216_vm6, %v2212_v13, %v4092_v62  ;;  %v2278_v37 = vsel %vm2216_vm6, %v2213_v33, %v4093_v52 }
 0x2f3   :  { %v3978_v44 = vunpack.i.h.bf16 %v3976_v63  ;;  %v3977_v59 = vunpack.i.l.bf16 %v3976_v63  ;;  %v4096_v61 = vpop.permute.xlu1 %4095  ;;  %v2341_v48 = vpack.c.bf16 %v2278_v37, %v2277_v23 }
 0x2f4   :  { %v4098_v4 = vunpack.i.h.bf16 %v4096_v61  ;;  %v4097_v1 = vunpack.i.l.bf16 %v4096_v61 }
 0x2f5   :  { %2801 = vmatmul.mubr.bf16.gmra.mrb[88].mxu1 %v2341_v48  ;;  %v2166_v17 = vsel %vm2151_vm5, %v2101_v12, %v3977_v59  ;;  %v2167_v47 = vsel %vm2151_vm5, %v2102_v55, %v3978_v44 }
 0x2f6   :  { %v4101_v18 = vpop.permute.xlu0 %4100  ;;  %3475 = vmatprep.mubr.msk.bf16.mxu1 %vm2086_vm1, %v8916_v39  ;;  %v2215_v42 = vsel %vm2151_vm5, %v2150_v16, %v4098_v4  ;;  %v2214_v32 = vsel %vm2151_vm5, %v2149_v46, %v4097_v1 }
 0x2f7   :  { %v4103_v19 = vunpack.i.h.bf16 %v4101_v18  ;;  %v4102_v29 = vunpack.i.l.bf16 %v4101_v18  ;;  %v4106_v34 = vpop.permute.xlu1 %4105 }
 0x2f8   :  { %v4108_v56 = vunpack.i.h.bf16 %v4106_v34  ;;  %v4107_v49 = vunpack.i.l.bf16 %v4106_v34 }
 0x2f9   :  { %v2231_v28 = vsel %vm2216_vm6, %v2166_v17, %v4102_v29  ;;  %v2232_v10 = vsel %vm2216_vm6, %v2167_v47, %v4103_v19 }
 0x2fa   :  { %v2295_v0 = vpack.c.bf16 %v2232_v10, %v2231_v28  ;;  %v2279_v27 = vsel %vm2216_vm6, %v2214_v32, %v4107_v49  ;;  %v2280_v43 = vsel %vm2216_vm6, %v2215_v42, %v4108_v56  ;;  %v7652_v42 = vld [vmem:[%s7882_s5] ss:$0 sm:$0xff] }
 0x2fb   :  { %v2343_v41 = vpack.c.bf16 %v2280_v43, %v2279_v27 }
 0x2fc   :  { %2617 = vmatmul.mubr.bf16.gmra.mrb[92].mxu0 %v2295_v0 }
 0x2fd   :  { %2809 = vmatmul.mubr.bf16.gmra.mrb[92].mxu1 %v2343_v41 }
 0x315   :  { %v2626_v25 = vpop.f32.mrb[0].mxu1 }
 0x316   :  { %v2627_v15 = vadd.f32 %v7623_v11, %v2626_v25  ;;  %v2628_v54 = vpop.f32.mrb[1].mxu1 }
 0x317   :  { %v2629_v60 = vpop.f32.mrb[2].mxu1 }
 0x318   :  { %v2833_v51 = vmax.f32 %v2627_v15, 0.0  ;;  %v2630_v14 = vadd.f32 %v7623_v11, %v2629_v60  ;;  %v2631_v30 = vpop.f32.mrb[3].mxu1 }
 0x31a   :  { %v2834_v26 = vmax.f32 %v2630_v14, 0.0  ;;  %v2899_v57 = vmul.f32 %v7630_v9, %v2833_v51 }
 0x31c   :  { %v2900_v53 = vmul.f32 %v7635_v24, %v2834_v26 }
 0x31d   :  { %v2634_v40 = vpop.f32.mrb[4].mxu1 }
 0x31e   :  { %v3003_v5 = vmax.f32 %v2899_v57, %v2900_v53  ;;  %v2635_v7 = vadd.f32 %v7623_v11, %v2634_v40  ;;  %v2636_v31 = vpop.f32.mrb[5].mxu1 }
 0x31f   :  { %v2637_v20 = vpop.f32.mrb[6].mxu1 }
 0x320   :  { %v3004_v45 = vrot.slane %v3003_v5, 4  ;;  %v2835_v22 = vmax.f32 %v2635_v7, 0.0  ;;  %v2638_v52 = vadd.f32 %v7623_v11, %v2637_v20  ;;  %v2639_v62 = vpop.f32.mrb[7].mxu1 }
 0x322   :  { %v2836_v35 = vmax.f32 %v2638_v52, 0.0  ;;  %v3005_v3 = vmax.f32 %v3003_v5, %v3004_v45  ;;  %v2901_v13 = vmul.f32 %v7630_v9, %v2835_v22 }
 0x324   :  { %v2902_v33 = vmul.f32 %v7635_v24, %v2836_v35  ;;  %v3006_v37 = vrot.slane %v3005_v3, 2 }
 0x325   :  { %v2642_v63 = vpop.f32.mrb[8].mxu1 }
 0x326   :  { %v3010_v8 = vmax.f32 %v2901_v13, %v2902_v33  ;;  %v2643_v2 = vadd.f32 %v7623_v11, %v2642_v63  ;;  %v2644_v23 = vpop.f32.mrb[9].mxu1  ;;  %v3007_v18 = vmax.f32 %v3005_v3, %v3006_v37 }
 0x327   :  { %v2645_v38 = vpop.f32.mrb[10].mxu1 }
 0x328   :  { %v3011_v44 = vrot.slane %v3010_v8, 4  ;;  %v2837_v59 = vmax.f32 %v2643_v2, 0.0  ;;  %v2646_v61 = vadd.f32 %v7623_v11, %v2645_v38  ;;  %v2647_v48 = vpop.f32.mrb[11].mxu1  ;;  %v3008_v50 = vrot.slane %v3007_v18, 1 }
 0x32a   :  { %v3012_v4 = vmax.f32 %v3010_v8, %v3011_v44  ;;  %v2838_v1 = vmax.f32 %v2646_v61, 0.0  ;;  %v2903_v21 = vmul.f32 %v7630_v9, %v2837_v59  ;;  %v3009_v10 = vmax.f32 %v3007_v18, %v3008_v50 }
 0x32c   :  { %v3013_v55 = vrot.slane %v3012_v4, 2  ;;  %v2904_v12 = vmul.f32 %v7635_v24, %v2838_v1  ;;  %v3186_v14 = vmul.f32 %v7652_v42, %v3009_v10 }
 0x32d   :  { %v2650_v19 = vpop.f32.mrb[12].mxu1 }
 0x32e   :  { %v3014_v29 = vmax.f32 %v3012_v4, %v3013_v55  ;;  %v3017_v58 = vmax.f32 %v2903_v21, %v2904_v12  ;;  %v2651_v36 = vadd.f32 %v7623_v11, %v2650_v19  ;;  %v2652_v39 = vpop.f32.mrb[13].mxu1 }
 0x32f   :  { %v2653_v16 = vpop.f32.mrb[14].mxu1 }
 0x330   :  { %v3015_v6 = vrot.slane %v3014_v29, 1  ;;  %v3018_v46 = vrot.slane %v3017_v58, 4  ;;  %v2839_v17 = vmax.f32 %v2651_v36, 0.0  ;;  %v2654_v47 = vadd.f32 %v7623_v11, %v2653_v16  ;;  %v2655_v34 = vpop.f32.mrb[15].mxu1 }
 0x332   :  { %v3016_v56 = vmax.f32 %v3014_v29, %v3015_v6  ;;  %v3019_v49 = vmax.f32 %v3017_v58, %v3018_v46  ;;  %v2840_v28 = vmax.f32 %v2654_v47, 0.0  ;;  %v2905_v27 = vmul.f32 %v7630_v9, %v2839_v17 }
 0x334   :  { %v3187_v32 = vmul.f32 %v7652_v42, %v3016_v56  ;;  %v3020_v0 = vrot.slane %v3019_v49, 2  ;;  %v2906_v43 = vmul.f32 %v7635_v24, %v2840_v28 }
 0x335   :  { %v2658_v41 = vpop.f32.mrb[16].mxu1 }
 0x336   :  { %v3263_v25 = vrot.slane %v3187_v32, 7  ;;  %v3021_v15 = vmax.f32 %v3019_v49, %v3020_v0  ;;  %v3024_v54 = vmax.f32 %v2905_v27, %v2906_v43  ;;  %v2659_v60 = vadd.f32 %v7623_v11, %v2658_v41  ;;  %v2660_v51 = vpop.f32.mrb[17].mxu1 }
 0x337   :  { %v2661_v30 = vpop.f32.mrb[18].mxu1 }
 0x338   :  { %v3022_v26 = vrot.slane %v3021_v15, 1  ;;  %v3025_v57 = vrot.slane %v3024_v54, 4  ;;  %v2841_v53 = vmax.f32 %v2659_v60, 0.0  ;;  %v2662_v40 = vadd.f32 %v7623_v11, %v2661_v30  ;;  %v2663_v5 = vpop.f32.mrb[19].mxu1 }
 0x339   :  { %v3264_v7 = vsel %vm3243_vm7, %v3263_v25, %v3186_v14 }
 0x33a   :  { %v3023_v31 = vmax.f32 %v3021_v15, %v3022_v26  ;;  %v3026_v20 = vmax.f32 %v3024_v54, %v3025_v57  ;;  %v2842_v45 = vmax.f32 %v2662_v40, 0.0  ;;  %v2907_v62 = vmul.f32 %v7630_v9, %v2841_v53 }
 0x33b   :  { %v2562_v3 = vpop.f32.mrb[64].mxu0 }
 0x33c   :  { %v3188_v22 = vmul.f32 %v7652_v42, %v3023_v31  ;;  %v3027_v52 = vrot.slane %v3026_v20, 2  ;;  %v2908_v35 = vmul.f32 %v7635_v24, %v2842_v45  ;;  %v2563_v8 = vadd.f32 %v7623_v11, %v2562_v3  ;;  %v2564_v23 = vpop.f32.mrb[65].mxu0 }
 0x33d   :  { %v2666_v2 = vpop.f32.mrb[20].mxu1  ;;  %v2565_v44 = vpop.f32.mrb[66].mxu0 }
 0x33e   :  { %v3265_v13 = vrot.slane %v3188_v22, 6  ;;  %v3028_v33 = vmax.f32 %v3026_v20, %v3027_v52  ;;  %v3031_v63 = vmax.f32 %v2907_v62, %v2908_v35  ;;  %v2667_v37 = vadd.f32 %v7623_v11, %v2666_v2  ;;  %v2668_v38 = vpop.f32.mrb[21].mxu1  ;;  %v2567_v18 = vpop.f32.mrb[67].mxu0 }
 0x33f   :  { %v2817_v48 = vmax.f32 %v2563_v8, 0.0  ;;  %v2566_v4 = vadd.f32 %v7623_v11, %v2565_v44  ;;  %v2669_v1 = vpop.f32.mrb[22].mxu1 }
 0x340   :  { %v3029_v59 = vrot.slane %v3028_v33, 1  ;;  %v3032_v61 = vrot.slane %v3031_v63, 4  ;;  %v2843_v55 = vmax.f32 %v2667_v37, 0.0  ;;  %v2670_v21 = vadd.f32 %v7623_v11, %v2669_v1  ;;  %v2671_v12 = vpop.f32.mrb[23].mxu1 }
 0x341   :  { %v3266_v19 = vsel %vm3246_vm8, %v3265_v13, %v3264_v7  ;;  %v2818_v36 = vmax.f32 %v2566_v4, 0.0  ;;  %v2883_v6 = vmul.f32 %v7630_v9, %v2817_v48 }
 0x342   :  { %v3030_v29 = vmax.f32 %v3028_v33, %v3029_v59  ;;  %v3033_v58 = vmax.f32 %v3031_v63, %v3032_v61  ;;  %v2844_v39 = vmax.f32 %v2670_v21, 0.0  ;;  %v2909_v17 = vmul.f32 %v7630_v9, %v2843_v55 }
 0x343   :  { %v2884_v46 = vmul.f32 %v7635_v24, %v2818_v36 }
 0x344   :  { %v3189_v50 = vmul.f32 %v7652_v42, %v3030_v29  ;;  %v3034_v16 = vrot.slane %v3033_v58, 2  ;;  %v2910_v47 = vmul.f32 %v7635_v24, %v2844_v39 }
 0x345   :  { %v7674_v49 = vmax.f32 %v2883_v6, %v2884_v46  ;;  %v2674_v28 = vpop.f32.mrb[24].mxu1 }
 0x346   :  { %v3267_v34 = vrot.slane %v3189_v50, 5  ;;  %v3035_v56 = vmax.f32 %v3033_v58, %v3034_v16  ;;  %v3038_v10 = vmax.f32 %v2909_v17, %v2910_v47  ;;  %v2675_v32 = vadd.f32 %v7623_v11, %v2674_v28  ;;  %v2676_v0 = vpop.f32.mrb[25].mxu1 }
 0x347   :  { %v2677_v43 = vpop.f32.mrb[26].mxu1 }
 0x348   :  { %v3036_v27 = vrot.slane %v3035_v56, 1  ;;  %v3268_v41 = vsel %vm3249_vm9, %v3267_v34, %v3266_v19  ;;  %v3039_v25 = vrot.slane %v3038_v10, 4  ;;  %v2845_v15 = vmax.f32 %v2675_v32, 0.0  ;;  %v2679_v60 = vpop.f32.mrb[27].mxu1 }
 0x349   :  { %v2678_v54 = vadd.f32 %v7623_v11, %v2677_v43 }
 0x34a   :  { %v3037_v51 = vmax.f32 %v3035_v56, %v3036_v27  ;;  %v3040_v14 = vmax.f32 %v3038_v10, %v3039_v25  ;;  %v2911_v53 = vmul.f32 %v7630_v9, %v2845_v15 }
 0x34b   :  { %v2846_v30 = vmax.f32 %v2678_v54, 0.0 }
 0x34c   :  { %v3190_v26 = vmul.f32 %v7652_v42, %v3037_v51  ;;  %v3041_v57 = vrot.slane %v3040_v14, 2 }
 0x34d   :  { %v2912_v40 = vmul.f32 %v7635_v24, %v2846_v30  ;;  %v2682_v5 = vpop.f32.mrb[28].mxu1 }
 0x34e   :  { %v3269_v7 = vrot.slane %v3190_v26, 4  ;;  %v3042_v31 = vmax.f32 %v3040_v14, %v3041_v57  ;;  %v2683_v45 = vadd.f32 %v7623_v11, %v2682_v5  ;;  %v2684_v22 = vpop.f32.mrb[29].mxu1 }
 0x34f   :  { %v3045_v20 = vmax.f32 %v2911_v53, %v2912_v40  ;;  %v2685_v52 = vpop.f32.mrb[30].mxu1 }
 0x350   :  { %v3270_v62 = vsel %vm3252_vm10, %v3269_v7, %v3268_v41  ;;  %v3043_v35 = vrot.slane %v3042_v31, 1  ;;  %v2847_v13 = vmax.f32 %v2683_v45, 0.0  ;;  %v2686_v33 = vadd.f32 %v7623_v11, %v2685_v52  ;;  %v2687_v63 = vpop.f32.mrb[31].mxu1 }
 0x351   :  { %v3046_v3 = vrot.slane %v3045_v20, 4 }
 0x352   :  { %v3044_v8 = vmax.f32 %v3042_v31, %v3043_v35  ;;  %v2848_v23 = vmax.f32 %v2686_v33, 0.0  ;;  %v2913_v38 = vmul.f32 %v7630_v9, %v2847_v13 }
 0x353   :  { %v3047_v2 = vmax.f32 %v3045_v20, %v3046_v3 }
 0x354   :  { %v2914_v44 = vmul.f32 %v7635_v24, %v2848_v23  ;;  %v3191_v59 = vmul.f32 %v7652_v42, %v3044_v8 }
 0x355   :  { %v3048_v37 = vrot.slane %v3047_v2, 2  ;;  %v2690_v61 = vpop.f32.mrb[32].mxu1 }
 0x356   :  { %v3052_v4 = vmax.f32 %v2913_v38, %v2914_v44  ;;  %v2691_v1 = vadd.f32 %v7623_v11, %v2690_v61  ;;  %v2692_v18 = vpop.f32.mrb[33].mxu1  ;;  %v3271_v55 = vrot.slane %v3191_v59, 3  ;;  %v2948_v59 = vrot.slane %v7674_v49, 4 }
 0x357   :  { %v3049_v48 = vmax.f32 %v3047_v2, %v3048_v37  ;;  %v2693_v21 = vpop.f32.mrb[34].mxu1 }
 0x358   :  { %v3053_v19 = vrot.slane %v3052_v4, 4  ;;  %v2849_v29 = vmax.f32 %v2691_v1, 0.0  ;;  %v2694_v58 = vadd.f32 %v7623_v11, %v2693_v21  ;;  %v2695_v36 = vpop.f32.mrb[35].mxu1  ;;  %v3272_v39 = vsel %vm3255_vm11, %v3271_v55, %v3270_v62 }
 0x359   :  { %v3050_v12 = vrot.slane %v3049_v48, 1 }
 0x35a   :  { %v3054_v50 = vmax.f32 %v3052_v4, %v3053_v19  ;;  %v2850_v16 = vmax.f32 %v2694_v58, 0.0  ;;  %v2915_v17 = vmul.f32 %v7630_v9, %v2849_v29 }
 0x35b   :  { %v3051_v6 = vmax.f32 %v3049_v48, %v3050_v12 }
 0x35c   :  { %v3055_v46 = vrot.slane %v3054_v50, 2  ;;  %v2916_v47 = vmul.f32 %v7635_v24, %v2850_v16 }
 0x35d   :  { %v3192_v34 = vmul.f32 %v7652_v42, %v3051_v6  ;;  %v2698_v56 = vpop.f32.mrb[36].mxu1 }
 0x35e   :  { %v3056_v28 = vmax.f32 %v3054_v50, %v3055_v46  ;;  %v3059_v10 = vmax.f32 %v2915_v17, %v2916_v47  ;;  %v2699_v32 = vadd.f32 %v7623_v11, %v2698_v56  ;;  %v2700_v0 = vpop.f32.mrb[37].mxu1  ;;  %v2949_v47 = vmax.f32 %v7674_v49, %v2948_v59 }
 0x35f   :  { %v3273_v27 = vrot.slane %v3192_v34, 2  ;;  %v2701_v43 = vpop.f32.mrb[38].mxu1  ;;  %v12_v56 = vstv %s7883_s6 }
 0x360   :  { %v3060_v41 = vrot.slane %v3059_v10, 4  ;;  %v2851_v25 = vmax.f32 %v2699_v32, 0.0  ;;  %v2702_v15 = vadd.f32 %v7623_v11, %v2701_v43  ;;  %v2703_v54 = vpop.f32.mrb[39].mxu1  ;;  %v3057_v60 = vrot.slane %v3056_v28, 1  ;;  %13 = vst [vmem:[#allocation2] sm:$0x1] %v12_v56 }
 0x361   :  { %v3274_v51 = vsel %vm3258_vm12, %v3273_v27, %v3272_v39  ;;  %v2950_v54 = vrot.slane %v2949_v47, 2 }
 0x362   :  { %v2852_v14 = vmax.f32 %v2702_v15, 0.0  ;;  %v3058_v30 = vmax.f32 %v3056_v28, %v3057_v60  ;;  %v3061_v26 = vmax.f32 %v3059_v10, %v3060_v41  ;;  %v2917_v57 = vmul.f32 %v7630_v9, %v2851_v25 }
 0x364   :  { %v2918_v53 = vmul.f32 %v7635_v24, %v2852_v14  ;;  %v3193_v40 = vmul.f32 %v7652_v42, %v3058_v30  ;;  %v3062_v22 = vrot.slane %v3061_v26, 2 }
 0x365   :  { %v2706_v5 = vpop.f32.mrb[40].mxu1 }
 0x366   :  { %v3066_v7 = vmax.f32 %v2917_v57, %v2918_v53  ;;  %v2707_v31 = vadd.f32 %v7623_v11, %v2706_v5  ;;  %v2708_v20 = vpop.f32.mrb[41].mxu1  ;;  %v3275_v45 = vrot.slane %v3193_v40, 1  ;;  %v3063_v2 = vmax.f32 %v3061_v26, %v3062_v22 }
 0x367   :  { %v2709_v52 = vpop.f32.mrb[42].mxu1 }
 0x368   :  { %v3067_v62 = vrot.slane %v3066_v7, 4  ;;  %v2853_v35 = vmax.f32 %v2707_v31, 0.0  ;;  %v2710_v3 = vadd.f32 %v7623_v11, %v2709_v52  ;;  %v2711_v13 = vpop.f32.mrb[43].mxu1  ;;  %v3276_v33 = vsel %vm3261_vm13, %v3275_v45, %v3274_v51 }
 0x369   :  { %3311 = vadd.xlane.f32.xlu1 %v3276_v33  ;;  %v3064_v19 = vrot.slane %v3063_v2, 1 }
 0x36a   :  { %v3068_v63 = vmax.f32 %v3066_v7, %v3067_v62  ;;  %v2854_v8 = vmax.f32 %v2710_v3, 0.0  ;;  %v2919_v37 = vmul.f32 %v7630_v9, %v2853_v35  ;;  %v2951_v62 = vmax.f32 %v2949_v47, %v2950_v54 }
 0x36b   :  { %v2570_v44 = vpop.f32.mrb[68].mxu0  ;;  %v3065_v0 = vmax.f32 %v3063_v2, %v3064_v19 }
 0x36c   :  { %v3069_v23 = vrot.slane %v3068_v63, 2  ;;  %v2920_v38 = vmul.f32 %v7635_v24, %v2854_v8  ;;  %v2571_v61 = vadd.f32 %v7623_v11, %v2570_v44  ;;  %v2572_v4 = vpop.f32.mrb[69].mxu0  ;;  %v2952_v44 = vrot.slane %v2951_v62, 1 }
 0x36d   :  { %v2714_v48 = vpop.f32.mrb[44].mxu1  ;;  %v2573_v12 = vpop.f32.mrb[70].mxu0  ;;  %v3194_v40 = vmul.f32 %v7652_v42, %v3065_v0 }
 0x36e   :  { %v3070_v1 = vmax.f32 %v3068_v63, %v3069_v23  ;;  %v3073_v18 = vmax.f32 %v2919_v37, %v2920_v38  ;;  %v2715_v55 = vadd.f32 %v7623_v11, %v2714_v48  ;;  %v2716_v21 = vpop.f32.mrb[45].mxu1  ;;  %v2819_v29 = vmax.f32 %v2571_v61, 0.0  ;;  %v2575_v39 = vpop.f32.mrb[71].mxu0 }
 0x36f   :  { %v2574_v58 = vadd.f32 %v7623_v11, %v2573_v12  ;;  %v2717_v36 = vpop.f32.mrb[46].mxu1 }
 0x370   :  { %v3071_v50 = vrot.slane %v3070_v1, 1  ;;  %v3074_v16 = vrot.slane %v3073_v18, 4  ;;  %v2855_v6 = vmax.f32 %v2715_v55, 0.0  ;;  %v2718_v46 = vadd.f32 %v7623_v11, %v2717_v36  ;;  %v2719_v17 = vpop.f32.mrb[47].mxu1 }
 0x371   :  { %v2820_v34 = vmax.f32 %v2574_v58, 0.0  ;;  %v2885_v27 = vmul.f32 %v7630_v9, %v2819_v29 }
 0x372   :  { %v3072_v28 = vmax.f32 %v3070_v1, %v3071_v50  ;;  %v3075_v10 = vmax.f32 %v3073_v18, %v3074_v16  ;;  %v2856_v32 = vmax.f32 %v2718_v46, 0.0  ;;  %v2921_v15 = vmul.f32 %v7630_v9, %v2855_v6 }
 0x373   :  { %v2886_v43 = vmul.f32 %v7635_v24, %v2820_v34  ;;  %v2953_v50 = vmax.f32 %v2951_v62, %v2952_v44 }
 0x374   :  { %v3195_v41 = vmul.f32 %v7652_v42, %v3072_v28  ;;  %v3076_v25 = vrot.slane %v3075_v10, 2  ;;  %v2922_v49 = vmul.f32 %v7635_v24, %v2856_v32 }
 0x375   :  { %v2954_v60 = vmax.f32 %v2885_v27, %v2886_v43  ;;  %v2722_v51 = vpop.f32.mrb[48].mxu1  ;;  %v3178_v0 = vmul.f32 %v7652_v42, %v2953_v50 }
 0x376   :  { %v3277_v14 = vrot.slane %v3195_v41, 7  ;;  %v3077_v30 = vmax.f32 %v3075_v10, %v3076_v25  ;;  %v3080_v26 = vmax.f32 %v2921_v15, %v2922_v49  ;;  %v2723_v57 = vadd.f32 %v7623_v11, %v2722_v51  ;;  %v2724_v53 = vpop.f32.mrb[49].mxu1 }
 0x377   :  { %v2955_v5 = vrot.slane %v2954_v60, 4  ;;  %v2725_v7 = vpop.f32.mrb[50].mxu1 }
 0x378   :  { %v3078_v31 = vrot.slane %v3077_v30, 1  ;;  %v3081_v20 = vrot.slane %v3080_v26, 4  ;;  %v2857_v45 = vmax.f32 %v2723_v57, 0.0  ;;  %v2726_v22 = vadd.f32 %v7623_v11, %v2725_v7  ;;  %v2727_v52 = vpop.f32.mrb[51].mxu1 }
 0x379   :  { %v2956_v35 = vmax.f32 %v2954_v60, %v2955_v5  ;;  %v3278_v3 = vsel %vm3243_vm7, %v3277_v14, %v3194_v40 }
 0x37a   :  { %v3079_v13 = vmax.f32 %v3077_v30, %v3078_v31  ;;  %v3082_v33 = vmax.f32 %v3080_v26, %v3081_v20  ;;  %v2858_v63 = vmax.f32 %v2726_v22, 0.0  ;;  %v2923_v37 = vmul.f32 %v7630_v9, %v2857_v45 }
 0x37b   :  { %v2957_v8 = vrot.slane %v2956_v35, 2 }
 0x37c   :  { %v3196_v2 = vmul.f32 %v7652_v42, %v3079_v13  ;;  %v3083_v23 = vrot.slane %v3082_v33, 2  ;;  %v2924_v38 = vmul.f32 %v7635_v24, %v2858_v63 }
 0x37d   :  { %v2958_v59 = vmax.f32 %v2956_v35, %v2957_v8  ;;  %v2730_v61 = vpop.f32.mrb[52].mxu1 }
 0x37e   :  { %v3279_v48 = vrot.slane %v3196_v2, 6  ;;  %v3084_v4 = vmax.f32 %v3082_v33, %v3083_v23  ;;  %v3087_v1 = vmax.f32 %v2923_v37, %v2924_v38  ;;  %v2731_v18 = vadd.f32 %v7623_v11, %v2730_v61  ;;  %v2732_v55 = vpop.f32.mrb[53].mxu1 }
 0x37f   :  { %v2959_v21 = vrot.slane %v2958_v59, 1  ;;  %v2733_v12 = vpop.f32.mrb[54].mxu1 }
 0x380   :  { %v3085_v19 = vrot.slane %v3084_v4, 1  ;;  %v3088_v29 = vrot.slane %v3087_v1, 4  ;;  %v2859_v58 = vmax.f32 %v2731_v18, 0.0  ;;  %v2734_v36 = vadd.f32 %v7623_v11, %v2733_v12  ;;  %v2735_v39 = vpop.f32.mrb[55].mxu1 }
 0x381   :  { %v2960_v16 = vmax.f32 %v2958_v59, %v2959_v21  ;;  %v3280_v6 = vsel %vm3246_vm8, %v3279_v48, %v3278_v3 }
 0x382   :  { %v3086_v46 = vmax.f32 %v3084_v4, %v3085_v19  ;;  %v3089_v17 = vmax.f32 %v3087_v1, %v3088_v29  ;;  %v2860_v47 = vmax.f32 %v2734_v36, 0.0  ;;  %v2925_v10 = vmul.f32 %v7630_v9, %v2859_v58 }
 0x383   :  { %v3179_v34 = vmul.f32 %v7652_v42, %v2960_v16 }
 0x384   :  { %v3197_v56 = vmul.f32 %v7652_v42, %v3086_v46  ;;  %v3090_v28 = vrot.slane %v3089_v17, 2  ;;  %v2926_v32 = vmul.f32 %v7635_v24, %v2860_v47 }
 0x385   :  { %v3242_v27 = vrot.slane %v3179_v34, 7  ;;  %v2738_v43 = vpop.f32.mrb[56].mxu1 }
 0x386   :  { %v3281_v41 = vrot.slane %v3197_v56, 5  ;;  %v3091_v25 = vmax.f32 %v3089_v17, %v3090_v28  ;;  %v3094_v15 = vmax.f32 %v2925_v10, %v2926_v32  ;;  %v2739_v49 = vadd.f32 %v7623_v11, %v2738_v43  ;;  %v2740_v54 = vpop.f32.mrb[57].mxu1 }
 0x387   :  { %v2741_v60 = vpop.f32.mrb[58].mxu1  ;;  %v7736_v51 = vsel %vm3243_vm7, %v3242_v27, %v3178_v0 }
 0x388   :  { %v3092_v14 = vrot.slane %v3091_v25, 1  ;;  %v3095_v30 = vrot.slane %v3094_v15, 4  ;;  %v2861_v26 = vmax.f32 %v2739_v49, 0.0  ;;  %v2742_v57 = vadd.f32 %v7623_v11, %v2741_v60  ;;  %v2743_v53 = vpop.f32.mrb[59].mxu1 }
 0x389   :  { %v3282_v40 = vsel %vm3249_vm9, %v3281_v41, %v3280_v6 }
 0x38a   :  { %v3093_v5 = vmax.f32 %v3091_v25, %v3092_v14  ;;  %v3096_v7 = vmax.f32 %v3094_v15, %v3095_v30  ;;  %v2862_v31 = vmax.f32 %v2742_v57, 0.0  ;;  %v2927_v22 = vmul.f32 %v7630_v9, %v2861_v26 }
 0x38c   :  { %v3198_v20 = vmul.f32 %v7652_v42, %v3093_v5  ;;  %v3097_v45 = vrot.slane %v3096_v7, 2  ;;  %v2928_v52 = vmul.f32 %v7635_v24, %v2862_v31 }
 0x38d   :  { %v2746_v62 = vpop.f32.mrb[60].mxu1 }
 0x38e   :  { %v3098_v35 = vmax.f32 %v3096_v7, %v3097_v45  ;;  %v3101_v3 = vmax.f32 %v2927_v22, %v2928_v52  ;;  %v2747_v13 = vadd.f32 %v7623_v11, %v2746_v62  ;;  %v2748_v33 = vpop.f32.mrb[61].mxu1  ;;  %v3283_v63 = vrot.slane %v3198_v20, 4 }
 0x38f   :  { %v2749_v8 = vpop.f32.mrb[62].mxu1 }
 0x390   :  { %v3099_v2 = vrot.slane %v3098_v35, 1  ;;  %v3102_v23 = vrot.slane %v3101_v3, 4  ;;  %v2863_v37 = vmax.f32 %v2747_v13, 0.0  ;;  %v2750_v38 = vadd.f32 %v7623_v11, %v2749_v8  ;;  %v2751_v44 = vpop.f32.mrb[63].mxu1 }
 0x391   :  { %v3284_v4 = vsel %vm3252_vm10, %v3283_v63, %v3282_v40 }
 0x392   :  { %v3100_v1 = vmax.f32 %v3098_v35, %v3099_v2  ;;  %v3103_v18 = vmax.f32 %v3101_v3, %v3102_v23  ;;  %v2864_v55 = vmax.f32 %v2750_v38, 0.0  ;;  %v2929_v36 = vmul.f32 %v7630_v9, %v2863_v37 }
 0x393   :  { %v2578_v59 = vpop.f32.mrb[72].mxu0 }
 0x394   :  { %v2579_v61 = vadd.f32 %v7623_v11, %v2578_v59  ;;  %v2580_v48 = vpop.f32.mrb[73].mxu0  ;;  %v3104_v58 = vrot.slane %v3103_v18, 2  ;;  %v2930_v39 = vmul.f32 %v7635_v24, %v2864_v55  ;;  %v3199_v50 = vmul.f32 %v7652_v42, %v3100_v1 }
 0x395   :  { %v2581_v21 = vpop.f32.mrb[74].mxu0  ;;  %v2754_v6 = vpop.f32.mrb[64].mxu1 }
 0x396   :  { %v2821_v12 = vmax.f32 %v2579_v61, 0.0  ;;  %v2582_v19 = vadd.f32 %v7623_v11, %v2581_v21  ;;  %v2583_v29 = vpop.f32.mrb[75].mxu0  ;;  %v3105_v46 = vmax.f32 %v3103_v18, %v3104_v58  ;;  %v3108_v17 = vmax.f32 %v2929_v36, %v2930_v39  ;;  %v2756_v34 = vpop.f32.mrb[65].mxu1 }
 0x397   :  { %v2755_v47 = vadd.f32 %v7623_v11, %v2754_v6  ;;  %v3285_v56 = vrot.slane %v3199_v50, 3  ;;  %v2757_v32 = vpop.f32.mrb[66].mxu1 }
 0x398   :  { %v2822_v16 = vmax.f32 %v2582_v19, 0.0  ;;  %v2887_v28 = vmul.f32 %v7630_v9, %v2821_v12  ;;  %v3106_v0 = vrot.slane %v3105_v46, 1  ;;  %v3109_v27 = vrot.slane %v3108_v17, 4  ;;  %v2759_v25 = vpop.f32.mrb[67].mxu1 }
 0x399   :  { %v2865_v43 = vmax.f32 %v2755_v47, 0.0  ;;  %v2758_v41 = vadd.f32 %v7623_v11, %v2757_v32  ;;  %v3286_v49 = vsel %vm3255_vm11, %v3285_v56, %v3284_v4 }
 0x39a   :  { %v2888_v10 = vmul.f32 %v7635_v24, %v2822_v16  ;;  %v3110_v54 = vmax.f32 %v3108_v17, %v3109_v27  ;;  %v3107_v14 = vmax.f32 %v3105_v46, %v3106_v0 }
 0x39b   :  { %v2866_v60 = vmax.f32 %v2758_v41, 0.0  ;;  %v2931_v57 = vmul.f32 %v7630_v9, %v2865_v43 }
 0x39c   :  { %v2961_v15 = vmax.f32 %v2887_v28, %v2888_v10  ;;  %v3111_v26 = vrot.slane %v3110_v54, 2  ;;  %v3200_v5 = vmul.f32 %v7652_v42, %v3107_v14 }
 0x39d   :  { %v2932_v53 = vmul.f32 %v7635_v24, %v2866_v60  ;;  %v2762_v20 = vpop.f32.mrb[68].mxu1 }
 0x39e   :  { %v2962_v30 = vrot.slane %v2961_v15, 4  ;;  %v3112_v22 = vmax.f32 %v3110_v54, %v3111_v26  ;;  %v2763_v62 = vadd.f32 %v7623_v11, %v2762_v20  ;;  %v2764_v35 = vpop.f32.mrb[69].mxu1  ;;  %v3287_v13 = vrot.slane %v3200_v5, 2 }
 0x39f   :  { %v2586_v40 = vpop.f32.mrb[76].mxu0  ;;  %v3115_v52 = vmax.f32 %v2931_v57, %v2932_v53  ;;  %v2765_v2 = vpop.f32.mrb[70].mxu1 }
 0x3a0   :  { %v2963_v7 = vmax.f32 %v2961_v15, %v2962_v30  ;;  %v2587_v31 = vadd.f32 %v7623_v11, %v2586_v40  ;;  %v2588_v45 = vpop.f32.mrb[77].mxu0  ;;  %v2867_v38 = vmax.f32 %v2763_v62, 0.0  ;;  %v2766_v44 = vadd.f32 %v7623_v11, %v2765_v2  ;;  %v2767_v59 = vpop.f32.mrb[71].mxu1 }
 0x3a1   :  { %v2589_v3 = vpop.f32.mrb[78].mxu0  ;;  %v3116_v37 = vrot.slane %v3115_v52, 4  ;;  %v3113_v61 = vrot.slane %v3112_v22, 1  ;;  %v3288_v1 = vsel %vm3258_vm12, %v3287_v13, %v3286_v49 }
 0x3a2   :  { %v2964_v33 = vrot.slane %v2963_v7, 2  ;;  %v2823_v63 = vmax.f32 %v2587_v31, 0.0  ;;  %v2590_v8 = vadd.f32 %v7623_v11, %v2589_v3  ;;  %v2591_v23 = vpop.f32.mrb[79].mxu0  ;;  %v2868_v55 = vmax.f32 %v2766_v44, 0.0 }
 0x3a3   :  { %v3117_v18 = vmax.f32 %v3115_v52, %v3116_v37  ;;  %v3114_v21 = vmax.f32 %v3112_v22, %v3113_v61  ;;  %v2933_v36 = vmul.f32 %v7630_v9, %v2867_v38 }
 0x3a4   :  { %v2965_v48 = vmax.f32 %v2963_v7, %v2964_v33  ;;  %v2824_v4 = vmax.f32 %v2590_v8, 0.0  ;;  %v2889_v19 = vmul.f32 %v7630_v9, %v2823_v63  ;;  %v2934_v39 = vmul.f32 %v7635_v24, %v2868_v55 }
 0x3a5   :  { %v3118_v58 = vrot.slane %v3117_v18, 2  ;;  %v3201_v50 = vmul.f32 %v7652_v42, %v3114_v21  ;;  %v2770_v46 = vpop.f32.mrb[72].mxu1 }
 0x3a6   :  { %v2966_v12 = vrot.slane %v2965_v48, 1  ;;  %v2890_v29 = vmul.f32 %v7635_v24, %v2824_v4  ;;  %v3122_v17 = vmax.f32 %v2933_v36, %v2934_v39  ;;  %v2771_v47 = vadd.f32 %v7623_v11, %v2770_v46  ;;  %v2772_v34 = vpop.f32.mrb[73].mxu1 }
 0x3a7   :  { %v3289_v56 = vrot.slane %v3201_v50, 1  ;;  %v2773_v32 = vpop.f32.mrb[74].mxu1  ;;  %v3119_v0 = vmax.f32 %v3117_v18, %v3118_v58 }
 0x3a8   :  { %v2967_v16 = vmax.f32 %v2965_v48, %v2966_v12  ;;  %v2968_v6 = vmax.f32 %v2889_v19, %v2890_v29  ;;  %v3123_v27 = vrot.slane %v3122_v17, 4  ;;  %v2869_v43 = vmax.f32 %v2771_v47, 0.0  ;;  %v2775_v25 = vpop.f32.mrb[75].mxu1 }
 0x3a9   :  { %v2774_v41 = vadd.f32 %v7623_v11, %v2773_v32  ;;  %v7774_v30 = vsel %vm3261_vm13, %v3289_v56, %v3288_v1  ;;  %v3120_v62 = vrot.slane %v3119_v0, 1 }
 0x3aa   :  { %v3180_v28 = vmul.f32 %v7652_v42, %v2967_v16  ;;  %v2969_v10 = vrot.slane %v2968_v6, 4  ;;  %v3124_v26 = vmax.f32 %v3122_v17, %v3123_v27  ;;  %v2935_v22 = vmul.f32 %v7630_v9, %v2869_v43 }
 0x3ab   :  { %v2594_v15 = vpop.f32.mrb[80].mxu0  ;;  %v2870_v57 = vmax.f32 %v2774_v41, 0.0  ;;  %v3121_v1 = vmax.f32 %v3119_v0, %v3120_v62 }
 0x3ac   :  { %v3245_v49 = vrot.slane %v3180_v28, 6  ;;  %v2970_v54 = vmax.f32 %v2968_v6, %v2969_v10  ;;  %v2595_v60 = vadd.f32 %v7623_v11, %v2594_v15  ;;  %v2596_v14 = vpop.f32.mrb[81].mxu0  ;;  %v3125_v45 = vrot.slane %v3124_v26, 2 }
 0x3ad   :  { %v2597_v53 = vpop.f32.mrb[82].mxu0  ;;  %v2936_v52 = vmul.f32 %v7635_v24, %v2870_v57  ;;  %v2778_v13 = vpop.f32.mrb[76].mxu1  ;;  %v3202_v46 = vmul.f32 %v7652_v42, %v3121_v1 }
 0x3ae   :  { %v2971_v40 = vrot.slane %v2970_v54, 2  ;;  %v2825_v5 = vmax.f32 %v2595_v60, 0.0  ;;  %v2598_v7 = vadd.f32 %v7623_v11, %v2597_v53  ;;  %v2599_v31 = vpop.f32.mrb[83].mxu0  ;;  %v3247_v20 = vsel %vm3246_vm8, %v3245_v49, %v7736_v51  ;;  %v2780_v2 = vpop.f32.mrb[77].mxu1 }
 0x3af   :  { %v3126_v33 = vmax.f32 %v3124_v26, %v3125_v45  ;;  %v3129_v63 = vmax.f32 %v2935_v22, %v2936_v52  ;;  %v2779_v8 = vadd.f32 %v7623_v11, %v2778_v13  ;;  %v2781_v51 = vpop.f32.mrb[78].mxu1 }
 0x3b0   :  { %v2972_v35 = vmax.f32 %v2970_v54, %v2971_v40  ;;  %v2826_v3 = vmax.f32 %v2598_v7, 0.0  ;;  %v2891_v37 = vmul.f32 %v7630_v9, %v2825_v5  ;;  %v2782_v48 = vadd.f32 %v7623_v11, %v2781_v51  ;;  %v2783_v4 = vpop.f32.mrb[79].mxu1 }
 0x3b1   :  { %v3127_v44 = vrot.slane %v3126_v33, 1  ;;  %v3130_v59 = vrot.slane %v3129_v63, 4  ;;  %v2871_v61 = vmax.f32 %v2779_v8, 0.0 }
 0x3b2   :  { %v2973_v23 = vrot.slane %v2972_v35, 1  ;;  %v2892_v38 = vmul.f32 %v7635_v24, %v2826_v3  ;;  %v2872_v19 = vmax.f32 %v2782_v48, 0.0 }
 0x3b3   :  { %v3128_v21 = vmax.f32 %v3126_v33, %v3127_v44  ;;  %v3131_v12 = vmax.f32 %v3129_v63, %v3130_v59  ;;  %v2937_v50 = vmul.f32 %v7630_v9, %v2871_v61  ;;  %v7804_v44 = vld [vmem:[%s7880_s3] ss:$0 sm:$0xff] }
 0x3b4   :  { %v2974_v18 = vmax.f32 %v2972_v35, %v2973_v23  ;;  %v2975_v55 = vmax.f32 %v2891_v37, %v2892_v38  ;;  %v2938_v16 = vmul.f32 %v7635_v24, %v2872_v19 }
 0x3b5   :  { %v3203_v36 = vmul.f32 %v7652_v42, %v3128_v21  ;;  %v3132_v39 = vrot.slane %v3131_v12, 2  ;;  %v2786_v56 = vpop.f32.mrb[80].mxu1 }
 0x3b6   :  { %v3181_v29 = vmul.f32 %v7652_v42, %v2974_v18  ;;  %v2976_v58 = vrot.slane %v2975_v55, 4  ;;  %v3136_v0 = vmax.f32 %v2937_v50, %v2938_v16  ;;  %v2787_v27 = vadd.f32 %v7623_v11, %v2786_v56  ;;  %v2788_v43 = vpop.f32.mrb[81].mxu1 }
 0x3b7   :  { %v2602_v6 = vpop.f32.mrb[84].mxu0  ;;  %v3291_v10 = vrot.slane %v3203_v36, 7  ;;  %v3133_v32 = vmax.f32 %v3131_v12, %v3132_v39  ;;  %v2789_v54 = vpop.f32.mrb[82].mxu1  ;;  %v7823_v43 = vld [vmem:[%s7881_s4 + $0x8] sm:$0xff] }
 0x3b8   :  { %v3248_v17 = vrot.slane %v3181_v29, 5  ;;  %v2977_v47 = vmax.f32 %v2975_v55, %v2976_v58  ;;  %v2603_v34 = vadd.f32 %v7623_v11, %v2602_v6  ;;  %v2604_v28 = vpop.f32.mrb[85].mxu0  ;;  %v3137_v57 = vrot.slane %v3136_v0, 4  ;;  %v2791_v5 = vpop.f32.mrb[83].mxu1 }
 0x3b9   :  { %v2605_v41 = vpop.f32.mrb[86].mxu0  ;;  %v3134_v26 = vrot.slane %v3133_v32, 1  ;;  %v2873_v53 = vmax.f32 %v2787_v27, 0.0  ;;  %v2790_v40 = vadd.f32 %v7623_v11, %v2789_v54  ;;  %v3292_v45 = vsel %vm3243_vm7, %v3291_v10, %v3202_v46 }
 0x3ba   :  { %v2978_v25 = vrot.slane %v2977_v47, 2  ;;  %v2827_v15 = vmax.f32 %v2603_v34, 0.0  ;;  %v2606_v49 = vadd.f32 %v7623_v11, %v2605_v41  ;;  %v2607_v60 = vpop.f32.mrb[87].mxu0  ;;  %v3250_v14 = vsel %vm3249_vm9, %v3248_v17, %v3247_v20 }
 0x3bb   :  { %v3135_v22 = vmax.f32 %v3133_v32, %v3134_v26  ;;  %v3138_v52 = vmax.f32 %v3136_v0, %v3137_v57  ;;  %v2874_v62 = vmax.f32 %v2790_v40, 0.0  ;;  %v2939_v63 = vmul.f32 %v7630_v9, %v2873_v53  ;;  %v7817_v0 = vld [vmem:[%s7881_s4] sm:$0xff] }
 0x3bc   :  { %v2979_v7 = vmax.f32 %v2977_v47, %v2978_v25  ;;  %v2828_v31 = vmax.f32 %v2606_v49, 0.0  ;;  %v2893_v3 = vmul.f32 %v7630_v9, %v2827_v15 }
 0x3bd   :  { %v3204_v20 = vmul.f32 %v7652_v42, %v3135_v22  ;;  %v3139_v33 = vrot.slane %v3138_v52, 2  ;;  %v2940_v11 = vmul.f32 %v7635_v24, %v2874_v62  ;;  %v2794_v23 = vpop.f32.mrb[84].mxu1 }
 0x3be   :  { %v2980_v35 = vrot.slane %v2979_v7, 1  ;;  %v2894_v13 = vmul.f32 %v7635_v24, %v2828_v31  ;;  %v2795_v59 = vadd.f32 %v7804_v44, %v2794_v23  ;;  %v2796_v61 = vpop.f32.mrb[85].mxu1 }
 0x3bf   :  { %v3293_v37 = vrot.slane %v3204_v20, 6  ;;  %v3140_v38 = vmax.f32 %v3138_v52, %v3139_v33  ;;  %v3143_v51 = vmax.f32 %v2939_v63, %v2940_v11  ;;  %v2797_v9 = vpop.f32.mrb[86].mxu1  ;;  %v7834_v11 = vld [vmem:[%s7882_s5] ss:$0 sm:$0xff] }
 0x3c0   :  { %v2981_v8 = vmax.f32 %v2979_v7, %v2980_v35  ;;  %v2982_v2 = vmax.f32 %v2893_v3, %v2894_v13  ;;  %v2875_v18 = vmax.f32 %v2795_v59, 0.0  ;;  %v2798_v55 = vadd.f32 %v7804_v44, %v2797_v9  ;;  %v2799_v21 = vpop.f32.mrb[87].mxu1 }
 0x3c1   :  { %v3141_v1 = vrot.slane %v3140_v38, 1  ;;  %v3144_v24 = vrot.slane %v3143_v51, 4  ;;  %v3294_v39 = vsel %vm3246_vm8, %v3293_v37, %v3292_v45 }
 0x3c2   :  { %v3182_v48 = vmul.f32 %v7652_v42, %v2981_v8  ;;  %v2983_v4 = vrot.slane %v2982_v2, 4  ;;  %v2876_v6 = vmax.f32 %v2798_v55, 0.0  ;;  %v2941_v27 = vmul.f32 %v7817_v0, %v2875_v18 }
 0x3c3   :  { %v2610_v12 = vpop.f32.mrb[88].mxu0  ;;  %v3142_v50 = vmax.f32 %v3140_v38, %v3141_v1  ;;  %v3145_v16 = vmax.f32 %v3143_v51, %v3144_v24 }
 0x3c4   :  { %v2984_v19 = vmax.f32 %v2982_v2, %v2983_v4  ;;  %v2611_v29 = vadd.f32 %v7804_v44, %v2610_v12  ;;  %v2612_v58 = vpop.f32.mrb[89].mxu0  ;;  %v3251_v36 = vrot.slane %v3182_v48, 4  ;;  %v2942_v41 = vmul.f32 %v7823_v43, %v2876_v6 }
 0x3c5   :  { %v2613_v46 = vpop.f32.mrb[90].mxu0  ;;  %v3205_v10 = vmul.f32 %v7652_v42, %v3142_v50  ;;  %v3146_v32 = vrot.slane %v3145_v16, 2 }
 0x3c6   :  { %v2985_v17 = vrot.slane %v2984_v19, 2  ;;  %v2829_v47 = vmax.f32 %v2611_v29, 0.0  ;;  %v2614_v34 = vadd.f32 %v7804_v44, %v2613_v46  ;;  %v2615_v56 = vpop.f32.mrb[91].mxu0  ;;  %v3253_v28 = vsel %vm3252_vm10, %v3251_v36, %v3250_v14 }
 0x3c7   :  { %v3295_v49 = vrot.slane %v3205_v10, 5  ;;  %v3147_v54 = vmax.f32 %v3145_v16, %v3146_v32  ;;  %v3150_v42 = vmax.f32 %v2941_v27, %v2942_v41 }
 0x3c8   :  { %v2986_v25 = vmax.f32 %v2984_v19, %v2985_v17  ;;  %v2830_v15 = vmax.f32 %v2614_v34, 0.0  ;;  %v2802_v60 = vpop.f32.mrb[88].mxu1  ;;  %v2895_v26 = vmul.f32 %v7817_v0, %v2829_v47 }
 0x3c9   :  { %v2803_v53 = vadd.f32 %v7804_v44, %v2802_v60  ;;  %v2804_v40 = vpop.f32.mrb[89].mxu1  ;;  %v3148_v5 = vrot.slane %v3147_v54, 1  ;;  %v3151_v7 = vrot.slane %v3150_v42, 4  ;;  %v3296_v45 = vsel %vm3249_vm9, %v3295_v49, %v3294_v39 }
 0x3ca   :  { %v2987_v14 = vrot.slane %v2986_v25, 1  ;;  %v2896_v57 = vmul.f32 %v7823_v43, %v2830_v15  ;;  %v2805_v31 = vpop.f32.mrb[90].mxu1 }
 0x3cb   :  { %v2877_v62 = vmax.f32 %v2803_v53, 0.0  ;;  %v2806_v35 = vadd.f32 %v7804_v44, %v2805_v31  ;;  %v2807_v3 = vpop.f32.mrb[91].mxu1  ;;  %v3149_v13 = vmax.f32 %v3147_v54, %v3148_v5  ;;  %v3152_v20 = vmax.f32 %v3150_v42, %v3151_v7 }
 0x3cc   :  { %v2988_v22 = vmax.f32 %v2986_v25, %v2987_v14  ;;  %v2989_v52 = vmax.f32 %v2895_v26, %v2896_v57 }
 0x3cd   :  { %v2878_v63 = vmax.f32 %v2806_v35, 0.0  ;;  %v3206_v2 = vmul.f32 %v7834_v11, %v3149_v13  ;;  %v3153_v23 = vrot.slane %v3152_v20, 2  ;;  %v2943_v37 = vmul.f32 %v7817_v0, %v2877_v62 }
 0x3ce   :  { %v2990_v33 = vrot.slane %v2989_v52, 4  ;;  %v3183_v8 = vmul.f32 %v7834_v11, %v2988_v22 }
 0x3cf   :  { %v2618_v38 = vpop.f32.mrb[92].mxu0  ;;  %v2944_v59 = vmul.f32 %v7823_v43, %v2878_v63  ;;  %v3154_v9 = vmax.f32 %v3152_v20, %v3153_v23  ;;  %v3297_v18 = vrot.slane %v3206_v2, 4 }
 0x3d0   :  { %v2991_v51 = vmax.f32 %v2989_v52, %v2990_v33  ;;  %v2619_v61 = vadd.f32 %v7804_v44, %v2618_v38  ;;  %v2620_v48 = vpop.f32.mrb[93].mxu0  ;;  %v3254_v4 = vrot.slane %v3183_v8, 3  ;;  %v2810_v24 = vpop.f32.mrb[92].mxu1 }
 0x3d1   :  { %v2621_v1 = vpop.f32.mrb[94].mxu0  ;;  %v3157_v21 = vmax.f32 %v2943_v37, %v2944_v59  ;;  %v2812_v58 = vpop.f32.mrb[93].mxu1  ;;  %v3155_v36 = vrot.slane %v3154_v9, 1  ;;  %v2811_v39 = vadd.f32 %v7804_v44, %v2810_v24  ;;  %v3298_v6 = vsel %vm3252_vm10, %v3297_v18, %v3296_v45 }
 0x3d2   :  { %v2992_v55 = vrot.slane %v2991_v51, 2  ;;  %v2831_v12 = vmax.f32 %v2619_v61, 0.0  ;;  %v2622_v19 = vadd.f32 %v7804_v44, %v2621_v1  ;;  %v2623_v29 = vpop.f32.mrb[95].mxu0  ;;  %v2813_v50 = vpop.f32.mrb[94].mxu1  ;;  %v3256_v16 = vsel %vm3255_vm11, %v3254_v4, %v3253_v28  ;;  %v3477_v1 = vld [vmem:[#allocation2] ss:$0 sm:$0xff] }
 0x3d3   :  { %v3158_v17 = vrot.slane %v3157_v21, 4  ;;  %v2815_v34 = vpop.f32.mrb[95].mxu1  ;;  %v3156_v56 = vmax.f32 %v3154_v9, %v3155_v36  ;;  %v2879_v10 = vmax.f32 %v2811_v39, 0.0  ;;  %v2814_v32 = vadd.f32 %v7804_v44, %v2813_v50 }
 0x3d4   :  { %v2993_v46 = vmax.f32 %v2991_v51, %v2992_v55  ;;  %v2832_v47 = vmax.f32 %v2622_v19, 0.0  ;;  %v2897_v25 = vmul.f32 %v7817_v0, %v2831_v12 }
 0x3d5   :  { %v3159_v41 = vmax.f32 %v3157_v21, %v3158_v17  ;;  %v2880_v49 = vmax.f32 %v2814_v32, 0.0  ;;  %v3207_v54 = vmul.f32 %v7834_v11, %v3156_v56  ;;  %v2945_v14 = vmul.f32 %v7817_v0, %v2879_v10 }
 0x3d6   :  { %v2994_v27 = vrot.slane %v2993_v46, 1  ;;  %v2898_v15 = vmul.f32 %v7823_v43, %v2832_v47 }
 0x3d7   :  { %v3160_v28 = vrot.slane %v3159_v41, 2  ;;  %v2946_v26 = vmul.f32 %v7823_v43, %v2880_v49  ;;  %v3299_v57 = vrot.slane %v3207_v54, 3 }
 0x3d8   :  { %v2996_v42 = vmax.f32 %v2897_v25, %v2898_v15  ;;  %v2995_v60 = vmax.f32 %v2993_v46, %v2994_v27 }
 0x3d9   :  { %v3161_v53 = vmax.f32 %v3159_v41, %v3160_v28  ;;  %v3164_v5 = vmax.f32 %v2945_v14, %v2946_v26  ;;  %v3300_v7 = vsel %vm3255_vm11, %v3299_v57, %v3298_v6 }
 0x3da   :  { %v2997_v40 = vrot.slane %v2996_v42, 4  ;;  %v3184_v44 = vmul.f32 %v7834_v11, %v2995_v60 }
 0x3db   :  { %v3162_v31 = vrot.slane %v3161_v53, 1  ;;  %v3165_v52 = vrot.slane %v3164_v5, 4 }
 0x3dc   :  { %v2998_v45 = vmax.f32 %v2996_v42, %v2997_v40  ;;  %v3257_v22 = vrot.slane %v3184_v44, 2 }
 0x3dd   :  { %v3163_v3 = vmax.f32 %v3161_v53, %v3162_v31  ;;  %v3166_v13 = vmax.f32 %v3164_v5, %v3165_v52 }
 0x3de   :  { %v2999_v62 = vrot.slane %v2998_v45, 2  ;;  %v3259_v35 = vsel %vm3258_vm12, %v3257_v22, %v3256_v16 }
 0x3df   :  { %v3208_v43 = vmul.f32 %v7834_v11, %v3163_v3  ;;  %v3167_v20 = vrot.slane %v3166_v13, 2 }
 0x3e0   :  { %v3000_v0 = vmax.f32 %v2998_v45, %v2999_v62 }
 0x3e1   :  { %v3301_v63 = vrot.slane %v3208_v43, 2  ;;  %v3168_v8 = vmax.f32 %v3166_v13, %v3167_v20 }
 0x3e2   :  { %v3001_v33 = vrot.slane %v3000_v0, 1 }
 0x3e3   :  { %v3302_v23 = vsel %vm3258_vm12, %v3301_v63, %v3300_v7  ;;  %v3169_v37 = vrot.slane %v3168_v8, 1 }
 0x3e4   :  { %v3002_v2 = vmax.f32 %v3000_v0, %v3001_v33 }
 0x3e5   :  { %v3170_v51 = vmax.f32 %v3168_v8, %v3169_v37 }
 0x3e6   :  { %v3185_v38 = vmul.f32 %v7834_v11, %v3002_v2 }
 0x3e7   :  { %v3209_v61 = vmul.f32 %v7834_v11, %v3170_v51 }
 0x3e8   :  { %v3260_v59 = vrot.slane %v3185_v38, 1 }
 0x3e9   :  { %v3303_v4 = vrot.slane %v3209_v61, 1 }
 0x3ea   :  { %v3262_v48 = vsel %vm3261_vm13, %v3260_v59, %v3259_v35 }
 0x3eb   :  { %3309 = vadd.xlane.f32.xlu0 %v3262_v48  ;;  %v3304_v9 = vsel %vm3261_vm13, %v3303_v4, %v3302_v23 }
 0x3ef   :  { %3313 = vadd.xlane.f32.xlu0 %v7774_v30 }
 0x3f3   :  { %3315 = vadd.xlane.f32.xlu0 %v3304_v9 }
 0x3f6   :  { %v3312_v24 = vpop.xlane.xlu1 %3311 }
 0x3f7   :  { %v3325_v18 = vadd.f32 %v3477_v1, %v3312_v24 }
 0x3f9   :  { %v3479_v55 = vmul.f32 -1.442695, %v3325_v18 }
 0x3fb   :  { %4127 = vpow2.f32 %v3479_v55 }
 0x405   :  { %v4128_v21 = vpop.eup %4127 }
 0x406   :  { %v3341_v12 = vadd.f32 1.0, %v4128_v21 }
 0x408   :  { %4129 = vrcp.f32 %v3341_v12 }
 0x412   :  { %v4130_v19 = vpop.eup %4129 }
 0x413   :  { %3354 = vst.msk [vmem:[%s7884_s7 + $0x8] sm:$0xff] %vm3352_vm14, %v4130_v19 }
 0x478   :  { %v3310_v11 = vpop.xlane.xlu0 %3309 }
 0x479   :  { %v3324_v29 = vadd.f32 %v3477_v1, %v3310_v11 }
 0x47b   :  { %v3478_v58 = vmul.f32 -1.442695, %v3324_v29 }
 0x47c   :  { %v3314_v30 = vpop.xlane.xlu0 %3313 }
 0x47d   :  { %4131 = vpow2.f32 %v3478_v58  ;;  %v3326_v36 = vadd.f32 %v3477_v1, %v3314_v30 }
 0x47f   :  { %v3480_v39 = vmul.f32 -1.442695, %v3326_v36 }
 0x480   :  { %v3316_v50 = vpop.xlane.xlu0 %3315 }
 0x481   :  { %4133 = vpow2.f32 %v3480_v39  ;;  %v3327_v16 = vadd.f32 %v3477_v1, %v3316_v50 }
 0x483   :  { %v3481_v6 = vmul.f32 -1.442695, %v3327_v16 }
 0x485   :  { %4135 = vpow2.f32 %v3481_v6 }
 0x487   :  { %v4132_v46 = vpop.eup %4131 }
 0x488   :  { %v3340_v17 = vadd.f32 1.0, %v4132_v46 }
 0x48a   :  { %4137 = vrcp.f32 %v3340_v17 }
 0x48b   :  { %v4134_v47 = vpop.eup %4133 }
 0x48c   :  { %v3342_v34 = vadd.f32 1.0, %v4134_v47 }
 0x48e   :  { %4139 = vrcp.f32 %v3342_v34 }
 0x48f   :  { %v4136_v56 = vpop.eup %4135 }
 0x490   :  { %v3343_v10 = vadd.f32 1.0, %v4136_v56 }
 0x492   :  { %4141 = vrcp.f32 %v3343_v10 }
 0x494   :  { %v4138_v32 = vpop.eup %4137 }
 0x495   :  { %3353 = vst.msk [vmem:[%s7884_s7] sm:$0xff] %vm3352_vm14, %v4138_v32 }
 0x498   :  { %v4140_v27 = vpop.eup %4139 }
 0x499   :  { %3355 = vst.msk [vmem:[%s7884_s7 + $0x10] sm:$0xff] %vm3352_vm14, %v4140_v27 }
 0x49c   :  { %v4142_v41 = vpop.eup %4141 }
 0x49d   :  { %3356 = vst.msk [vmem:[%s7884_s7 + $0x18] sm:$0xff] %vm3352_vm14, %v4142_v41 }

</bundles_post_ra>
